<compile_context>
chip_gen: v5e
topology: v5e:2x2
jax: 0.10.0
libtpu: 0.0.40
codegen_flags: <defaults>
</compile_context>

<pallas_src>
import functools

import numpy as np
import jax
import jax.numpy as jnp
from jax.experimental import pallas as pl
from jax.experimental.pallas import tpu as pltpu

LANE = 128


def _round_up(v, m):
    return (v + m - 1) // m * m


def _cnn_encoder_kernel(xcol_ref, w1_ref, w2p_ref, w2c_ref, b2_ref, wr_ref, br_ref,
                        out_ref, a1_ref, *, nb, h, w, inv_hw):
    # xcol_ref: (nb*h*w, K1P) bf16  -- host-side im2col of the input (9 taps*Cin + ones lane)
    # w1_ref  : (K1P, C1P) bf16     -- conv1 weights, bias folded into the ones row
    # w2p_ref : (4, 2*C1P, C2P) bf16-- conv2 taps 0..7 packed in pairs along K
    # w2c_ref : (C1P, C2P) bf16     -- conv2 leftover tap 8
    # b2_ref  : (1, C2P) f32
    # wr_ref  : (C2P, HidP) bf16    br_ref: (1, HidP) f32
    # out_ref : (nb, 1, HidP) f32
    # a1_ref  : (nb, h+2, w+2, C1P) bf16 scratch -- conv1 activation with zero halo
    hw = h * w
    c1p = w1_ref.shape[1]
    f32 = jnp.float32
    bf16 = jnp.bfloat16

    # Re-zero only the 1-pixel halo (interior is fully overwritten every step; a one-shot
    # program_id==0 init would be unsafe under "parallel" megacore semantics).
    zrow = jnp.zeros((nb, 1, w + 2, c1p), bf16)
    zcol = jnp.zeros((nb, h + 2, 1, c1p), bf16)
    a1_ref[:, 0:1, :, :] = zrow
    a1_ref[:, h + 1:h + 2, :, :] = zrow
    a1_ref[:, :, 0:1, :] = zcol
    a1_ref[:, :, w + 1:w + 2, :] = zcol

    feats = []
    for i in range(nb):                      # static unroll; caps f32 live rows at h*w
        # ---- conv1 + ReLU: one MXU matmul on the pre-packed im2col LHS ----
        lhs1 = xcol_ref[pl.ds(i * hw, hw), :]                          # (hw, K1P) bf16
        y1 = jnp.dot(lhs1, w1_ref[...], preferred_element_type=f32)    # (hw, C1P) f32
        y1 = jnp.maximum(y1, 0.0)
        a1_ref[i, 1:1 + h, 1:1 + w, :] = y1.astype(bf16).reshape(h, w, c1p)

        # ---- conv2 + ReLU: 4 paired K=256 matmuls + 1 leftover K=128 matmul ----
        def win(k):
            kh, kw = divmod(k, 3)
            return a1_ref[i, kh:kh + h, kw:kw + w, :].reshape(hw, c1p)  # bf16

        acc = jnp.dot(jnp.concatenate([win(0), win(1)], axis=-1), w2p_ref[0],
                      preferred_element_type=f32)
        for p in range(1, 4):
            acc = acc + jnp.dot(
                jnp.concatenate([win(2 * p), win(2 * p + 1)], axis=-1), w2p_ref[p],
                preferred_element_type=f32)
        acc = acc + jnp.dot(win(8), w2c_ref[...], preferred_element_type=f32)
        y2 = jnp.maximum(acc + b2_ref[...], 0.0)                        # (hw, C2P) f32

        # ---- global average pool (backbone tail) + flatten ----
        feats.append(jnp.sum(y2, axis=0, keepdims=True) * inv_hw)       # (1, C2P) f32

    feat = feats[0] if nb == 1 else jnp.concatenate(feats, axis=0)      # (nb, C2P)

    # ---- Linear remap to rnn_hidden_size (bf16 MXU, f32 accumulate + f32 bias) ----
    logits = jnp.dot(feat.astype(bf16), wr_ref[...],
                     preferred_element_type=f32) + br_ref[...]          # (nb, HidP)
    out_ref[...] = logits.reshape(nb, 1, -1)


def _choose_images_per_step(n):
    # Batch several images per grid step, but keep >= 2 grid steps when possible so both
    # v7x TensorCores get work under dimension_semantics=("parallel",).
    for nb in (4, 2, 1):
        if n % nb == 0 and n // nb >= 2:
            return nb
    return 1


def cnn_encoder_forward(x_nchw, params, *, rnn_hidden_size):
    """x_nchw: (N, Cin, H, W) float32 -> (N, rnn_hidden_size) float32."""
    N, Cin, H, W = x_nchw.shape
    C1 = params["w1"].shape[0]
    C2 = params["w2"].shape[0]
    hid = rnn_hidden_size
    HW = H * W

    K1 = 9 * Cin + 1                        # 9 taps * Cin + constant-ones (bias) lane
    K1P = _round_up(K1, LANE)
    C1P = _round_up(C1, LANE)
    C2P = _round_up(C2, LANE)
    HidP = _round_up(hid, LANE)

    f32, bf16 = jnp.float32, jnp.bfloat16

    # ---- host-side im2col for conv1 (the input is tiny; 9*Cin+1 fits one K lane tile) ----
    x = jnp.transpose(x_nchw.astype(f32), (0, 2, 3, 1))                 # NHWC
    xp = jnp.pad(x, ((0, 0), (1, 1), (1, 1), (0, 0)))
    taps = [xp[:, kh:kh + H, kw:kw + W, :] for kh in range(3) for kw in range(3)]
    xcol = jnp.concatenate(taps + [jnp.ones((N, H, W, 1), f32)], axis=-1)   # (N,H,W,K1)
    xcol = jnp.pad(xcol, ((0, 0), (0, 0), (0, 0), (0, K1P - K1)))
    xcol = xcol.reshape(N * HW, K1P).astype(bf16)

    # ---- conv1 weights packed to match the im2col LHS, bias folded into the ones row ----
    w1 = jnp.transpose(params["w1"].astype(f32), (2, 3, 1, 0)).reshape(9 * Cin, C1)
    w1 = jnp.concatenate([w1, params["b1"].astype(f32).reshape(1, C1)], axis=0)
    w1 = jnp.pad(w1, ((0, K1P - K1), (0, C1P - C1))).astype(bf16)       # (K1P, C1P)

    # ---- conv2 weights: 9 taps -> 4 K=256 pairs + 1 leftover (fills v6e/v7x MXU depth) ----
    w2 = jnp.transpose(params["w2"].astype(f32), (2, 3, 1, 0)).reshape(9, C1, C2)
    w2 = jnp.pad(w2, ((0, 0), (0, C1P - C1), (0, C2P - C2)))            # (9, C1P, C2P)
    w2p = w2[0:8].reshape(4, 2 * C1P, C2P).astype(bf16)
    w2c = w2[8].astype(bf16)
    b2 = jnp.pad(params["b2"].astype(f32), (0, C2P - C2)).reshape(1, C2P)

    # ---- linear remap: torch Linear weight (hid, C2) -> (C2P, HidP) ----
    wr = jnp.pad(jnp.transpose(params["w_fc"].astype(f32)),
                 ((0, C2P - C2), (0, HidP - hid))).astype(bf16)
    br = jnp.pad(params["b_fc"].astype(f32), (0, HidP - hid)).reshape(1, HidP)

    Nb = _choose_images_per_step(N)
    kernel = functools.partial(_cnn_encoder_kernel, nb=Nb, h=H, w=W,
                               inv_hw=1.0 / float(HW))

    def const(shape):
        nd = len(shape)
        return pl.BlockSpec(shape, lambda n, _nd=nd: (0,) * _nd)

    out = pl.pallas_call(
        kernel,
        out_shape=jax.ShapeDtypeStruct((N, 1, HidP), f32),
        grid=(N // Nb,),
        in_specs=[
            pl.BlockSpec((Nb * HW, K1P), lambda n: (n, 0)),
            const((K1P, C1P)),
            const((4, 2 * C1P, C2P)),
            const((C1P, C2P)),
            const((1, C2P)),
            const((C2P, HidP)),
            const((1, HidP)),
        ],
        out_specs=pl.BlockSpec((Nb, 1, HidP), lambda n: (n, 0, 0)),
        scratch_shapes=[pltpu.VMEM((Nb, H + 2, W + 2, C1P), bf16)],
        compiler_params=pltpu.CompilerParams(
            dimension_semantics=("parallel",),      # batch blocks split across TCs (v7x)
            vmem_limit_bytes=32 * 1024 * 1024),
    )(xcol, w1, w2p, w2c, b2, wr, br)

    return out.reshape(N, HidP)[:, :hid]


def reference_forward(x_nchw, p):
    """Pure numpy transcription of the forward (for verification)."""
    x = np.transpose(np.asarray(x_nchw, np.float32), (0, 2, 3, 1))      # NHWC

    def conv3x3(xin, w, b):
        Nn, Hh, Ww, Ci = xin.shape
        Co = w.shape[0]
        xp = np.zeros((Nn, Hh + 2, Ww + 2, Ci), np.float32)
        xp[:, 1:Hh + 1, 1:Ww + 1, :] = xin
        out = np.zeros((Nn, Hh, Ww, Co), np.float32)
        for kh in range(3):
            for kw in range(3):
                out += xp[:, kh:kh + Hh, kw:kw + Ww, :] @ w[:, :, kh, kw].T
        return out + b

    y = np.maximum(conv3x3(x, p["w1"], p["b1"]), 0.0)
    y = np.maximum(conv3x3(y, p["w2"], p["b2"]), 0.0)
    feat = y.mean(axis=(1, 2))                                          # avgpool + flatten
    return feat @ p["w_fc"].T + p["b_fc"]


if __name__ == "__main__":
    N, Cin, H, W = 2, 4, 16, 16
    C1, C2, HID = 32, 64, 32

    key = jax.random.PRNGKey(0)
    kx, k1, k2, k3, k4, k5, k6 = jax.random.split(key, 7)
    x = jax.random.normal(kx, (N, Cin, H, W), jnp.float32)
    params = dict(
        w1=jax.random.normal(k1, (C1, Cin, 3, 3), jnp.float32) / np.sqrt(9 * Cin),
        b1=jax.random.normal(k2, (C1,), jnp.float32) * 0.05,
        w2=jax.random.normal(k3, (C2, C1, 3, 3), jnp.float32) / np.sqrt(9 * C1),
        b2=jax.random.normal(k4, (C2,), jnp.float32) * 0.05,
        w_fc=jax.random.normal(k5, (HID, C2), jnp.float32) / np.sqrt(C2),
        b_fc=jax.random.normal(k6, (HID,), jnp.float32) * 0.05,
    )

    out = cnn_encoder_forward(x, params, rnn_hidden_size=HID)
    out = jax.block_until_ready(out)

    ref = reference_forward(np.asarray(x), {k: np.asarray(v) for k, v in params.items()})
    assert out.shape == (N, HID)
    np.testing.assert_allclose(np.asarray(out), ref, rtol=5e-2, atol=5e-2)

    print("KERNEL_OK")
</pallas_src>

<mosaic_0001>
module attributes {stable_mosaic.version = 11 : i64} {
  func.func @_cnn_encoder_kernel(%arg0: i32, %arg1: memref<256x128xbf16, #tpu.memory_space<vmem>>, %arg2: memref<128x128xbf16, #tpu.memory_space<vmem>>, %arg3: memref<4x256x128xbf16, #tpu.memory_space<vmem>>, %arg4: memref<128x128xbf16, #tpu.memory_space<vmem>>, %arg5: memref<1x128xf32, #tpu.memory_space<vmem>>, %arg6: memref<128x128xbf16, #tpu.memory_space<vmem>>, %arg7: memref<1x128xf32, #tpu.memory_space<vmem>>, %arg8: memref<1x1x128xf32, #tpu.memory_space<vmem>>, %arg9: memref<1x18x18x128xbf16, #tpu.memory_space<vmem>>) attributes {dimension_semantics = [#tpu.dimension_semantics<parallel>], iteration_bounds = array<i64: 2>, scalar_prefetch = 0 : i64, scratch_operands = 1 : i64, tpu.core_type = #tpu.core_type<tc>, window_params = [{transform_indices = @transform_0, window_bounds = array<i64: 256, 128>}, {pipeline_mode = #tpu.pipeline_mode<synchronous>, transform_indices = @transform_1, window_bounds = array<i64: 128, 128>}, {pipeline_mode = #tpu.pipeline_mode<synchronous>, transform_indices = @transform_2, window_bounds = array<i64: 4, 256, 128>}, {pipeline_mode = #tpu.pipeline_mode<synchronous>, transform_indices = @transform_3, window_bounds = array<i64: 128, 128>}, {pipeline_mode = #tpu.pipeline_mode<synchronous>, transform_indices = @transform_4, window_bounds = array<i64: 1, 128>}, {pipeline_mode = #tpu.pipeline_mode<synchronous>, transform_indices = @transform_5, window_bounds = array<i64: 128, 128>}, {pipeline_mode = #tpu.pipeline_mode<synchronous>, transform_indices = @transform_6, window_bounds = array<i64: 1, 128>}, {transform_indices = @transform_7, window_bounds = array<i64: 1, 1, 128>}]} {
    %cst = arith.constant 0.000000e+00 : bf16
    %0 = vector.broadcast %cst : bf16 to vector<1x1x18x128xbf16>
    %cst_0 = arith.constant 0.000000e+00 : bf16
    %1 = vector.broadcast %cst_0 : bf16 to vector<1x18x1x128xbf16>
    %c0 = arith.constant 0 : index
    %c0_1 = arith.constant 0 : index
    %c0_2 = arith.constant 0 : index
    %c0_3 = arith.constant 0 : index
    %2 = vector.load %arg9[%c0, %c0_1, %c0_2, %c0_3] : memref<1x18x18x128xbf16, #tpu.memory_space<vmem>>, vector<1x1x18x128xbf16>
    tpu.vector_store %arg9[%c0, %c0_1, %c0_2, %c0_3], %0 {strides = array<i32>} : memref<1x18x18x128xbf16, #tpu.memory_space<vmem>>, vector<1x1x18x128xbf16>,
    %c0_4 = arith.constant 0 : index
    %c17 = arith.constant 17 : index
    %c0_5 = arith.constant 0 : index
    %c0_6 = arith.constant 0 : index
    %3 = vector.load %arg9[%c0_4, %c17, %c0_5, %c0_6] : memref<1x18x18x128xbf16, #tpu.memory_space<vmem>>, vector<1x1x18x128xbf16>
    tpu.vector_store %arg9[%c0_4, %c17, %c0_5, %c0_6], %0 {strides = array<i32>} : memref<1x18x18x128xbf16, #tpu.memory_space<vmem>>, vector<1x1x18x128xbf16>,
    %c0_7 = arith.constant 0 : index
    %c0_8 = arith.constant 0 : index
    %c0_9 = arith.constant 0 : index
    %c0_10 = arith.constant 0 : index
    %4 = vector.load %arg9[%c0_7, %c0_8, %c0_9, %c0_10] : memref<1x18x18x128xbf16, #tpu.memory_space<vmem>>, vector<1x18x1x128xbf16>
    tpu.vector_store %arg9[%c0_7, %c0_8, %c0_9, %c0_10], %1 {strides = array<i32>} : memref<1x18x18x128xbf16, #tpu.memory_space<vmem>>, vector<1x18x1x128xbf16>,
    %c0_11 = arith.constant 0 : index
    %c0_12 = arith.constant 0 : index
    %c17_13 = arith.constant 17 : index
    %c0_14 = arith.constant 0 : index
    %5 = vector.load %arg9[%c0_11, %c0_12, %c17_13, %c0_14] : memref<1x18x18x128xbf16, #tpu.memory_space<vmem>>, vector<1x18x1x128xbf16>
    tpu.vector_store %arg9[%c0_11, %c0_12, %c17_13, %c0_14], %1 {strides = array<i32>} : memref<1x18x18x128xbf16, #tpu.memory_space<vmem>>, vector<1x18x1x128xbf16>,
    %c0_15 = arith.constant 0 : index
    %c0_16 = arith.constant 0 : index
    %6 = vector.load %arg1[%c0_15, %c0_16] : memref<256x128xbf16, #tpu.memory_space<vmem>>, vector<256x128xbf16>
    %c0_17 = arith.constant 0 : index
    %c0_18 = arith.constant 0 : index
    %7 = vector.load %arg2[%c0_17, %c0_18] : memref<128x128xbf16, #tpu.memory_space<vmem>>, vector<128x128xbf16>
    %cst_19 = arith.constant dense<0.000000e+00> : vector<256x128xf32>
    %8 = tpu.matmul %6, %7, %cst_19 {dimension_numbers = #tpu.dot_dimension_numbers<[1], [0], [0], [1], [0, 0, 1, 1], [], []>} : vector<256x128xbf16>, vector<128x128xbf16>, vector<256x128xf32> -> vector<256x128xf32>
    %cst_20 = arith.constant 0.000000e+00 : f32
    %9 = vector.broadcast %cst_20 : f32 to vector<256x128xf32>
    %10 = arith.maximumf %8, %9 : vector<256x128xf32>
    %11 = arith.truncf %10 : vector<256x128xf32> to vector<256x128xbf16>
    %12 = vector.shape_cast %11 : vector<256x128xbf16> to vector<16x16x128xbf16>
    %c0_21 = arith.constant 0 : index
    %c1 = arith.constant 1 : index
    %c1_22 = arith.constant 1 : index
    %c0_23 = arith.constant 0 : index
    %13 = vector.load %arg9[%c0_21, %c1, %c1_22, %c0_23] : memref<1x18x18x128xbf16, #tpu.memory_space<vmem>>, vector<1x16x16x128xbf16>
    %14 = vector.shape_cast %13 : vector<1x16x16x128xbf16> to vector<16x16x128xbf16>
    %15 = vector.shape_cast %12 : vector<16x16x128xbf16> to vector<1x16x16x128xbf16>
    tpu.vector_store %arg9[%c0_21, %c1, %c1_22, %c0_23], %15 {strides = array<i32>} : memref<1x18x18x128xbf16, #tpu.memory_space<vmem>>, vector<1x16x16x128xbf16>,
    %c0_24 = arith.constant 0 : index
    %c0_25 = arith.constant 0 : index
    %c0_26 = arith.constant 0 : index
    %c0_27 = arith.constant 0 : index
    %16 = vector.load %arg9[%c0_24, %c0_25, %c0_26, %c0_27] : memref<1x18x18x128xbf16, #tpu.memory_space<vmem>>, vector<1x16x16x128xbf16>
    %17 = vector.shape_cast %16 : vector<1x16x16x128xbf16> to vector<16x16x128xbf16>
    %18 = vector.shape_cast %17 : vector<16x16x128xbf16> to vector<256x128xbf16>
    %c0_28 = arith.constant 0 : index
    %c0_29 = arith.constant 0 : index
    %c1_30 = arith.constant 1 : index
    %c0_31 = arith.constant 0 : index
    %19 = vector.load %arg9[%c0_28, %c0_29, %c1_30, %c0_31] : memref<1x18x18x128xbf16, #tpu.memory_space<vmem>>, vector<1x16x16x128xbf16>
    %20 = vector.shape_cast %19 : vector<1x16x16x128xbf16> to vector<16x16x128xbf16>
    %21 = vector.shape_cast %20 : vector<16x16x128xbf16> to vector<256x128xbf16>
    %22 = tpu.concatenate %18, %21 in 1 : vector<256x128xbf16>, vector<256x128xbf16> -> vector<256x256xbf16>
    %c0_32 = arith.constant 0 : index
    %c0_33 = arith.constant 0 : index
    %c0_34 = arith.constant 0 : index
    %23 = vector.load %arg3[%c0_32, %c0_33, %c0_34] : memref<4x256x128xbf16, #tpu.memory_space<vmem>>, vector<1x256x128xbf16>
    %24 = vector.shape_cast %23 : vector<1x256x128xbf16> to vector<256x128xbf16>
    %cst_35 = arith.constant dense<0.000000e+00> : vector<256x128xf32>
    %25 = tpu.matmul %22, %24, %cst_35 {dimension_numbers = #tpu.dot_dimension_numbers<[1], [0], [0], [1], [0, 0, 1, 1], [], []>} : vector<256x256xbf16>, vector<256x128xbf16>, vector<256x128xf32> -> vector<256x128xf32>
    %c0_36 = arith.constant 0 : index
    %c0_37 = arith.constant 0 : index
    %c2 = arith.constant 2 : index
    %c0_38 = arith.constant 0 : index
    %26 = vector.load %arg9[%c0_36, %c0_37, %c2, %c0_38] : memref<1x18x18x128xbf16, #tpu.memory_space<vmem>>, vector<1x16x16x128xbf16>
    %27 = vector.shape_cast %26 : vector<1x16x16x128xbf16> to vector<16x16x128xbf16>
    %28 = vector.shape_cast %27 : vector<16x16x128xbf16> to vector<256x128xbf16>
    %c0_39 = arith.constant 0 : index
    %c1_40 = arith.constant 1 : index
    %c0_41 = arith.constant 0 : index
    %c0_42 = arith.constant 0 : index
    %29 = vector.load %arg9[%c0_39, %c1_40, %c0_41, %c0_42] : memref<1x18x18x128xbf16, #tpu.memory_space<vmem>>, vector<1x16x16x128xbf16>
    %30 = vector.shape_cast %29 : vector<1x16x16x128xbf16> to vector<16x16x128xbf16>
    %31 = vector.shape_cast %30 : vector<16x16x128xbf16> to vector<256x128xbf16>
    %32 = tpu.concatenate %28, %31 in 1 : vector<256x128xbf16>, vector<256x128xbf16> -> vector<256x256xbf16>
    %c1_43 = arith.constant 1 : index
    %c0_44 = arith.constant 0 : index
    %c0_45 = arith.constant 0 : index
    %33 = vector.load %arg3[%c1_43, %c0_44, %c0_45] : memref<4x256x128xbf16, #tpu.memory_space<vmem>>, vector<1x256x128xbf16>
    %34 = vector.shape_cast %33 : vector<1x256x128xbf16> to vector<256x128xbf16>
    %cst_46 = arith.constant dense<0.000000e+00> : vector<256x128xf32>
    %35 = tpu.matmul %32, %34, %cst_46 {dimension_numbers = #tpu.dot_dimension_numbers<[1], [0], [0], [1], [0, 0, 1, 1], [], []>} : vector<256x256xbf16>, vector<256x128xbf16>, vector<256x128xf32> -> vector<256x128xf32>
    %36 = arith.addf %25, %35 : vector<256x128xf32>
    %c0_47 = arith.constant 0 : index
    %c1_48 = arith.constant 1 : index
    %c1_49 = arith.constant 1 : index
    %c0_50 = arith.constant 0 : index
    %37 = vector.load %arg9[%c0_47, %c1_48, %c1_49, %c0_50] : memref<1x18x18x128xbf16, #tpu.memory_space<vmem>>, vector<1x16x16x128xbf16>
    %38 = vector.shape_cast %37 : vector<1x16x16x128xbf16> to vector<16x16x128xbf16>
    %39 = vector.shape_cast %38 : vector<16x16x128xbf16> to vector<256x128xbf16>
    %c0_51 = arith.constant 0 : index
    %c1_52 = arith.constant 1 : index
    %c2_53 = arith.constant 2 : index
    %c0_54 = arith.constant 0 : index
    %40 = vector.load %arg9[%c0_51, %c1_52, %c2_53, %c0_54] : memref<1x18x18x128xbf16, #tpu.memory_space<vmem>>, vector<1x16x16x128xbf16>
    %41 = vector.shape_cast %40 : vector<1x16x16x128xbf16> to vector<16x16x128xbf16>
    %42 = vector.shape_cast %41 : vector<16x16x128xbf16> to vector<256x128xbf16>
    %43 = tpu.concatenate %39, %42 in 1 : vector<256x128xbf16>, vector<256x128xbf16> -> vector<256x256xbf16>
    %c2_55 = arith.constant 2 : index
    %c0_56 = arith.constant 0 : index
    %c0_57 = arith.constant 0 : index
    %44 = vector.load %arg3[%c2_55, %c0_56, %c0_57] : memref<4x256x128xbf16, #tpu.memory_space<vmem>>, vector<1x256x128xbf16>
    %45 = vector.shape_cast %44 : vector<1x256x128xbf16> to vector<256x128xbf16>
    %cst_58 = arith.constant dense<0.000000e+00> : vector<256x128xf32>
    %46 = tpu.matmul %43, %45, %cst_58 {dimension_numbers = #tpu.dot_dimension_numbers<[1], [0], [0], [1], [0, 0, 1, 1], [], []>} : vector<256x256xbf16>, vector<256x128xbf16>, vector<256x128xf32> -> vector<256x128xf32>
    %47 = arith.addf %36, %46 : vector<256x128xf32>
    %c0_59 = arith.constant 0 : index
    %c2_60 = arith.constant 2 : index
    %c0_61 = arith.constant 0 : index
    %c0_62 = arith.constant 0 : index
    %48 = vector.load %arg9[%c0_59, %c2_60, %c0_61, %c0_62] : memref<1x18x18x128xbf16, #tpu.memory_space<vmem>>, vector<1x16x16x128xbf16>
    %49 = vector.shape_cast %48 : vector<1x16x16x128xbf16> to vector<16x16x128xbf16>
    %50 = vector.shape_cast %49 : vector<16x16x128xbf16> to vector<256x128xbf16>
    %c0_63 = arith.constant 0 : index
    %c2_64 = arith.constant 2 : index
    %c1_65 = arith.constant 1 : index
    %c0_66 = arith.constant 0 : index
    %51 = vector.load %arg9[%c0_63, %c2_64, %c1_65, %c0_66] : memref<1x18x18x128xbf16, #tpu.memory_space<vmem>>, vector<1x16x16x128xbf16>
    %52 = vector.shape_cast %51 : vector<1x16x16x128xbf16> to vector<16x16x128xbf16>
    %53 = vector.shape_cast %52 : vector<16x16x128xbf16> to vector<256x128xbf16>
    %54 = tpu.concatenate %50, %53 in 1 : vector<256x128xbf16>, vector<256x128xbf16> -> vector<256x256xbf16>
    %c3 = arith.constant 3 : index
    %c0_67 = arith.constant 0 : index
    %c0_68 = arith.constant 0 : index
    %55 = vector.load %arg3[%c3, %c0_67, %c0_68] : memref<4x256x128xbf16, #tpu.memory_space<vmem>>, vector<1x256x128xbf16>
    %56 = vector.shape_cast %55 : vector<1x256x128xbf16> to vector<256x128xbf16>
    %cst_69 = arith.constant dense<0.000000e+00> : vector<256x128xf32>
    %57 = tpu.matmul %54, %56, %cst_69 {dimension_numbers = #tpu.dot_dimension_numbers<[1], [0], [0], [1], [0, 0, 1, 1], [], []>} : vector<256x256xbf16>, vector<256x128xbf16>, vector<256x128xf32> -> vector<256x128xf32>
    %58 = arith.addf %47, %57 : vector<256x128xf32>
    %c0_70 = arith.constant 0 : index
    %c2_71 = arith.constant 2 : index
    %c2_72 = arith.constant 2 : index
    %c0_73 = arith.constant 0 : index
    %59 = vector.load %arg9[%c0_70, %c2_71, %c2_72, %c0_73] : memref<1x18x18x128xbf16, #tpu.memory_space<vmem>>, vector<1x16x16x128xbf16>
    %60 = vector.shape_cast %59 : vector<1x16x16x128xbf16> to vector<16x16x128xbf16>
    %61 = vector.shape_cast %60 : vector<16x16x128xbf16> to vector<256x128xbf16>
    %c0_74 = arith.constant 0 : index
    %c0_75 = arith.constant 0 : index
    %62 = vector.load %arg4[%c0_74, %c0_75] : memref<128x128xbf16, #tpu.memory_space<vmem>>, vector<128x128xbf16>
    %cst_76 = arith.constant dense<0.000000e+00> : vector<256x128xf32>
    %63 = tpu.matmul %61, %62, %cst_76 {dimension_numbers = #tpu.dot_dimension_numbers<[1], [0], [0], [1], [0, 0, 1, 1], [], []>} : vector<256x128xbf16>, vector<128x128xbf16>, vector<256x128xf32> -> vector<256x128xf32>
    %64 = arith.addf %58, %63 : vector<256x128xf32>
    %c0_77 = arith.constant 0 : index
    %c0_78 = arith.constant 0 : index
    %65 = vector.load %arg5[%c0_77, %c0_78] : memref<1x128xf32, #tpu.memory_space<vmem>>, vector<1x128xf32>
    %66 = vector.broadcast %65 : vector<1x128xf32> to vector<256x128xf32>
    %67 = arith.addf %64, %66 : vector<256x128xf32>
    %cst_79 = arith.constant 0.000000e+00 : f32
    %68 = vector.broadcast %cst_79 : f32 to vector<256x128xf32>
    %69 = arith.maximumf %67, %68 : vector<256x128xf32>
    %cst_80 = arith.constant dense<0.000000e+00> : vector<128xf32>
    %70 = vector.multi_reduction <add>, %69, %cst_80 [0] : vector<256x128xf32> to vector<128xf32>
    %71 = vector.shape_cast %70 : vector<128xf32> to vector<1x128xf32>
    %cst_81 = arith.constant 3.906250e-03 : f32
    %72 = vector.broadcast %cst_81 : f32 to vector<1x128xf32>
    %73 = arith.mulf %71, %72 : vector<1x128xf32>
    %74 = arith.truncf %73 : vector<1x128xf32> to vector<1x128xbf16>
    %c0_82 = arith.constant 0 : index
    %c0_83 = arith.constant 0 : index
    %75 = vector.load %arg6[%c0_82, %c0_83] : memref<128x128xbf16, #tpu.memory_space<vmem>>, vector<128x128xbf16>
    %cst_84 = arith.constant dense<0.000000e+00> : vector<1x128xf32>
    %76 = tpu.matmul %74, %75, %cst_84 {dimension_numbers = #tpu.dot_dimension_numbers<[1], [0], [0], [1], [0, 0, 1, 1], [], []>} : vector<1x128xbf16>, vector<128x128xbf16>, vector<1x128xf32> -> vector<1x128xf32>
    %c0_85 = arith.constant 0 : index
    %c0_86 = arith.constant 0 : index
    %77 = vector.load %arg7[%c0_85, %c0_86] : memref<1x128xf32, #tpu.memory_space<vmem>>, vector<1x128xf32>
    %78 = arith.addf %76, %77 : vector<1x128xf32>
    %79 = vector.shape_cast %78 : vector<1x128xf32> to vector<1x1x128xf32>
    %c0_87 = arith.constant 0 : index
    %c0_88 = arith.constant 0 : index
    %c0_89 = arith.constant 0 : index
    %80 = vector.load %arg8[%c0_87, %c0_88, %c0_89] : memref<1x1x128xf32, #tpu.memory_space<vmem>>, vector<1x1x128xf32>
    tpu.vector_store %arg8[%c0_87, %c0_88, %c0_89], %79 {strides = array<i32>} : memref<1x1x128xf32, #tpu.memory_space<vmem>>, vector<1x1x128xf32>,
    return
  }
  func.func @transform_0(%arg0: i32) -> (i32, i32) {
    %c0_i32 = arith.constant 0 : i32
    %c0_i32_0 = arith.constant 0 : i32
    return %arg0, %c0_i32 : i32, i32
  }
  func.func @transform_1(%arg0: i32) -> (i32, i32) {
    %c0_i32 = arith.constant 0 : i32
    %c0_i32_0 = arith.constant 0 : i32
    %c0_i32_1 = arith.constant 0 : i32
    return %c0_i32, %c0_i32_0 : i32, i32
  }
  func.func @transform_2(%arg0: i32) -> (i32, i32, i32) {
    %c0_i32 = arith.constant 0 : i32
    %c0_i32_0 = arith.constant 0 : i32
    %c0_i32_1 = arith.constant 0 : i32
    %c0_i32_2 = arith.constant 0 : i32
    return %c0_i32, %c0_i32_0, %c0_i32_1 : i32, i32, i32
  }
  func.func @transform_3(%arg0: i32) -> (i32, i32) {
    %c0_i32 = arith.constant 0 : i32
    %c0_i32_0 = arith.constant 0 : i32
    %c0_i32_1 = arith.constant 0 : i32
    return %c0_i32, %c0_i32_0 : i32, i32
  }
  func.func @transform_4(%arg0: i32) -> (i32, i32) {
    %c0_i32 = arith.constant 0 : i32
    %c0_i32_0 = arith.constant 0 : i32
    %c0_i32_1 = arith.constant 0 : i32
    return %c0_i32, %c0_i32_0 : i32, i32
  }
  func.func @transform_5(%arg0: i32) -> (i32, i32) {
    %c0_i32 = arith.constant 0 : i32
    %c0_i32_0 = arith.constant 0 : i32
    %c0_i32_1 = arith.constant 0 : i32
    return %c0_i32, %c0_i32_0 : i32, i32
  }
  func.func @transform_6(%arg0: i32) -> (i32, i32) {
    %c0_i32 = arith.constant 0 : i32
    %c0_i32_0 = arith.constant 0 : i32
    %c0_i32_1 = arith.constant 0 : i32
    return %c0_i32, %c0_i32_0 : i32, i32
  }
  func.func @transform_7(%arg0: i32) -> (i32, i32, i32) {
    %c0_i32 = arith.constant 0 : i32
    %c0_i32_0 = arith.constant 0 : i32
    %c0_i32_1 = arith.constant 0 : i32
    return %arg0, %c0_i32, %c0_i32_0 : i32, i32, i32
  }
}

</mosaic_0001>

<bundles_post_ra>
// kernel: tpu_custom_call.1
= control target key start
LH: loop header
LB: loop body
LE: loop exit
PB: predicated region body
PF: predicated region fallthrough
CT: control target
= control target key end

     0   :  { %s8584_s0 = inlined_call_operand.hbm [shape: bf16[512,128], index: 0, kind: input, shape index: {}]   ;;  %s8585_s1 = inlined_call_operand.hbm [shape: bf16[128,128], index: 1, kind: input, shape index: {}]   ;;  %s8586_s2 = inlined_call_operand.hbm [shape: bf16[4,256,128], index: 2, kind: input, shape index: {}]   ;;  %s8587_s3 = inlined_call_operand.hbm [shape: bf16[128,128], index: 3, kind: input, shape index: {}]   ;;  %s8588_s4 = inlined_call_operand.vmem [shape: f32[1,128], index: 4, kind: input, shape index: {}]   ;;  %s8589_s5 = inlined_call_operand.hbm [shape: bf16[128,128], index: 5, kind: input, shape index: {}]   ;;  %s8590_s6 = inlined_call_operand.vmem [shape: f32[1,128], index: 6, kind: input, shape index: {}]   ;;  %s8591_s7 = inlined_call_operand.hbm [shape: f32[2,1,128], index: 7, kind: output, shape index: {}]  }
   0x1   :  { %8596 = sst [smem:[#allocation162_spill]] %s8585_s1 }
   0x2   :  { %12 = vsyncpa [#allocation4], 0 }
   0x3   :  { %14 = vsyncpa [#allocation4 + $0x1], 0 }
   0x4   :  { %15 = vsyncpa [#allocation7], 0 }
   0x5   :  { %16 = vsyncpa [#allocation10], 0 }
   0x6   :  { %17 = vsyncpa [#allocation5], 0 }
   0x7   :  { %19 = vsyncpa [#allocation5 + $0x1], 0  ;;  %s6788_s24 = smov 0   ;;  %s6790_s25 = smov 0  }
   0x8   :  { %s6792_s26 = smov 0   ;;  %s6794_s27 = smov 0  }
   0x9 LB: > { %s6809_s28 = sadd.s32 4294967295, %s6739_s27   ;;  %s5550_s29 = sadd.s32 4294967294, %s6739_s27   ;;  %s6739_s27 = sphi %s6794_s27, %s8914_s27   ;;  %s6735_s26 = sphi %s6792_s26, %s8913_s26   ;;  %s6731_s25 = sphi %s6790_s25, %s8912_s25   ;;  %s6727_s24 = sphi %s6788_s24, %s8911_s24  }
   0xa   : > { %p45_p0 = scmp.ne.s32.totalorder %s6731_s25, %s6727_s24  ;;  %p46_p1 = scmp.eq.s32.totalorder %s6809_s28, 0 }
   0xb   : > { %p195_p2 = scmp.eq.s32.totalorder %s6809_s28, 1  ;;  %p201_p3 = scmp.eq.s32.totalorder %s5550_s29, 1 }
   0xc   : > { %p6818_p4 = por %p46_p1, %p45_p0  ;;  %p5551_p5 = scmp.ge.s32.totalorder %s6739_s27, 1 }
   0xd   : > { %p6823_p6 = por %p201_p3, %p45_p0  ;;  %p208_p7 = scmp.lt.s32.totalorder %s6739_s27, 3 }
   0xe   : > { %s8599_s1 = sld [smem:[#allocation162_spill]]  ;;  %s6741_s13 = smov [#allocation6]  }
   0xf   : > { %p6831_p8 = pnand %p5551_p5, %p208_p7  ;;  %s221_s14 = sshll.u32 %s6741_s13, 4  ;;  %s222_s14 = int_to_ptr.vmem [resolvable:$true] %s221_s14 }
  0x10   : > { %s247_s18 = sshll.u32 %s8587_s3, 4  ;;  %s8592_s19 = smov 64   ;;  %s248_s18 = int_to_ptr.hbm [resolvable:$true] %s247_s18 }
  0x11   : > { %p6413_p9 = pneg %p6831_p8  ;;  %s8593_s20 = smov 4  }
  0x12   : > { %s6744_s21 = smov [#allocation9]   ;;  %s233_s9 = sshll.u32 %s8586_s2, 4  ;;  %s234_s9 = int_to_ptr.hbm [resolvable:$true] %s233_s9 }
  0x13   : > { %p6839_p10 = pnand %p6413_p9, %p46_p1  ;;  %s249_s22 = sshll.u32 %s6744_s21, 4  ;;  %s250_s22 = int_to_ptr.vmem [resolvable:$true] %s249_s22 }
  0x14   : > { %s219_s11 = sshll.u32 %s8599_s1, 4  ;;  %s264_s13 = sshll.u32 %s8589_s5, 4  ;;  %s220_s11 = int_to_ptr.hbm [resolvable:$true] %s219_s11  ;;  %s265_s13 = int_to_ptr.hbm [resolvable:$true] %s264_s13 }
  0x15   : > { %6416 = dma.hbm_to_vmem [thread:$0]  (!%p6839_p10), %s220_s11, 1024, %s222_s14, [#allocation7], %s8592_s19, %s8592_s19, %s8593_s20  }
  0x16   : > { %6422 = dma.hbm_to_vmem [thread:$0]  (!%p6839_p10), %s248_s18, 1024, %s250_s22, [#allocation10], %s8592_s19, %s8592_s19, %s8593_s20  }
  0x17   : > { %s6745_s14 = smov [#allocation8]   ;;  %s6746_s17 = smov [#allocation11]  }
  0x18   : > { %s235_s16 = sshll.u32 %s6745_s14, 4  ;;  %s266_s18 = sshll.u32 %s6746_s17, 4  ;;  %s236_s16 = int_to_ptr.vmem [resolvable:$true] %s235_s16  ;;  %s267_s18 = int_to_ptr.vmem [resolvable:$true] %s266_s18 }
  0x19   : > { %6419 = dma.hbm_to_vmem [thread:$0]  (!%p6839_p10), %s234_s9, 8192, %s236_s16, [#allocation7], %s8592_s19, %s8592_s19, %s8593_s20  }
  0x1a   : > { %6425 = dma.hbm_to_vmem [thread:$0]  (!%p6839_p10), %s265_s13, 1024, %s267_s18, [#allocation10], %s8592_s19, %s8592_s19, %s8593_s20  }
  0x1b   : > { %s6874_s21 = sadd.s32 1, %s6739_s27   ;;  %s32_s22 = sadd.s32 1, %s6735_s26 }
  0x1c   : > { %s29_s23 = ssub.s32 %s6739_s27, %s6874_s21  ;;  %p39_p12 = scmp.ne.s32.totalorder %s6735_s26, %s6731_s25 }
  0x1d   : > { %p30_p13 = scmp.eq.s32.totalorder %s29_s23, 0  ;;  %p40_p0 = scmp.eq.s32.totalorder %s6739_s27, 0 }
  0x1e   : > { %p6884_p3 = por %p195_p2, %p39_p12  ;;  %p6438_p5 = scmp.lt.s32.totalorder %s6739_s27, 2 }
  0x1f   : > { %s6890_s9 = scalar_select %p30_p13, %s6735_s26, %s32_s22  }
  0x20   : > { %p41_p7 = por %p40_p0, %p39_p12  ;;  %s283_s15 = sand.u32 1, %s6735_s26  }
  0x21   : > { %s5557_s10 = sshll.u32 %s283_s15, 7  ;;  %s6224_s11 = sshll.u32 %s6739_s27, 7 }
  0x22   : > { %s292_s16 = scalar_lea.hbm %s8584_s0, %s6224_s11  ;;  %s287_s17 = scalar_lea.vmem [#allocation3], %s5557_s10 }
  0x23   : > { %s295_s18 = sshll.u32 %s287_s17, 4  ;;  %s293_s23 = sshll.u32 %s292_s16, 4  ;;  %s296_s18 = int_to_ptr.vmem [resolvable:$true] %s295_s18  ;;  %s294_s23 = int_to_ptr.hbm [resolvable:$true] %s293_s23 }
  0x24   : > { %p6897_p2 = pnand %p6438_p5, %p41_p7  ;;  %s284_s22 = scalar_lea.sflag [#allocation4], %s283_s15 }
  0x25   : > { %s6635_s20 = sshra.s32 %s294_s23, 4  ;;  %s6642_s13 = scalar_lea.hbm %s8584_s0, 256  ;;  %s6636_s20 = int_to_ptr.hbm [resolvable:$true] %s6635_s20 }
  0x26   : > { %s6637_s1 = scalar_lea.hbm %s6636_s20, 128  ;;  %p6639_p10 = pneg %p6897_p2 }
  0x27   : > { %p6638_p9 = scmp.ne.s32.totalorder %s6636_s20, %s6637_s1  ;;  %p6643_p0 = scmp.lt.s32.totalorder %s6636_s20, %s8584_s0 }
  0x28   : > { %p6644_p5 = scmp.lt.s32.totalorder %s6642_s13, %s6637_s1 }
  0x29   : > { %p6640_p12 = pnand %p6639_p10, %p6638_p9 }
  0x2a   : > { %p6645_p7 = por %p6644_p5, %p6643_p0 }
  0x2b   : > { %p6641_p13 = pneg %p6640_p12 }
  0x2d   : > { %p6646_p11 = pnand %p6645_p7, %p6641_p13 }
  0x2f   : > { %6649 = shalt.err (!%p6646_p11)
}
  0x30   : > { %s8604_s15 = smov 4   ;;  %s8605_s17 = smov 64  }
  0x31   : > { %6429 = dma.hbm_to_vmem [thread:$0]  (!%p6897_p2), %s294_s23, 2048, %s296_s18, %s284_s22, %s8605_s17, %s8605_s17, %s8604_s15  }
  0x32   : > { %307 = sbr.rel (%p6831_p8) target bundleno = 1304 (0x518), region = 48 }
  0x37   : > { %s6917_s11 = sand.u32 1, %s6731_s25  }
  0x38   : > { %s5561_s20 = sshll.u32 %s6917_s11, 7  ;;  %s310_s1 = scalar_lea.sflag [#allocation4], %s6917_s11 }
  0x39   : > { %s6921_s10 = scalar_lea.vmem [#allocation3], %s5561_s20 }
  0x3a   : > { %6710 = dma.done.wait (%p6818_p4), %s310_s1, 2048  }
  0x3b   : > { %6712 = vsyncadd (%p6818_p4), %s310_s1, 4294965248 }
  0x3c   : > { %6714 = dma.done.wait (%p46_p1), [#allocation7], 9216  }
  0x3d   : > { %6716 = vsyncadd (%p46_p1), [#allocation7], 4294958080 }
  0x3e   : > { %6718 = dma.done.wait (%p46_p1), [#allocation10], 2048  }
  0x3f   : > { %6720 = vsyncadd (%p46_p1), [#allocation10], 4294965248  ;;  %v6248_v0 = vld [vmem:[#allocation6 + $0x38] sm:$0xff]  ;;  %v6247_v1 = vld [vmem:[#allocation6 + $0x30] sm:$0xff]  ;;  %vm373_vm0 = vcmask 1040384   ;;  %v8606_v28 = vmov 0  ;;  %s5442_s13 = scalar_lea.hbm %s8591_s7, %s6809_s28 }
  0x40   : > { %678 = vmatpush.bf16.msra.mxu0 %v6248_v0  ;;  %6377 = vmatpush.bf16.msra.mxu3 %v6248_v0  ;;  %v6246_v2 = vld [vmem:[#allocation6 + $0x28] sm:$0xff]  ;;  %v6245_v3 = vld [vmem:[#allocation6 + $0x20] sm:$0xff]  ;;  %v6244_v4 = vld [vmem:[#allocation6 + $0x18] sm:$0xff]  ;;  %vm374_vm1 = vsmask.f32 256  ;;  %v6747_v33 = vmov 0  }
  0x41   : > { %v6243_v5 = vld [vmem:[#allocation6 + $0x10] sm:$0xff]  ;;  %v6242_v6 = vld [vmem:[#allocation6 + $0x8] sm:$0xff]  ;;  %v6241_v7 = vld [vmem:[#allocation6] sm:$0xff]  ;;  %366 = vst [vmem:[#allocation2] sm:$0xf] %v6747_v33  ;;  %v8609_v39 = vmov 0 }
  0x42   : > { %v6225_v8 = vld [vmem:[%s6921_s10] sm:$0xff]  ;;  %v6234_v9 = vld [vmem:[%s6921_s10 + $0x48] sm:$0xff]  ;;  %v6235_v11 = vld [vmem:[%s6921_s10 + $0x50] sm:$0xff]  ;;  %367 = vst [vmem:[#allocation2 + $0x4] sm:$0xf] %v6747_v33  ;;  %vm1943_vm5 = vcmask 1042432  }
  0x43   : > { %v6226_v10 = vld [vmem:[%s6921_s10 + $0x8] sm:$0xff]  ;;  %v6227_v12 = vld [vmem:[%s6921_s10 + $0x10] sm:$0xff]  ;;  %v6236_v13 = vld [vmem:[%s6921_s10 + $0x58] sm:$0xff]  ;;  %368 = vst [vmem:[#allocation2 + $0x8] sm:$0x1] %v6747_v33  ;;  %vm1944_vm6 = vcmask 1046532  }
  0x44   : > { %679 = vmatpush.bf16.msra.mxu0 %v6247_v1  ;;  %6378 = vmatpush.bf16.msra.mxu3 %v6247_v1  ;;  %v6228_v14 = vld [vmem:[%s6921_s10 + $0x18] sm:$0xff]  ;;  %v6237_v15 = vld [vmem:[%s6921_s10 + $0x60] sm:$0xff]  ;;  %v6238_v17 = vld [vmem:[%s6921_s10 + $0x68] sm:$0xff]  ;;  %vm430_vm3 = vsmask.f32 7938  ;;  %vm1154_vm11 = vcmask 1043456  }
  0x45   : > { %v6229_v16 = vld [vmem:[%s6921_s10 + $0x20] sm:$0xff]  ;;  %v6272_v18 = vld [vmem:[#allocation8 + $0x38] sm:$0xff]  ;;  %v6230_v19 = vld [vmem:[%s6921_s10 + $0x28] sm:$0xff]  ;;  %370 = vst [vmem:[#allocation2 + $0xcc] sm:$0xf] %v6747_v33  ;;  %s363_s15 = scalar_lea.vmem [#allocation12], %s6917_s11 }
  0x46   : > { %v6239_v20 = vld [vmem:[%s6921_s10 + $0x70] sm:$0xff]  ;;  %v6304_v22 = vld [vmem:[#allocation8 + $0xb8] sm:$0xff]  ;;  %v6270_v23 = vld [vmem:[#allocation8 + $0x28] sm:$0xff]  ;;  %371 = vst [vmem:[#allocation2 + $0xd0] sm:$0xf] %v6747_v33  ;;  %s5444_s17 = sshll.u32 %s363_s15, 4  ;;  %s5445_s17 = int_to_ptr.vmem [resolvable:$true] %s5444_s17 }
  0x47   : > { %v6271_v21 = vld [vmem:[#allocation8 + $0x30] sm:$0xff]  ;;  %v6280_v24 = vld [vmem:[#allocation8 + $0x78] sm:$0xff]  ;;  %2379 = vmatpush.bf16.msra.mxu1 %v6304_v22  ;;  %v6269_v26 = vld [vmem:[#allocation8 + $0x20] sm:$0xff]  ;;  %6385 = vmatpush.bf16.msra.mxu2 %v6304_v22  ;;  %372 = vst [vmem:[#allocation2 + $0xd4] sm:$0x1] %v6747_v33  ;;  %s5446_s20 = sshll.u32 %s5442_s13, 4  ;;  %s5447_s20 = int_to_ptr.hbm [resolvable:$true] %s5446_s20 }
  0x48   : > { %680 = vmatpush.bf16.msra.mxu0 %v6246_v2  ;;  %6379 = vmatpush.bf16.msra.mxu3 %v6246_v2  ;;  %v6303_v25 = vld [vmem:[#allocation8 + $0xb0] sm:$0xff]  ;;  %vm6949_vm2 = vmand %vm373_vm0, %vm374_vm1  ;;  %v6302_v31 = vld [vmem:[#allocation8 + $0xa8] sm:$0xff]  ;;  %vm1316_vm8 = vsmask.f32 3328  ;;  %vm1317_vm9 = vsmask.f32 7440 }
  0x49   : > { %v6279_v27 = vld [vmem:[#allocation8 + $0x70] sm:$0xff]  ;;  %v8607_v28 = vsel %vm6949_vm2, 4294967295, %v8606_v28  ;;  %v6268_v32 = vld [vmem:[#allocation8 + $0x18] sm:$0xff]  ;;  %v6301_v36 = vld [vmem:[#allocation8 + $0xa0] sm:$0xff]  ;;  %vm831_vm13 = vsmask.f32 4368 }
  0x4a   : > { %8608 = vst [vmem:[#allocation17_spill] sm:$0xff] %v8607_v28  ;;  %v379_v29 = vld [vmem:[#allocation2 + $0xc] sm:$0x1]  ;;  %v6240_v35 = vld [vmem:[%s6921_s10 + $0x78] sm:$0xff]  ;;  %v6278_v37 = vld [vmem:[#allocation8 + $0x68] sm:$0xff]  ;;  %s5434_s1 = scalar_lea.sflag [#allocation5], %s6917_s11 }
  0x4b   : > { %v380_v30 = vsel %vm6949_vm2, 0, %v379_v29  ;;  %2380 = vmatpush.bf16.msra.mxu1 %v6303_v25  ;;  %6386 = vmatpush.bf16.msra.mxu2 %v6303_v25  ;;  %v6231_v34 = vld [vmem:[%s6921_s10 + $0x30] sm:$0xff]  ;;  %vm6959_vm4 = vmand %vm373_vm0, %vm430_vm3  ;;  %v376_v40 = vld [vmem:[#allocation2] sm:$0x1]  ;;  %s6685_s19 = scalar_lea.hbm %s8591_s7, 2 }
  0x4c   : > { %681 = vmatpush.bf16.msra.mxu0 %v6245_v3  ;;  %6380 = vmatpush.bf16.msra.mxu3 %v6245_v3  ;;  %381 = vst [vmem:[#allocation2 + $0xc] sm:$0x1] %v380_v30  ;;  %v6267_v38 = vld [vmem:[#allocation8 + $0x10] sm:$0xff]  ;;  %v8610_v39 = vsel %vm6959_vm4, 4294967295, %v8609_v39  ;;  %v6300_v41 = vld [vmem:[#allocation8 + $0x98] sm:$0xff]  ;;  %v6277_v42 = vld [vmem:[#allocation8 + $0x60] sm:$0xff] }
  0x4d   : > { %8611 = vst [vmem:[#allocation18_spill] sm:$0xff] %v8610_v39  ;;  %v6266_v43 = vld [vmem:[#allocation8 + $0x8] sm:$0xff]  ;;  %v377_v44 = vsel %vm6949_vm2, 0, %v376_v40  ;;  %v432_v45 = vld [vmem:[#allocation2 + $0x8] sm:$0x1]  ;;  %v6276_v50 = vld [vmem:[#allocation8 + $0x58] sm:$0xff] }
  0x4e   : > { %378 = vst [vmem:[#allocation2] sm:$0x1] %v377_v44  ;;  %v433_v46 = vsel %vm6959_vm4, 0, %v432_v45  ;;  %v435_v47 = vld [vmem:[#allocation2 + $0x14] sm:$0x1]  ;;  %v6299_v48 = vld [vmem:[#allocation8 + $0x90] sm:$0xff]  ;;  %vm6970_vm7 = vmor %vm1943_vm5, %vm1944_vm6 }
  0x4f   : > { %2381 = vmatpush.bf16.msra.mxu1 %v6302_v31  ;;  %6387 = vmatpush.bf16.msra.mxu2 %v6302_v31  ;;  %434 = vst [vmem:[#allocation2 + $0x8] sm:$0x1] %v433_v46  ;;  %v436_v49 = vsel %vm6959_vm4, 0, %v435_v47  ;;  %v6265_v51 = vld [vmem:[#allocation8] sm:$0xff]  ;;  %v1269_v52 = vld [vmem:[#allocation2 + $0x4] sm:$0xf]  ;;  %vm6985_vm10 = vmor %vm1316_vm8, %vm1317_vm9 }
  0x50   : > { %682 = vmatpush.bf16.msra.mxu0 %v6244_v4  ;;  %6381 = vmatpush.bf16.msra.mxu3 %v6244_v4  ;;  %437 = vst [vmem:[#allocation2 + $0x14] sm:$0x1] %v436_v49  ;;  %v6298_v53 = vld [vmem:[#allocation8 + $0x88] sm:$0xff]  ;;  %v6275_v54 = vld [vmem:[#allocation8 + $0x50] sm:$0xff]  ;;  %v1948_v55 = vrot.slane %v1269_v52, 5  ;;  %v6232_v58 = vld [vmem:[%s6921_s10 + $0x38] sm:$0xff] }
  0x51   : > { %v1895_v57 = vld [vmem:[#allocation2] sm:$0xe]  ;;  %v6297_v0 = vld [vmem:[#allocation8 + $0x80] sm:$0xff]  ;;  %vm6992_vm12 = vmand %vm1154_vm11, %vm430_vm3 }
  0x52   : > { %v5726_v60 = vrot.slane %v1895_v57, 9  ;;  %v1950_v61 = vrot.slane %v1948_v55, 4  ;;  %v6274_v1 = vld [vmem:[#allocation8 + $0x48] sm:$0xff]  ;;  %v382_v3 = vld [vmem:[#allocation2 + $0x18] sm:$0x1]  ;;  %vm7005_vm14 = vmor %vm374_vm1, %vm831_vm13 }
  0x53   : > { %2382 = vmatpush.bf16.msra.mxu1 %v6301_v36  ;;  %6388 = vmatpush.bf16.msra.mxu2 %v6301_v36 }
  0x54   : > { %683 = vmatpush.bf16.msra.mxu0 %v6243_v5  ;;  %6382 = vmatpush.bf16.msra.mxu3 %v6243_v5  ;;  %v1949_v2 = vsel %vm6970_vm7, %v5726_v60, %v1948_v55 }
  0x55   : > { %v6249_v59 = vld [vmem:[#allocation2] sm:$0xff]  ;;  %v2090_v5 = vunpack.c.l.b16 %v1949_v2 }
  0x56   : > { %v1300_v56 = vld [vmem:[#allocation2 + $0x8] sm:$0x1] }
  0x57   : > { %2383 = vmatpush.bf16.msra.mxu1 %v6300_v41  ;;  %6389 = vmatpush.bf16.msra.mxu2 %v6300_v41  ;;  %v1951_v63 = vrot.slane %v1300_v56, 5 }
  0x58   : > { %684 = vmatpush.bf16.msra.mxu0 %v6242_v6  ;;  %6383 = vmatpush.bf16.msra.mxu3 %v6242_v6  ;;  %v383_v6 = vsel %vm6949_vm2, 0, %v382_v3 }
  0x59   : > { %v1952_v4 = vsel %vm6970_vm7, %v1950_v61, %v1951_v63  ;;  %384 = vst [vmem:[#allocation2 + $0x18] sm:$0x1] %v383_v6 }
  0x5b   : > { %2384 = vmatpush.bf16.msra.mxu1 %v6299_v48  ;;  %6390 = vmatpush.bf16.msra.mxu2 %v6299_v48  ;;  %v441_v48 = vld [vmem:[#allocation2 + $0x2c] sm:$0x1] }
  0x5c   : > { %685 = vmatpush.bf16.msra.mxu0 %v6241_v7  ;;  %6384 = vmatpush.bf16.msra.mxu3 %v6241_v7  ;;  %v2091_v7 = vunpack.c.l.b16 %v1952_v4 }
  0x5f   : > { %686 = vmatmul.bf16.vlgmr.msra.gmra.mxu0 %v6225_v8  ;;  %731 = vmatmul.bf16.vlgmr.msra.gmra.mxu3 %v6234_v9  ;;  %v1268_v8 = vld [vmem:[#allocation2] sm:$0xf]  ;;  %v2122_v9 = vpack.c.b16 %v2091_v7, %v2090_v5 }
  0x60   : > { %2653 = vmatpush.bf16.msrb.mxu3 %v6272_v18  ;;  %2742 = vmatpush.bf16.msrb.mxu0 %v6280_v24  ;;  %v1339_v24 = vshll.u32 %v1300_v56, 16 }
  0x61   : > { %2385 = vmatpush.bf16.msra.mxu1 %v6298_v53  ;;  %6391 = vmatpush.bf16.msra.mxu2 %v6298_v53  ;;  %v406_v53 = vld [vmem:[#allocation2 + $0x78] sm:$0x1] }
  0x62   : > { %v407_v56 = vsel %vm6949_vm2, 0, %v406_v53 }
  0x63   : > { %408 = vst [vmem:[#allocation2 + $0x78] sm:$0x1] %v407_v56 }
  0x64   : > { %2654 = vmatpush.bf16.msrb.mxu3 %v6271_v21  ;;  %2743 = vmatpush.bf16.msrb.mxu0 %v6279_v27  ;;  %v6233_v21 = vld [vmem:[%s6921_s10 + $0x40] sm:$0xff]  ;;  %v385_v27 = vld [vmem:[#allocation2 + $0x24] sm:$0x1]  ;;  %s6679_s10 = sshra.s32 %s5447_s20, 4  ;;  %s6680_s10 = int_to_ptr.hbm [resolvable:$true] %s6679_s10 }
  0x65   : > { %2386 = vmatpush.bf16.msra.mxu1 %v6297_v0  ;;  %6392 = vmatpush.bf16.msra.mxu2 %v6297_v0  ;;  %v386_v31 = vsel %vm6949_vm2, 0, %v385_v27  ;;  %v1160_v0 = vld [vmem:[#allocation2 + $0x14] sm:$0x1]  ;;  %s6681_s30 = scalar_lea.hbm %s6680_s10, 1  ;;  %p6686_p11 = scmp.lt.s32.totalorder %s6680_s10, %s8591_s7 }
  0x66   : > { %387 = vst [vmem:[#allocation2 + $0x24] sm:$0x1] %v386_v31  ;;  %p6682_p1 = scmp.ne.s32.totalorder %s6680_s10, %s6681_s30  ;;  %p6687_p2 = scmp.lt.s32.totalorder %s6685_s19, %s6681_s30 }
  0x68   : > { %2655 = vmatpush.bf16.msrb.mxu3 %v6270_v23  ;;  %2744 = vmatpush.bf16.msrb.mxu0 %v6278_v37  ;;  %p6683_p4 = pnand %p6682_p1, %p6884_p3  ;;  %p6688_p9 = por %p6687_p2, %p6686_p11 }
  0x69   : > { %2387 = vmatmul.bf16.vlgmr.msra.gmra.mxu1 %v2122_v9 }
  0x6a   : > { %p6684_p8 = pneg %p6683_p4 }
  0x6c   : > { %2656 = vmatpush.bf16.msrb.mxu3 %v6269_v26  ;;  %2745 = vmatpush.bf16.msrb.mxu0 %v6277_v42  ;;  %v1156_v42 = vld [vmem:[#allocation2 + $0xc] sm:$0xf]  ;;  %p6689_p10 = pnand %p6688_p9, %p6684_p8 }
  0x6f   : > { %691 = vmatmul.bf16.gmra.mxu0 %v6226_v10  ;;  %736 = vmatmul.bf16.gmra.mxu3 %v6235_v11  ;;  %v6273_v10 = vld [vmem:[#allocation8 + $0x40] sm:$0xff]  ;;  %v1320_v11 = vshrl.u32 %v1268_v8, 16 }
  0x70   : > { %2657 = vmatpush.bf16.msrb.mxu3 %v6268_v32  ;;  %2746 = vmatpush.bf16.msrb.mxu0 %v6276_v50 }
  0x74   : > { %2658 = vmatpush.bf16.msrb.mxu3 %v6267_v38  ;;  %2747 = vmatpush.bf16.msrb.mxu0 %v6275_v54 }
  0x78   : > { %2659 = vmatpush.bf16.msrb.mxu3 %v6266_v43  ;;  %2748 = vmatpush.bf16.msrb.mxu0 %v6274_v1 }
  0x7c   : > { %2660 = vmatpush.bf16.msrb.mxu3 %v6265_v51  ;;  %2749 = vmatpush.bf16.msrb.mxu0 %v6273_v10 }
  0x7f   : > { %696 = vmatmul.bf16.gmra.mxu0 %v6227_v12  ;;  %741 = vmatmul.bf16.gmra.mxu3 %v6236_v13  ;;  %v1323_v12 = vshll.u32 %v1268_v8, 16  ;;  %v1333_v13 = vshrl.u32 %v1269_v52, 16 }
  0x81   : > { %v1325_v18 = vrot.slane %v1323_v12, 5 }
  0x8f   : > { %701 = vmatmul.bf16.gmra.mxu0 %v6228_v14  ;;  %746 = vmatmul.bf16.gmra.mxu3 %v6237_v15  ;;  %v1329_v14 = vshll.u32 %v1269_v52, 16  ;;  %v438_v15 = vld [vmem:[#allocation2 + $0x20] sm:$0x1]  ;;  %v442_v52 = vsel %vm6959_vm4, 0, %v441_v48 }
  0x90   : > { %443 = vst [vmem:[#allocation2 + $0x2c] sm:$0x1] %v442_v52 }
  0x9f   : > { %706 = vmatmul.bf16.gmra.mxu0 %v6229_v16  ;;  %751 = vmatmul.bf16.gmra.mxu3 %v6238_v17  ;;  %v439_v16 = vsel %vm6959_vm4, 0, %v438_v15  ;;  %v1322_v17 = vrot.slane %v1320_v11, 4 }
  0xa0   : > { %440 = vst [vmem:[#allocation2 + $0x20] sm:$0x1] %v439_v16  ;;  %v1219_v16 = vld [vmem:[#allocation2 + $0x78] sm:$0xf] }
  0xa1   : > { %v1326_v22 = vor.u32 %v1325_v18, %v1322_v17  ;;  %v1163_v17 = vld [vmem:[#allocation2 + $0x18] sm:$0xf] }
  0xa3   : > { %v1327_v30 = vrot.slane %v1326_v22, 4 }
  0xaf   : > { %711 = vmatmul.bf16.gmra.mxu0 %v6230_v19  ;;  %756 = vmatmul.bf16.gmra.mxu3 %v6239_v20  ;;  %v1331_v19 = vrot.slane %v1329_v14, 5  ;;  %v1335_v20 = vrot.slane %v1333_v13, 4 }
  0xb1   : > { %v1336_v25 = vor.u32 %v1335_v20, %v1331_v19  ;;  %v1332_v40 = vsel %vm6985_vm10, %v1327_v30, %v1331_v19  ;;  %v462_v19 = vld [vmem:[#allocation2 + $0x80] sm:$0x1] }
  0xb2   : > { %v1799_v47 = vunpack.c.l.b16 %v1332_v40 }
  0xb3   : > { %v1337_v33 = vrot.slane %v1336_v25, 4  ;;  %v463_v25 = vsel %vm6959_vm4, 0, %v462_v19 }
  0xb4   : > { %464 = vst [vmem:[#allocation2 + $0x80] sm:$0x1] %v463_v25 }
  0xbf   : > { %716 = vmatmul.bf16.gmra.mxu0 %v6231_v34  ;;  %761 = vmatmul.bf16.gmra.mxu3 %v6240_v35  ;;  %v1341_v34 = vrot.slane %v1339_v24, 5 }
  0xc1   : > { %v1342_v44 = vsel %vm6985_vm10, %v1337_v33, %v1341_v34 }
  0xc2   : > { %v1800_v51 = vunpack.c.l.b16 %v1342_v44 }
  0xc4   : > { %v1831_v61 = vpack.c.b16 %v1800_v51, %v1799_v47 }
  0xcf   : > { %721 = vmatmul.bf16.gmra.mxu0 %v6232_v58  ;;  %2661 = vmatmul.bf16.vlgmr.msrb.gmra.mxu3 %v6249_v59 }
  0xdc   : > { %v687_v23 = vpop.f32.mrf.mxu0 }
  0xdd   : > { %v767_v26 = vmax.f32 %v687_v23, 0.0 }
  0xdf   : > { %v799_v29 = vpack.c.bf16 %v767_v26, %v767_v26  ;;  %726 = vmatmul.bf16.gmra.mxu0 %v6233_v21  ;;  %v388_v26 = vld [vmem:[#allocation2 + $0x30] sm:$0x1] }
  0xe0   : > { %v389_v31 = vsel %vm6949_vm2, 0, %v388_v26 }
  0xe1   : > { %v834_v35 = vshrl.u32 %v799_v29, 16  ;;  %v837_v38 = vshll.u32 %v799_v29, 16  ;;  %390 = vst [vmem:[#allocation2 + $0x30] sm:$0x1] %v389_v31 }
  0xe2   : > { %v732_v36 = vpop.f32.mrf.mxu3 }
  0xe3   : > { %v836_v37 = vrot.slane %v834_v35, 7  ;;  %v785_v54 = vmax.f32 %v732_v36, 0.0 }
  0xe4   : > { %v689_v43 = vpop.f32.mrf.mxu0 }
  0xe5   : > { %v839_v45 = vor.u32 %v837_v38, %v836_v37  ;;  %v768_v46 = vmax.f32 %v689_v43, 0.0  ;;  %v817_v57 = vpack.c.bf16 %v785_v54, %v785_v54  ;;  %v840_v4 = vrot.slane %v836_v37, 4 }
  0xe7   : > { %v1157_v49 = vsel %vm6992_vm12, %v839_v45, %v1156_v42  ;;  %v800_v50 = vpack.c.bf16 %v768_v46, %v768_v46  ;;  %v987_v2 = vshrl.u32 %v817_v57, 16  ;;  %v990_v3 = vshll.u32 %v817_v57, 16 }
  0xe8   : > { %1158 = vst [vmem:[#allocation2 + $0xc] sm:$0xf] %v1157_v49 }
  0xe9   : > { %v842_v55 = vshrl.u32 %v800_v50, 16  ;;  %v845_v60 = vshll.u32 %v800_v50, 16  ;;  %v7009_v8 = vrot.slane %v987_v2, 7 }
  0xea   : > { %v734_v58 = vpop.f32.mrf.mxu3 }
  0xeb   : > { %v844_v59 = vrot.slane %v842_v55, 7  ;;  %v992_v13 = vor.u32 %v990_v3, %v7009_v8  ;;  %v786_v20 = vmax.f32 %v734_v58, 0.0  ;;  %v993_v37 = vrot.slane %v7009_v8, 4 }
  0xec   : > { %v692_v1 = vpop.f32.mrf.mxu0 }
  0xed   : > { %v847_v5 = vor.u32 %v845_v60, %v844_v59  ;;  %v849_v6 = vrot.slane %v844_v59, 4  ;;  %v769_v7 = vmax.f32 %v692_v1, 0.0  ;;  %v1220_v18 = vsel %vm6992_vm12, %v992_v13, %v1219_v16  ;;  %v409_v59 = vld [vmem:[#allocation2 + $0x84] sm:$0x1]  ;;  %v1223_v1 = vld [vmem:[#allocation2 + $0x80] sm:$0x1] }
  0xee   : > { %1221 = vst [vmem:[#allocation2 + $0x78] sm:$0xf] %v1220_v18  ;;  %v818_v30 = vpack.c.bf16 %v786_v20, %v786_v20  ;;  %v410_v18 = vsel %vm6949_vm2, 0, %v409_v59 }
  0xef   : > { %v848_v9 = vsel %vm7005_vm14, %v840_v4, %v847_v5  ;;  %v1161_v10 = vsel %vm6949_vm2, %v849_v6, %v1160_v0  ;;  %v801_v11 = vpack.c.bf16 %v769_v7, %v769_v7  ;;  %2750 = vmatmul.bf16.vlgmr.msrb.gmra.mxu0 %v1831_v61  ;;  %v1270_v12 = vld [vmem:[#allocation2 + $0xc] sm:$0xf]  ;;  %v1167_v4 = vld [vmem:[#allocation2 + $0x20] sm:$0x1]  ;;  %411 = vst [vmem:[#allocation2 + $0x84] sm:$0x1] %v410_v18 }
  0xf0   : > { %1159 = vst [vmem:[#allocation2 + $0x10] sm:$0xf] %v848_v9  ;;  %v1344_v21 = vshrl.u32 %v1270_v12, 16  ;;  %v1347_v22 = vshll.u32 %v1270_v12, 16  ;;  %v1896_v29 = vld [vmem:[#allocation2 + $0xc] sm:$0xe] }
  0xf1   : > { %1162 = vst [vmem:[#allocation2 + $0x14] sm:$0x1] %v1161_v10  ;;  %v851_v14 = vshrl.u32 %v801_v11, 16  ;;  %v854_v15 = vshll.u32 %v801_v11, 16  ;;  %v995_v38 = vshrl.u32 %v818_v30, 16  ;;  %v998_v40 = vshll.u32 %v818_v30, 16 }
  0xf2   : > { %v7018_v23 = vpop.f32.mrf.mxu3  ;;  %v1346_v35 = vrot.slane %v1344_v21, 4  ;;  %v1349_v36 = vrot.slane %v1347_v22, 5  ;;  %v5727_v47 = vrot.slane %v1896_v29, 9 }
  0xf3   : > { %v853_v24 = vrot.slane %v851_v14, 7  ;;  %v997_v50 = vrot.slane %v995_v38, 7  ;;  %v444_v14 = vld [vmem:[#allocation2 + $0x38] sm:$0x1]  ;;  %v787_v29 = vmax.f32 %v7018_v23, 0.0 }
  0xf4   : > { %v694_v27 = vpop.f32.mrf.mxu0  ;;  %v1350_v54 = vor.u32 %v1349_v36, %v1346_v35  ;;  %v445_v35 = vsel %vm6959_vm4, 0, %v444_v14 }
  0xf5   : > { %v856_v33 = vor.u32 %v854_v15, %v853_v24  ;;  %v770_v34 = vmax.f32 %v694_v27, 0.0  ;;  %v857_v42 = vrot.slane %v853_v24, 4  ;;  %v1000_v57 = vor.u32 %v998_v40, %v997_v50  ;;  %446 = vst [vmem:[#allocation2 + $0x38] sm:$0x1] %v445_v35  ;;  %v465_v40 = vld [vmem:[#allocation2 + $0x8c] sm:$0x1] }
  0xf6   : > { %v1002_v58 = vrot.slane %v997_v50, 4  ;;  %v1351_v15 = vrot.slane %v1350_v54, 4  ;;  %v819_v38 = vpack.c.bf16 %v787_v29, %v787_v29  ;;  %v466_v23 = vsel %vm6959_vm4, 0, %v465_v40 }
  0xf7   : > { %v1164_v43 = vsel %vm6992_vm12, %v856_v33, %v1163_v17  ;;  %v802_v44 = vpack.c.bf16 %v770_v34, %v770_v34  ;;  %v6250_v45 = vld [vmem:[#allocation2 + $0xc] sm:$0xff]  ;;  %v1001_v7 = vsel %vm7005_vm14, %v993_v37, %v1000_v57  ;;  %467 = vst [vmem:[#allocation2 + $0x8c] sm:$0x1] %v466_v23 }
  0xf8   : > { %v1271_v46 = vld [vmem:[#allocation2 + $0x10] sm:$0xf]  ;;  %1165 = vst [vmem:[#allocation2 + $0x18] sm:$0xf] %v1164_v43  ;;  %v1301_v48 = vld [vmem:[#allocation2 + $0x14] sm:$0x1]  ;;  %2666 = vmatmul.bf16.gmra.mxu3 %v6250_v45  ;;  %v1224_v8 = vsel %vm6949_vm2, %v1002_v58, %v1223_v1 }
  0xf9   : > { %v1955_v49 = vrot.slane %v1271_v46, 5  ;;  %v859_v51 = vshrl.u32 %v802_v44, 16  ;;  %v862_v52 = vshll.u32 %v802_v44, 16  ;;  %v1958_v53 = vrot.slane %v1301_v48, 5  ;;  %1222 = vst [vmem:[#allocation2 + $0x7c] sm:$0xf] %v1001_v7 }
  0xfa   : > { %v739_v60 = vpop.f32.mrf.mxu3  ;;  %v1353_v2 = vshll.u32 %v1271_v46, 16  ;;  %v1357_v3 = vshrl.u32 %v1271_v46, 16  ;;  %v1363_v9 = vshll.u32 %v1301_v48, 16  ;;  %1225 = vst [vmem:[#allocation2 + $0x80] sm:$0x1] %v1224_v8  ;;  %v1007_v50 = vshll.u32 %v819_v38, 16 }
  0xfb   : > { %v1956_v55 = vsel %vm6970_vm7, %v5727_v47, %v1955_v49  ;;  %v1957_v56 = vrot.slane %v1955_v49, 4  ;;  %v861_v61 = vrot.slane %v859_v51, 7  ;;  %v1170_v46 = vld [vmem:[#allocation2 + $0x24] sm:$0xf]  ;;  %v1004_v49 = vshrl.u32 %v819_v38, 16 }
  0xfc   : > { %v2092_v0 = vunpack.c.l.b16 %v1956_v55  ;;  %v697_v5 = vpop.f32.mrf.mxu0  ;;  %v1355_v16 = vrot.slane %v1353_v2, 5  ;;  %v1359_v17 = vrot.slane %v1357_v3, 4  ;;  %v1365_v27 = vrot.slane %v1363_v9, 5  ;;  %v1226_v3 = vld [vmem:[#allocation2 + $0x84] sm:$0xf] }
  0xfd   : > { %v1959_v6 = vsel %vm6970_vm7, %v1957_v56, %v1958_v53  ;;  %v864_v10 = vor.u32 %v862_v52, %v861_v61  ;;  %v866_v11 = vrot.slane %v861_v61, 4  ;;  %v771_v12 = vmax.f32 %v697_v5, 0.0 }
  0xfe   : > { %v2093_v13 = vunpack.c.l.b16 %v1959_v6  ;;  %v1356_v25 = vsel %vm6985_vm10, %v1351_v15, %v1355_v16  ;;  %v1360_v26 = vor.u32 %v1359_v17, %v1355_v16  ;;  %v1006_v57 = vrot.slane %v1004_v49, 7 }
  0xff   : > { %v865_v19 = vsel %vm7005_vm14, %v857_v42, %v864_v10  ;;  %v1168_v20 = vsel %vm6949_vm2, %v866_v11, %v1167_v4  ;;  %v803_v21 = vpack.c.bf16 %v771_v12, %v771_v12  ;;  %v1897_v24 = vld [vmem:[#allocation2 + $0x18] sm:$0xe]  ;;  %v1801_v37 = vunpack.c.l.b16 %v1356_v25 }
 0x100   : > { %v2123_v22 = vpack.c.b16 %v2093_v13, %v2092_v0  ;;  %1166 = vst [vmem:[#allocation2 + $0x1c] sm:$0xf] %v865_v19  ;;  %v1272_v30 = vld [vmem:[#allocation2 + $0x18] sm:$0xf]  ;;  %v5728_v34 = vrot.slane %v1897_v24, 9  ;;  %v1361_v36 = vrot.slane %v1360_v26, 4  ;;  %v1009_v6 = vor.u32 %v1007_v50, %v1006_v57 }
 0x101   : > { %1169 = vst [vmem:[#allocation2 + $0x20] sm:$0x1] %v1168_v20  ;;  %v868_v31 = vshrl.u32 %v803_v21, 16  ;;  %v871_v33 = vshll.u32 %v803_v21, 16  ;;  %v788_v42 = vmax.f32 %v739_v60, 0.0  ;;  %v1368_v44 = vshrl.u32 %v1272_v30, 16 }
 0x102   : > { %2392 = vmatmul.bf16.gmra.mxu1 %v2123_v22  ;;  %v1371_v45 = vshll.u32 %v1272_v30, 16  ;;  %v1366_v48 = vsel %vm6985_vm10, %v1361_v36, %v1365_v27  ;;  %v7052_v52 = vpop.f32.mrf.mxu3  ;;  %v1010_v7 = vrot.slane %v1006_v57, 4  ;;  %v1227_v14 = vsel %vm6992_vm12, %v1009_v6, %v1226_v3  ;;  %v1230_v22 = vld [vmem:[#allocation2 + $0x8c] sm:$0x1]  ;;  %v391_v36 = vld [vmem:[#allocation2 + $0x3c] sm:$0x1] }
 0x103   : > { %v7046_v43 = vrot.slane %v868_v31, 7  ;;  %v820_v51 = vpack.c.bf16 %v788_v42, %v788_v42  ;;  %v1802_v56 = vunpack.c.l.b16 %v1366_v48  ;;  %v1370_v60 = vrot.slane %v1368_v44, 4  ;;  %1228 = vst [vmem:[#allocation2 + $0x84] sm:$0xf] %v1227_v14  ;;  %v1174_v24 = vld [vmem:[#allocation2 + $0x2c] sm:$0x1] }
 0x104   : > { %v699_v47 = vpop.f32.mrf.mxu0  ;;  %v1373_v5 = vrot.slane %v1371_v45, 5 }
 0x105   : > { %v873_v53 = vor.u32 %v871_v33, %v7046_v43  ;;  %v874_v54 = vrot.slane %v7046_v43, 4  ;;  %v772_v55 = vmax.f32 %v699_v47, 0.0  ;;  %v1012_v58 = vshrl.u32 %v820_v51, 16  ;;  %v412_v43 = vld [vmem:[#allocation2 + $0x90] sm:$0x1] }
 0x106   : > { %v1015_v59 = vshll.u32 %v820_v51, 16  ;;  %v1832_v1 = vpack.c.b16 %v1802_v56, %v1801_v37  ;;  %v1374_v17 = vor.u32 %v1373_v5, %v1370_v60  ;;  %v413_v57 = vsel %vm6949_vm2, 0, %v412_v43  ;;  %v1177_v5 = vld [vmem:[#allocation2 + $0x30] sm:$0xf] }
 0x107   : > { %v1171_v61 = vsel %vm6992_vm12, %v873_v53, %v1170_v46  ;;  %v804_v0 = vpack.c.bf16 %v772_v55, %v772_v55  ;;  %v6251_v2 = vld [vmem:[#allocation2 + $0x18] sm:$0xff]  ;;  %v1014_v13 = vrot.slane %v1012_v58, 7  ;;  %v392_v53 = vsel %vm6949_vm2, 0, %v391_v36  ;;  %v447_v55 = vld [vmem:[#allocation2 + $0x44] sm:$0x1] }
 0x108   : > { %v1273_v4 = vld [vmem:[#allocation2 + $0x1c] sm:$0xf]  ;;  %1172 = vst [vmem:[#allocation2 + $0x24] sm:$0xf] %v1171_v61  ;;  %v1302_v8 = vld [vmem:[#allocation2 + $0x20] sm:$0x1]  ;;  %2755 = vmatmul.bf16.gmra.mxu0 %v1832_v1  ;;  %2671 = vmatmul.bf16.gmra.mxu3 %v6251_v2 }
 0x109   : > { %v1962_v9 = vrot.slane %v1273_v4, 5  ;;  %v876_v10 = vshrl.u32 %v804_v0, 16  ;;  %v879_v11 = vshll.u32 %v804_v0, 16  ;;  %v1965_v12 = vrot.slane %v1302_v8, 5  ;;  %393 = vst [vmem:[#allocation2 + $0x3c] sm:$0x1] %v392_v53 }
 0x10a   : > { %v1017_v20 = vor.u32 %v1015_v59, %v1014_v13  ;;  %v1019_v21 = vrot.slane %v1014_v13, 4  ;;  %v1375_v27 = vrot.slane %v1374_v17, 4  ;;  %v1377_v29 = vshll.u32 %v1273_v4, 16  ;;  %v744_v23 = vpop.f32.mrf.mxu3  ;;  %414 = vst [vmem:[#allocation2 + $0x90] sm:$0x1] %v413_v57 }
 0x10b   : > { %v1963_v15 = vsel %vm6970_vm7, %v5728_v34, %v1962_v9  ;;  %v1964_v16 = vrot.slane %v1962_v9, 4  ;;  %v878_v18 = vrot.slane %v876_v10, 7  ;;  %v1381_v30 = vshrl.u32 %v1273_v4, 16  ;;  %v468_v4 = vld [vmem:[#allocation2 + $0x98] sm:$0x1] }
 0x10c   : > { %v2094_v19 = vunpack.c.l.b16 %v1963_v15  ;;  %v702_v25 = vpop.f32.mrf.mxu0  ;;  %v1018_v37 = vsel %vm7005_vm14, %v1010_v7, %v1017_v20  ;;  %v1231_v38 = vsel %vm6949_vm2, %v1019_v21, %v1230_v22  ;;  %v1379_v40 = vrot.slane %v1377_v29, 5 }
 0x10d   : > { %v1966_v26 = vsel %vm6970_vm7, %v1964_v16, %v1965_v12  ;;  %v881_v31 = vor.u32 %v879_v11, %v878_v18  ;;  %v883_v33 = vrot.slane %v878_v18, 4  ;;  %v773_v35 = vmax.f32 %v702_v25, 0.0  ;;  %1229 = vst [vmem:[#allocation2 + $0x88] sm:$0xf] %v1018_v37 }
 0x10e   : > { %v2095_v34 = vunpack.c.l.b16 %v1966_v26  ;;  %v1383_v42 = vrot.slane %v1381_v30, 4  ;;  %v1380_v49 = vsel %vm6985_vm10, %v1375_v27, %v1379_v40  ;;  %v1387_v51 = vshll.u32 %v1302_v8, 16  ;;  %1232 = vst [vmem:[#allocation2 + $0x8c] sm:$0x1] %v1231_v38 }
 0x10f   : > { %v882_v44 = vsel %vm7005_vm14, %v874_v54, %v881_v31  ;;  %v1175_v45 = vsel %vm6949_vm2, %v883_v33, %v1174_v24  ;;  %v805_v46 = vpack.c.bf16 %v773_v35, %v773_v35  ;;  %v7072_v48 = vld [vmem:[#allocation2 + $0x24] sm:$0xe]  ;;  %v789_v61 = vmax.f32 %v7052_v52, 0.0 }
 0x110   : > { %v2124_v47 = vpack.c.b16 %v2095_v34, %v2094_v19  ;;  %1173 = vst [vmem:[#allocation2 + $0x28] sm:$0xf] %v882_v44  ;;  %v1384_v50 = vor.u32 %v1383_v42, %v1379_v40  ;;  %v7080_v58 = vld [vmem:[#allocation2 + $0x24] sm:$0xf]  ;;  %v1389_v60 = vrot.slane %v1387_v51, 5  ;;  %v5729_v0 = vrot.slane %v7072_v48, 9 }
 0x111   : > { %1176 = vst [vmem:[#allocation2 + $0x2c] sm:$0x1] %v1175_v45  ;;  %v885_v54 = vshrl.u32 %v805_v46, 16  ;;  %v888_v56 = vshll.u32 %v805_v46, 16  ;;  %v1803_v2 = vunpack.c.l.b16 %v1380_v49  ;;  %v448_v3 = vsel %vm6959_vm4, 0, %v447_v55 }
 0x112   : > { %2397 = vmatmul.bf16.gmra.mxu1 %v2124_v47  ;;  %v1385_v59 = vrot.slane %v1384_v50, 4  ;;  %v821_v8 = vpack.c.bf16 %v789_v61, %v789_v61  ;;  %v469_v52 = vsel %vm6959_vm4, 0, %v468_v4  ;;  %v790_v9 = vmax.f32 %v744_v23, 0.0  ;;  %449 = vst [vmem:[#allocation2 + $0x44] sm:$0x1] %v448_v3  ;;  %v7098_v29 = vpop.f32.mrf.mxu3 }
 0x113   : > { %v7084_v1 = vrot.slane %v885_v54, 7  ;;  %470 = vst [vmem:[#allocation2 + $0x98] sm:$0x1] %v469_v52  ;;  %v1392_v17 = vshrl.u32 %v7080_v58, 16  ;;  %v1395_v24 = vshll.u32 %v7080_v58, 16 }
 0x114   : > { %v704_v6 = vpop.f32.mrf.mxu0  ;;  %v1390_v7 = vsel %vm6985_vm10, %v1385_v59, %v1389_v60  ;;  %v1021_v14 = vshrl.u32 %v821_v8, 16  ;;  %v1024_v15 = vshll.u32 %v821_v8, 16  ;;  %v822_v16 = vpack.c.bf16 %v790_v9, %v790_v9  ;;  %v1233_v42 = vld [vmem:[#allocation2 + $0x90] sm:$0xf]  ;;  %v1181_v45 = vld [vmem:[#allocation2 + $0x38] sm:$0x1] }
 0x115   : > { %v890_v10 = vor.u32 %v888_v56, %v7084_v1  ;;  %v891_v11 = vrot.slane %v7084_v1, 4  ;;  %v774_v12 = vmax.f32 %v704_v6, 0.0  ;;  %v1804_v13 = vunpack.c.l.b16 %v1390_v7  ;;  %v394_v3 = vld [vmem:[#allocation2 + $0x48] sm:$0x1]  ;;  %v415_v4 = vld [vmem:[#allocation2 + $0x9c] sm:$0x1] }
 0x116   : > { %v1023_v25 = vrot.slane %v1021_v14, 7  ;;  %v1029_v38 = vshrl.u32 %v822_v16, 16  ;;  %v1032_v44 = vshll.u32 %v822_v16, 16  ;;  %v1394_v50 = vrot.slane %v1392_v17, 4  ;;  %v450_v9 = vld [vmem:[#allocation2 + $0x50] sm:$0x1] }
 0x117   : > { %v1178_v18 = vsel %vm6992_vm12, %v890_v10, %v1177_v5  ;;  %v806_v19 = vpack.c.bf16 %v774_v12, %v774_v12  ;;  %v1833_v20 = vpack.c.b16 %v1804_v13, %v1803_v2  ;;  %v6252_v21 = vld [vmem:[#allocation2 + $0x24] sm:$0xff]  ;;  %v1397_v60 = vrot.slane %v1395_v24, 5  ;;  %v1184_v14 = vld [vmem:[#allocation2 + $0x3c] sm:$0xf] }
 0x118   : > { %v1275_v22 = vld [vmem:[#allocation2 + $0x28] sm:$0xf]  ;;  %1179 = vst [vmem:[#allocation2 + $0x30] sm:$0xf] %v1178_v18  ;;  %v1303_v26 = vld [vmem:[#allocation2 + $0x2c] sm:$0x1]  ;;  %2676 = vmatmul.bf16.gmra.mxu3 %v6252_v21  ;;  %v1026_v34 = vor.u32 %v1024_v15, %v1023_v25 }
 0x119   : > { %v1405_v27 = vshrl.u32 %v1275_v22, 16  ;;  %v893_v30 = vshrl.u32 %v806_v19, 16  ;;  %v896_v31 = vshll.u32 %v806_v19, 16  ;;  %2760 = vmatmul.bf16.gmra.mxu0 %v1833_v20  ;;  %v1411_v33 = vshll.u32 %v1303_v26, 16 }
 0x11a   : > { %v1969_v35 = vrot.slane %v1275_v22, 5  ;;  %v1027_v36 = vrot.slane %v1023_v25, 4  ;;  %v1972_v37 = vrot.slane %v1303_v26, 5  ;;  %v1234_v47 = vsel %vm6992_vm12, %v1026_v34, %v1233_v42  ;;  %v1237_v56 = vld [vmem:[#allocation2 + $0x98] sm:$0x1]  ;;  %v749_v19 = vpop.f32.mrf.mxu3 }
 0x11b   : > { %v895_v40 = vrot.slane %v893_v30, 7  ;;  %v1031_v49 = vrot.slane %v1029_v38, 7  ;;  %1235 = vst [vmem:[#allocation2 + $0x90] sm:$0xf] %v1234_v47  ;;  %v1401_v2 = vshll.u32 %v1275_v22, 16  ;;  %v1398_v8 = vor.u32 %v1397_v60, %v1394_v50 }
 0x11c   : > { %v1970_v43 = vsel %vm6970_vm7, %v5729_v0, %v1969_v35  ;;  %v1971_v23 = vrot.slane %v1969_v35, 4  ;;  %v707_v46 = vpop.f32.mrf.mxu0  ;;  %v1407_v13 = vrot.slane %v1405_v27, 4  ;;  %v1413_v16 = vrot.slane %v1411_v33, 5  ;;  %v471_v30 = vld [vmem:[#allocation2 + $0xa4] sm:$0x1] }
 0x11d   : > { %v2096_v48 = vunpack.c.l.b16 %v1970_v43  ;;  %v898_v51 = vor.u32 %v896_v31, %v895_v40  ;;  %v900_v53 = vrot.slane %v895_v40, 4  ;;  %v775_v55 = vmax.f32 %v707_v46, 0.0 }
 0x11e   : > { %v1973_v54 = vsel %vm6970_vm7, %v1971_v23, %v1972_v37  ;;  %v1034_v58 = vor.u32 %v1032_v44, %v1031_v49  ;;  %v1036_v59 = vrot.slane %v1031_v49, 4  ;;  %v1403_v12 = vrot.slane %v1401_v2, 5 }
 0x11f   : > { %v2097_v57 = vunpack.c.l.b16 %v1973_v54  ;;  %v899_v61 = vsel %vm7005_vm14, %v891_v11, %v898_v51  ;;  %v1182_v0 = vsel %vm6949_vm2, %v900_v53, %v1181_v45  ;;  %v807_v1 = vpack.c.bf16 %v775_v55, %v775_v55  ;;  %v7114_v52 = vld [vmem:[#allocation2 + $0x30] sm:$0xe] }
 0x120   : > { %1180 = vst [vmem:[#allocation2 + $0x34] sm:$0xf] %v899_v61  ;;  %v1035_v6 = vsel %vm7005_vm14, %v1027_v36, %v1034_v58  ;;  %v1238_v7 = vsel %vm6949_vm2, %v1036_v59, %v1237_v56  ;;  %v1399_v15 = vrot.slane %v1398_v8, 4  ;;  %v395_v17 = vsel %vm6949_vm2, 0, %v394_v3  ;;  %v7120_v20 = vld [vmem:[#allocation2 + $0x30] sm:$0xf] }
 0x121   : > { %v2125_v5 = vpack.c.b16 %v2097_v57, %v2096_v48  ;;  %1183 = vst [vmem:[#allocation2 + $0x38] sm:$0x1] %v1182_v0  ;;  %v902_v10 = vshrl.u32 %v807_v1, 16  ;;  %v905_v11 = vshll.u32 %v807_v1, 16  ;;  %v416_v18 = vsel %vm6949_vm2, 0, %v415_v4 }
 0x122   : > { %1236 = vst [vmem:[#allocation2 + $0x94] sm:$0xf] %v1035_v6  ;;  %v1408_v22 = vor.u32 %v1407_v13, %v1403_v12  ;;  %v791_v24 = vmax.f32 %v7098_v29, 0.0  ;;  %v5730_v25 = vrot.slane %v7114_v52, 9  ;;  %v451_v27 = vsel %vm6959_vm4, 0, %v450_v9  ;;  %v752_v9 = vpop.f32.mrf.mxu3 }
 0x123   : > { %2402 = vmatmul.bf16.gmra.mxu1 %v2125_v5  ;;  %v7122_v21 = vrot.slane %v902_v10, 7  ;;  %1239 = vst [vmem:[#allocation2 + $0x98] sm:$0x1] %v1238_v7  ;;  %v792_v31 = vmax.f32 %v749_v19, 0.0  ;;  %v1404_v34 = vsel %vm6985_vm10, %v1399_v15, %v1403_v12  ;;  %v472_v38 = vsel %vm6959_vm4, 0, %v471_v30 }
 0x124   : > { %v709_v26 = vpop.f32.mrf.mxu0  ;;  %396 = vst [vmem:[#allocation2 + $0x48] sm:$0x1] %v395_v17  ;;  %v1409_v36 = vrot.slane %v1408_v22, 4  ;;  %v823_v29 = vpack.c.bf16 %v791_v24, %v791_v24  ;;  %v1416_v46 = vshrl.u32 %v7120_v20, 16  ;;  %v1805_v47 = vunpack.c.l.b16 %v1404_v34  ;;  %v1188_v3 = vld [vmem:[#allocation2 + $0x44] sm:$0x1] }
 0x125   : > { %v907_v33 = vor.u32 %v905_v11, %v7122_v21  ;;  %v776_v35 = vmax.f32 %v709_v26, 0.0  ;;  %417 = vst [vmem:[#allocation2 + $0x9c] sm:$0x1] %v416_v18  ;;  %v908_v37 = vrot.slane %v7122_v21, 4  ;;  %v824_v40 = vpack.c.bf16 %v792_v31, %v792_v31  ;;  %v397_v18 = vld [vmem:[#allocation2 + $0x54] sm:$0x1] }
 0x126   : > { %452 = vst [vmem:[#allocation2 + $0x50] sm:$0x1] %v451_v27  ;;  %v1414_v23 = vsel %vm6985_vm10, %v1409_v36, %v1413_v16  ;;  %v1038_v49 = vshrl.u32 %v823_v29, 16  ;;  %v1041_v50 = vshll.u32 %v823_v29, 16  ;;  %v1418_v2 = vrot.slane %v1416_v46, 4 }
 0x127   : > { %v1185_v42 = vsel %vm6992_vm12, %v907_v33, %v1184_v14  ;;  %v808_v43 = vpack.c.bf16 %v776_v35, %v776_v35  ;;  %v6253_v44 = vld [vmem:[#allocation2 + $0x30] sm:$0xff]  ;;  %473 = vst [vmem:[#allocation2 + $0xa4] sm:$0x1] %v472_v38  ;;  %v1806_v48 = vunpack.c.l.b16 %v1414_v23  ;;  %v1046_v0 = vshrl.u32 %v824_v40, 16  ;;  %v418_v19 = vld [vmem:[#allocation2 + $0xa8] sm:$0x1] }
 0x128   : > { %v7138_v45 = vld [vmem:[#allocation2 + $0x34] sm:$0xf]  ;;  %1186 = vst [vmem:[#allocation2 + $0x3c] sm:$0xf] %v1185_v42  ;;  %v1304_v51 = vld [vmem:[#allocation2 + $0x38] sm:$0x1]  ;;  %2681 = vmatmul.bf16.gmra.mxu3 %v6253_v44 }
 0x129   : > { %v910_v53 = vshrl.u32 %v808_v43, 16  ;;  %v913_v55 = vshll.u32 %v808_v43, 16  ;;  %v1429_v54 = vshrl.u32 %v7138_v45, 16  ;;  %v1435_v56 = vshll.u32 %v1304_v51, 16  ;;  %v453_v35 = vld [vmem:[#allocation2 + $0x5c] sm:$0x1] }
 0x12a   : > { %v1834_v57 = vpack.c.b16 %v1806_v48, %v1805_v47  ;;  %v1040_v58 = vrot.slane %v1038_v49, 7  ;;  %v1976_v59 = vrot.slane %v7138_v45, 5  ;;  %v1979_v60 = vrot.slane %v1304_v51, 5  ;;  %v474_v44 = vld [vmem:[#allocation2 + $0xb0] sm:$0x1] }
 0x12b   : > { %v912_v61 = vrot.slane %v910_v53, 7  ;;  %v1049_v1 = vshll.u32 %v824_v40, 16  ;;  %v1048_v16 = vrot.slane %v1046_v0, 7  ;;  %v1419_v17 = vshll.u32 %v7120_v20, 16  ;;  %v1191_v38 = vld [vmem:[#allocation2 + $0x48] sm:$0xf] }
 0x12c   : > { %2765 = vmatmul.bf16.gmra.mxu0 %v1834_v57  ;;  %v712_v4 = vpop.f32.mrf.mxu0  ;;  %v1043_v5 = vor.u32 %v1041_v50, %v1040_v58  ;;  %v1044_v6 = vrot.slane %v1040_v58, 4  ;;  %v1240_v7 = vld [vmem:[#allocation2 + $0x9c] sm:$0xf]  ;;  %v1977_v8 = vsel %vm6970_vm7, %v5730_v25, %v1976_v59  ;;  %v1978_v52 = vrot.slane %v1976_v59, 4 }
 0x12d   : > { %v915_v10 = vor.u32 %v913_v55, %v912_v61  ;;  %v917_v11 = vrot.slane %v912_v61, 4  ;;  %v777_v12 = vmax.f32 %v712_v4, 0.0  ;;  %v2098_v13 = vunpack.c.l.b16 %v1977_v8 }
 0x12e   : > { %v1241_v14 = vsel %vm6992_vm12, %v1043_v5, %v1240_v7  ;;  %v1980_v15 = vsel %vm6970_vm7, %v1978_v52, %v1979_v60  ;;  %v1244_v26 = vld [vmem:[#allocation2 + $0xa4] sm:$0x1]  ;;  %v1051_v30 = vor.u32 %v1049_v1, %v1048_v16  ;;  %v1053_v31 = vrot.slane %v1048_v16, 4  ;;  %v754_v1 = vpop.f32.mrf.mxu3 }
 0x12f   : > { %v916_v21 = vsel %vm7005_vm14, %v908_v37, %v915_v10  ;;  %v1189_v22 = vsel %vm6949_vm2, %v917_v11, %v1188_v3  ;;  %v809_v24 = vpack.c.bf16 %v777_v12, %v777_v12  ;;  %1242 = vst [vmem:[#allocation2 + $0x9c] sm:$0xf] %v1241_v14  ;;  %v2099_v25 = vunpack.c.l.b16 %v1980_v15  ;;  %v7154_v27 = vld [vmem:[#allocation2 + $0x3c] sm:$0xe] }
 0x130   : > { %1187 = vst [vmem:[#allocation2 + $0x40] sm:$0xf] %v916_v21  ;;  %v1421_v33 = vrot.slane %v1419_v17, 5  ;;  %v1425_v20 = vshll.u32 %v7138_v45, 16  ;;  %v1431_v29 = vrot.slane %v1429_v54, 4  ;;  %v1052_v40 = vsel %vm7005_vm14, %v1044_v6, %v1051_v30 }
 0x131   : > { %1190 = vst [vmem:[#allocation2 + $0x44] sm:$0x1] %v1189_v22  ;;  %v919_v34 = vshrl.u32 %v809_v24, 16  ;;  %v922_v36 = vshll.u32 %v809_v24, 16  ;;  %v2126_v37 = vpack.c.b16 %v2099_v25, %v2098_v13  ;;  %v1245_v42 = vsel %vm6949_vm2, %v1053_v31, %v1244_v26  ;;  %v1278_v14 = vld [vmem:[#allocation2 + $0x3c] sm:$0xf] }
 0x132   : > { %v1422_v43 = vor.u32 %v1421_v33, %v1418_v2  ;;  %v1427_v23 = vrot.slane %v1425_v20, 5  ;;  %1243 = vst [vmem:[#allocation2 + $0xa0] sm:$0xf] %v1052_v40  ;;  %v1437_v45 = vrot.slane %v1435_v56, 5  ;;  %v398_v47 = vsel %vm6949_vm2, 0, %v397_v18 }
 0x133   : > { %v7161_v46 = vrot.slane %v919_v34, 7  ;;  %2407 = vmatmul.bf16.gmra.mxu1 %v2126_v37  ;;  %v419_v48 = vsel %vm6949_vm2, 0, %v418_v19  ;;  %1246 = vst [vmem:[#allocation2 + $0xa4] sm:$0x1] %v1245_v42  ;;  %v793_v53 = vmax.f32 %v752_v9, 0.0  ;;  %v5731_v55 = vrot.slane %v7154_v27, 9 }
 0x134   : > { %v714_v49 = vpop.f32.mrf.mxu0  ;;  %v1423_v50 = vrot.slane %v1422_v43, 4  ;;  %v1432_v51 = vor.u32 %v1431_v29, %v1427_v23  ;;  %399 = vst [vmem:[#allocation2 + $0x54] sm:$0x1] %v398_v47  ;;  %v454_v56 = vsel %vm6959_vm4, 0, %v453_v35  ;;  %v475_v0 = vsel %vm6959_vm4, 0, %v474_v44 }
 0x135   : > { %v924_v54 = vor.u32 %v922_v36, %v7161_v46  ;;  %v925_v57 = vrot.slane %v7161_v46, 4  ;;  %v778_v58 = vmax.f32 %v714_v49, 0.0  ;;  %420 = vst [vmem:[#allocation2 + $0xa8] sm:$0x1] %v419_v48  ;;  %v825_v61 = vpack.c.bf16 %v793_v53, %v793_v53  ;;  %v1195_v25 = vld [vmem:[#allocation2 + $0x50] sm:$0x1] }
 0x136   : > { %v1428_v59 = vsel %vm6985_vm10, %v1423_v50, %v1427_v23  ;;  %v1433_v60 = vrot.slane %v1432_v51, 4  ;;  %455 = vst [vmem:[#allocation2 + $0x5c] sm:$0x1] %v454_v56  ;;  %v794_v6 = vmax.f32 %v754_v1, 0.0  ;;  %v1440_v33 = vshrl.u32 %v1278_v14, 16  ;;  %v757_v51 = vpop.f32.mrf.mxu3 }
 0x137   : > { %v1192_v2 = vsel %vm6992_vm12, %v924_v54, %v1191_v38  ;;  %v810_v3 = vpack.c.bf16 %v778_v58, %v778_v58  ;;  %v6254_v4 = vld [vmem:[#allocation2 + $0x3c] sm:$0xff]  ;;  %v1055_v8 = vshrl.u32 %v825_v61, 16  ;;  %v1058_v52 = vshll.u32 %v825_v61, 16  ;;  %476 = vst [vmem:[#allocation2 + $0xb0] sm:$0x1] %v475_v0 }
 0x138   : > { %v7178_v5 = vld [vmem:[#allocation2 + $0x40] sm:$0xf]  ;;  %1193 = vst [vmem:[#allocation2 + $0x48] sm:$0xf] %v1192_v2  ;;  %v1438_v7 = vsel %vm6985_vm10, %v1433_v60, %v1437_v45  ;;  %v7182_v9 = vld [vmem:[#allocation2 + $0x44] sm:$0x1]  ;;  %v1807_v12 = vunpack.c.l.b16 %v1428_v59  ;;  %2686 = vmatmul.bf16.gmra.mxu3 %v6254_v4  ;;  %v826_v24 = vpack.c.bf16 %v794_v6, %v794_v6 }
 0x139   : > { %v927_v10 = vshrl.u32 %v810_v3, 16  ;;  %v930_v11 = vshll.u32 %v810_v3, 16  ;;  %v1808_v13 = vunpack.c.l.b16 %v1438_v7  ;;  %v1057_v15 = vrot.slane %v1055_v8, 7  ;;  %v400_v45 = vld [vmem:[#allocation2 + $0x60] sm:$0x1] }
 0x13a   : > { %v1453_v16 = vshrl.u32 %v7178_v5, 16  ;;  %v1459_v17 = vshll.u32 %v7182_v9, 16  ;;  %v1983_v18 = vrot.slane %v7178_v5, 5  ;;  %v1986_v22 = vrot.slane %v7182_v9, 5  ;;  %v421_v47 = vld [vmem:[#allocation2 + $0xb4] sm:$0x1] }
 0x13b   : > { %v929_v19 = vrot.slane %v927_v10, 7  ;;  %v1835_v21 = vpack.c.b16 %v1808_v13, %v1807_v12  ;;  %v1060_v27 = vor.u32 %v1058_v52, %v1057_v15  ;;  %v1063_v40 = vshrl.u32 %v826_v24, 16  ;;  %v456_v3 = vld [vmem:[#allocation2 + $0x68] sm:$0x1]  ;;  %v1198_v4 = vld [vmem:[#allocation2 + $0x54] sm:$0xf] }
 0x13c   : > { %v717_v26 = vpop.f32.mrf.mxu0  ;;  %v1984_v30 = vsel %vm6970_vm7, %v5731_v55, %v1983_v18  ;;  %v1985_v31 = vrot.slane %v1983_v18, 4  ;;  %v1247_v36 = vld [vmem:[#allocation2 + $0xa8] sm:$0xf]  ;;  %v1066_v42 = vshll.u32 %v826_v24, 16  ;;  %v1061_v48 = vrot.slane %v1057_v15, 4 }
 0x13d   : > { %v932_v20 = vor.u32 %v930_v11, %v929_v19  ;;  %v934_v35 = vrot.slane %v929_v19, 4  ;;  %2770 = vmatmul.bf16.gmra.mxu0 %v1835_v21  ;;  %v779_v34 = vmax.f32 %v717_v26, 0.0  ;;  %v2100_v37 = vunpack.c.l.b16 %v1984_v30  ;;  %v477_v26 = vld [vmem:[#allocation2 + $0xbc] sm:$0x1] }
 0x13e   : > { %v1248_v29 = vsel %vm6992_vm12, %v1060_v27, %v1247_v36  ;;  %v1987_v38 = vsel %vm6970_vm7, %v1985_v31, %v1986_v22  ;;  %v1065_v49 = vrot.slane %v1063_v40, 7  ;;  %v1251_v50 = vld [vmem:[#allocation2 + $0xb0] sm:$0x1]  ;;  %v1442_v54 = vrot.slane %v1440_v33, 4 }
 0x13f   : > { %v933_v43 = vsel %vm7005_vm14, %v925_v57, %v932_v20  ;;  %v1196_v23 = vsel %vm6949_vm2, %v934_v35, %v1195_v25  ;;  %v811_v44 = vpack.c.bf16 %v779_v34, %v779_v34  ;;  %1249 = vst [vmem:[#allocation2 + $0xa8] sm:$0xf] %v1248_v29  ;;  %v2101_v46 = vunpack.c.l.b16 %v1987_v38  ;;  %v1901_v13 = vld [vmem:[#allocation2 + $0x48] sm:$0xe] }
 0x140   : > { %1194 = vst [vmem:[#allocation2 + $0x4c] sm:$0xf] %v933_v43  ;;  %v1443_v58 = vshll.u32 %v1278_v14, 16  ;;  %v1068_v56 = vor.u32 %v1066_v42, %v1065_v49  ;;  %v1070_v57 = vrot.slane %v1065_v49, 4  ;;  %v1449_v59 = vshll.u32 %v7178_v5, 16  ;;  %v759_v43 = vpop.f32.mrf.mxu3 }
 0x141   : > { %1197 = vst [vmem:[#allocation2 + $0x50] sm:$0x1] %v1196_v23  ;;  %v936_v53 = vshrl.u32 %v811_v44, 16  ;;  %v2127_v55 = vpack.c.b16 %v2101_v46, %v2100_v37  ;;  %v1455_v60 = vrot.slane %v1453_v16, 4  ;;  %v939_v0 = vshll.u32 %v811_v44, 16  ;;  %v6320_v37 = vld [vmem:[#allocation8 + $0x138] sm:$0xff] }
 0x142   : > { %v1445_v1 = vrot.slane %v1443_v58, 5  ;;  %v401_v2 = vsel %vm6949_vm2, 0, %v400_v45  ;;  %v1069_v7 = vsel %vm7005_vm14, %v1061_v48, %v1068_v56  ;;  %v1252_v8 = vsel %vm6949_vm2, %v1070_v57, %v1251_v50  ;;  %3696 = vmatpush.bf16.msrb.mxu1 %v6320_v37 }
 0x143   : > { %v7199_v61 = vrot.slane %v936_v53, 7  ;;  %2412 = vmatmul.bf16.gmra.mxu1 %v2127_v55  ;;  %v1451_v52 = vrot.slane %v1449_v59, 5  ;;  %402 = vst [vmem:[#allocation2 + $0x60] sm:$0x1] %v401_v2  ;;  %v422_v5 = vsel %vm6949_vm2, 0, %v421_v47  ;;  %v1461_v12 = vrot.slane %v1459_v17, 5 }
 0x144   : > { %v719_v6 = vpop.f32.mrf.mxu0  ;;  %1250 = vst [vmem:[#allocation2 + $0xac] sm:$0xf] %v1069_v7  ;;  %v1446_v11 = vor.u32 %v1445_v1, %v1442_v54  ;;  %v795_v16 = vmax.f32 %v757_v51, 0.0  ;;  %v457_v18 = vsel %vm6959_vm4, 0, %v456_v3  ;;  %v7217_v17 = vld [vmem:[#allocation2 + $0x48] sm:$0xf] }
 0x145   : > { %v941_v9 = vor.u32 %v939_v0, %v7199_v61  ;;  %v780_v10 = vmax.f32 %v719_v6, 0.0  ;;  %v942_v14 = vrot.slane %v7199_v61, 4  ;;  %1253 = vst [vmem:[#allocation2 + $0xb0] sm:$0x1] %v1252_v8  ;;  %v1456_v15 = vor.u32 %v1455_v60, %v1451_v52  ;;  %v1202_v47 = vld [vmem:[#allocation2 + $0x5c] sm:$0x1] }
 0x146   : > { %v1447_v22 = vrot.slane %v1446_v11, 4  ;;  %423 = vst [vmem:[#allocation2 + $0xb4] sm:$0x1] %v422_v5  ;;  %v827_v30 = vpack.c.bf16 %v795_v16, %v795_v16  ;;  %v5732_v33 = vrot.slane %v1901_v13, 9  ;;  %v478_v50 = vsel %vm6959_vm4, 0, %v477_v26 }
 0x147   : > { %v1199_v19 = vsel %vm6992_vm12, %v941_v9, %v1198_v4  ;;  %v812_v21 = vpack.c.bf16 %v780_v10, %v780_v10  ;;  %v6255_v24 = vld [vmem:[#allocation2 + $0x48] sm:$0xff]  ;;  %v1457_v27 = vrot.slane %v1456_v15, 4  ;;  %458 = vst [vmem:[#allocation2 + $0x68] sm:$0x1] %v457_v18  ;;  %v796_v51 = vmax.f32 %v759_v43, 0.0 }
 0x148   : > { %v7215_v25 = vld [vmem:[#allocation2 + $0x4c] sm:$0xf]  ;;  %1200 = vst [vmem:[#allocation2 + $0x54] sm:$0xf] %v1199_v19  ;;  %v7219_v31 = vld [vmem:[#allocation2 + $0x50] sm:$0x1]  ;;  %v1452_v34 = vsel %vm6985_vm10, %v1447_v22, %v1451_v52  ;;  %2691 = vmatmul.bf16.gmra.mxu3 %v6255_v24 }
 0x149   : > { %v944_v20 = vshrl.u32 %v812_v21, 16  ;;  %v947_v35 = vshll.u32 %v812_v21, 16  ;;  %v1477_v36 = vshrl.u32 %v7215_v25, 16  ;;  %v1462_v29 = vsel %vm6985_vm10, %v1457_v27, %v1461_v12  ;;  %479 = vst [vmem:[#allocation2 + $0xbc] sm:$0x1] %v478_v50  ;;  %v6319_v15 = vld [vmem:[#allocation8 + $0x130] sm:$0xff] }
 0x14a   : > { %v1072_v38 = vshrl.u32 %v827_v30, 16  ;;  %v1075_v40 = vshll.u32 %v827_v30, 16  ;;  %v1483_v42 = vshll.u32 %v7219_v31, 16  ;;  %v1809_v44 = vunpack.c.l.b16 %v1452_v34  ;;  %v403_v5 = vld [vmem:[#allocation2 + $0x6c] sm:$0x1]  ;;  %3697 = vmatpush.bf16.msrb.mxu1 %v6319_v15  ;;  %v6318_v30 = vld [vmem:[#allocation8 + $0x128] sm:$0xff] }
 0x14b   : > { %v946_v23 = vrot.slane %v944_v20, 7  ;;  %v1810_v46 = vunpack.c.l.b16 %v1462_v29  ;;  %v1990_v45 = vrot.slane %v7215_v25, 5  ;;  %v1464_v53 = vshrl.u32 %v7217_v17, 16  ;;  %v424_v9 = vld [vmem:[#allocation2 + $0xc0] sm:$0x1]  ;;  %v762_v29 = vpop.f32.mrf.mxu3 }
 0x14c   : > { %v722_v48 = vpop.f32.mrf.mxu0  ;;  %v7228_v49 = vrot.slane %v1072_v38, 7  ;;  %v1993_v0 = vrot.slane %v7219_v31, 5  ;;  %v828_v52 = vpack.c.bf16 %v796_v51, %v796_v51  ;;  %v7246_v10 = vld [vmem:[#allocation2 + $0xc] sm:$0xf]  ;;  %v1473_v19 = vshll.u32 %v7215_v25, 16 }
 0x14d   : > { %v949_v55 = vor.u32 %v947_v35, %v946_v23  ;;  %v951_v54 = vrot.slane %v946_v23, 4  ;;  %v1836_v58 = vpack.c.b16 %v1810_v46, %v1809_v44  ;;  %v781_v56 = vmax.f32 %v722_v48, 0.0  ;;  %v1254_v59 = vld [vmem:[#allocation2 + $0xb4] sm:$0xf] }
 0x14e   : > { %v1077_v57 = vor.u32 %v1075_v40, %v7228_v49  ;;  %v1991_v60 = vsel %vm6970_vm7, %v5732_v33, %v1990_v45  ;;  %v1992_v61 = vrot.slane %v1990_v45, 4  ;;  %v1078_v4 = vrot.slane %v7228_v49, 4  ;;  %v1205_v33 = vld [vmem:[#allocation2 + $0x60] sm:$0xf]  ;;  %3698 = vmatpush.bf16.msrb.mxu1 %v6318_v30 }
 0x14f   : > { %v950_v1 = vsel %vm7005_vm14, %v942_v14, %v949_v55  ;;  %v1203_v2 = vsel %vm6949_vm2, %v951_v54, %v1202_v47  ;;  %2775 = vmatmul.bf16.gmra.mxu0 %v1836_v58  ;;  %v813_v3 = vpack.c.bf16 %v781_v56, %v781_v56  ;;  %v2102_v8 = vunpack.c.l.b16 %v1991_v60  ;;  %v1902_v47 = vld [vmem:[#allocation2 + $0x54] sm:$0xe]  ;;  %v459_v55 = vld [vmem:[#allocation2 + $0x74] sm:$0x1]  ;;  %v480_v54 = vld [vmem:[#allocation2 + $0xc8] sm:$0x1] }
 0x150   : > { %1201 = vst [vmem:[#allocation2 + $0x58] sm:$0xf] %v950_v1  ;;  %v1255_v6 = vsel %vm6992_vm12, %v1077_v57, %v1254_v59  ;;  %v1994_v7 = vsel %vm6970_vm7, %v1992_v61, %v1993_v0  ;;  %v1466_v13 = vrot.slane %v1464_v53, 4  ;;  %v1467_v14 = vshll.u32 %v7217_v17, 16  ;;  %v1258_v38 = vld [vmem:[#allocation2 + $0xbc] sm:$0x1] }
 0x151   : > { %1204 = vst [vmem:[#allocation2 + $0x5c] sm:$0x1] %v1203_v2  ;;  %v953_v11 = vshrl.u32 %v813_v3, 16  ;;  %v2103_v12 = vunpack.c.l.b16 %v1994_v7  ;;  %v1080_v16 = vshrl.u32 %v828_v52, 16  ;;  %v1083_v18 = vshll.u32 %v828_v52, 16  ;;  %v6317_v58 = vld [vmem:[#allocation8 + $0x120] sm:$0xff] }
 0x152   : > { %1256 = vst [vmem:[#allocation2 + $0xb4] sm:$0xf] %v1255_v6  ;;  %v1479_v21 = vrot.slane %v1477_v36, 4  ;;  %v956_v24 = vshll.u32 %v813_v3, 16  ;;  %v1469_v27 = vrot.slane %v1467_v14, 5  ;;  %v1475_v34 = vrot.slane %v1473_v19, 5  ;;  %3699 = vmatpush.bf16.msrb.mxu1 %v6317_v58 }
 0x153   : > { %v7250_v22 = vrot.slane %v953_v11, 7  ;;  %v2128_v26 = vpack.c.b16 %v2103_v12, %v2102_v8  ;;  %v1082_v35 = vrot.slane %v1080_v16, 7  ;;  %v404_v17 = vsel %vm6949_vm2, 0, %v403_v5  ;;  %v1282_v11 = vld [vmem:[#allocation2 + $0x54] sm:$0xf] }
 0x154   : > { %v724_v20 = vpop.f32.mrf.mxu0  ;;  %v425_v37 = vsel %vm6949_vm2, 0, %v424_v9  ;;  %v1470_v40 = vor.u32 %v1469_v27, %v1466_v13  ;;  %405 = vst [vmem:[#allocation2 + $0x6c] sm:$0x1] %v404_v17  ;;  %v2880_v43 = vshrl.u32 %v7246_v10, 16  ;;  %v1480_v46 = vor.u32 %v1479_v21, %v1475_v34  ;;  %v6316_v12 = vld [vmem:[#allocation8 + $0x118] sm:$0xff] }
 0x155   : > { %v958_v25 = vor.u32 %v956_v24, %v7250_v22  ;;  %2417 = vmatmul.bf16.gmra.mxu1 %v2128_v26  ;;  %v782_v36 = vmax.f32 %v724_v20, 0.0  ;;  %v1085_v23 = vor.u32 %v1083_v18, %v1082_v35  ;;  %v1087_v44 = vrot.slane %v1082_v35, 4  ;;  %426 = vst [vmem:[#allocation2 + $0xc0] sm:$0x1] %v425_v37  ;;  %v1209_v13 = vld [vmem:[#allocation2 + $0x68] sm:$0x1] }
 0x156   : > { %v797_v45 = vmax.f32 %v762_v29, 0.0  ;;  %v1471_v50 = vrot.slane %v1470_v40, 4  ;;  %v1485_v51 = vrot.slane %v1483_v42, 5  ;;  %v1481_v59 = vrot.slane %v1480_v46, 4  ;;  %3700 = vmatpush.bf16.msrb.mxu1 %v6316_v12 }
 0x157   : > { %v1206_v48 = vsel %vm6992_vm12, %v958_v25, %v1205_v33  ;;  %v814_v49 = vpack.c.bf16 %v782_v36, %v782_v36  ;;  %v6256_v53 = vld [vmem:[#allocation2 + $0x54] sm:$0xff]  ;;  %v1086_v56 = vsel %vm7005_vm14, %v1078_v4, %v1085_v23  ;;  %v1259_v57 = vsel %vm6949_vm2, %v1087_v44, %v1258_v38  ;;  %v6315_v36 = vld [vmem:[#allocation8 + $0x110] sm:$0xff] }
 0x158   : > { %1207 = vst [vmem:[#allocation2 + $0x60] sm:$0xf] %v1206_v48  ;;  %v829_v60 = vpack.c.bf16 %v797_v45, %v797_v45  ;;  %v7266_v61 = vld [vmem:[#allocation2 + $0x58] sm:$0xf]  ;;  %v959_v0 = vrot.slane %v7250_v22, 4  ;;  %v1476_v42 = vsel %vm6985_vm10, %v1471_v50, %v1475_v34  ;;  %2696 = vmatmul.bf16.gmra.mxu3 %v6256_v53  ;;  %v5733_v1 = vrot.slane %v1902_v47, 9  ;;  %v764_v34 = vpop.f32.mrf.mxu3 }
 0x159   : > { %v961_v31 = vshrl.u32 %v814_v49, 16  ;;  %1257 = vst [vmem:[#allocation2 + $0xb8] sm:$0xf] %v1086_v56  ;;  %v964_v2 = vshll.u32 %v814_v49, 16  ;;  %v1486_v3 = vsel %vm6985_vm10, %v1481_v59, %v1485_v51  ;;  %v1811_v8 = vunpack.c.l.b16 %v1476_v42  ;;  %v7273_v5 = vld [vmem:[#allocation2 + $0x5c] sm:$0x1] }
 0x15a   : > { %1260 = vst [vmem:[#allocation2 + $0xbc] sm:$0x1] %v1259_v57  ;;  %v1089_v4 = vshrl.u32 %v829_v60, 16  ;;  %v1092_v6 = vshll.u32 %v829_v60, 16  ;;  %v1812_v52 = vunpack.c.l.b16 %v1486_v3  ;;  %v1997_v9 = vrot.slane %v7266_v61, 5  ;;  %v6312_v49 = vld [vmem:[#allocation8 + $0xf8] sm:$0xff]  ;;  %3701 = vmatpush.bf16.msrb.mxu1 %v6315_v36 }
 0x15b   : > { %v963_v7 = vrot.slane %v961_v31, 7  ;;  %v1501_v16 = vshrl.u32 %v7266_v61, 16  ;;  %v460_v18 = vsel %vm6959_vm4, 0, %v459_v55  ;;  %v481_v19 = vsel %vm6959_vm4, 0, %v480_v54  ;;  %v1212_v56 = vld [vmem:[#allocation2 + $0x6c] sm:$0xf]  ;;  %2468 = vmatpush.bf16.msrb.mxu2 %v6312_v49 }
 0x15c   : > { %v727_v14 = vpop.f32.mrf.mxu0  ;;  %v7276_v15 = vrot.slane %v1089_v4, 7  ;;  %v1837_v24 = vpack.c.b16 %v1812_v52, %v1811_v8  ;;  %v1261_v27 = vld [vmem:[#allocation2 + $0xc0] sm:$0xf]  ;;  %461 = vst [vmem:[#allocation2 + $0x74] sm:$0x1] %v460_v18  ;;  %v1998_v33 = vsel %vm6970_vm7, %v5733_v1, %v1997_v9  ;;  %v1999_v20 = vrot.slane %v1997_v9, 4 }
 0x15d   : > { %v966_v21 = vor.u32 %v964_v2, %v963_v7  ;;  %v968_v22 = vrot.slane %v963_v7, 4  ;;  %v783_v26 = vmax.f32 %v727_v14, 0.0  ;;  %v2000_v35 = vrot.slane %v7273_v5, 5  ;;  %482 = vst [vmem:[#allocation2 + $0xc8] sm:$0x1] %v481_v19  ;;  %v6314_v60 = vld [vmem:[#allocation8 + $0x108] sm:$0xff] }
 0x15e   : > { %v1094_v30 = vor.u32 %v1092_v6, %v7276_v15  ;;  %v1507_v25 = vshll.u32 %v7273_v5, 16  ;;  %v798_v23 = vmax.f32 %v764_v34, 0.0  ;;  %v1488_v44 = vshrl.u32 %v1282_v11, 16  ;;  %3702 = vmatpush.bf16.msrb.mxu1 %v6314_v60 }
 0x15f   : > { %v967_v17 = vsel %vm7005_vm14, %v959_v0, %v966_v21  ;;  %v1210_v37 = vsel %vm6949_vm2, %v968_v22, %v1209_v13  ;;  %2780 = vmatmul.bf16.gmra.mxu0 %v1837_v24  ;;  %v815_v29 = vpack.c.bf16 %v783_v26, %v783_v26  ;;  %v2001_v40 = vsel %vm6970_vm7, %v1999_v20, %v2000_v35  ;;  %v1284_v2 = vld [vmem:[#allocation2 + $0x60] sm:$0xf]  ;;  %v6313_v21 = vld [vmem:[#allocation8 + $0x100] sm:$0xff] }
 0x160   : > { %1208 = vst [vmem:[#allocation2 + $0x64] sm:$0xf] %v967_v17  ;;  %v1262_v38 = vsel %vm6992_vm12, %v1094_v30, %v1261_v27  ;;  %v2104_v45 = vunpack.c.l.b16 %v1998_v33  ;;  %v2105_v47 = vunpack.c.l.b16 %v2001_v40  ;;  %v1491_v48 = vshll.u32 %v1282_v11, 16  ;;  %v1903_v11 = vld [vmem:[#allocation2 + $0x60] sm:$0xe]  ;;  %v7304_v26 = vpop.f32.mrf.mxu3 }
 0x161   : > { %1211 = vst [vmem:[#allocation2 + $0x68] sm:$0x1] %v1210_v37  ;;  %v970_v46 = vshrl.u32 %v815_v29, 16  ;;  %v830_v50 = vpack.c.bf16 %v798_v23, %v798_v23  ;;  %v1490_v51 = vrot.slane %v1488_v44, 4  ;;  %v1497_v53 = vshll.u32 %v7266_v61, 16 }
 0x162   : > { %1263 = vst [vmem:[#allocation2 + $0xc0] sm:$0xf] %v1262_v38  ;;  %v1503_v55 = vrot.slane %v1501_v16, 4  ;;  %v973_v58 = vshll.u32 %v815_v29, 16  ;;  %v2129_v57 = vpack.c.b16 %v2105_v47, %v2104_v45  ;;  %v1493_v59 = vrot.slane %v1491_v48, 5  ;;  %v7314_v29 = vpop.f32.mrf.mxu1  ;;  %3703 = vmatpush.bf16.msrb.mxu1 %v6313_v21 }
 0x163   : > { %v7297_v54 = vrot.slane %v970_v46, 7  ;;  %v1097_v31 = vshrl.u32 %v830_v50, 16  ;;  %v1100_v42 = vshll.u32 %v830_v50, 16  ;;  %v1499_v1 = vrot.slane %v1497_v53, 5  ;;  %v1216_v35 = vld [vmem:[#allocation2 + $0x74] sm:$0x1] }
 0x164   : > { %v729_v0 = vpop.f32.mrf.mxu0  ;;  %v2883_v3 = vshll.u32 %v7246_v10, 16  ;;  %v1095_v61 = vrot.slane %v7276_v15, 4  ;;  %v1494_v7 = vor.u32 %v1493_v59, %v1490_v51  ;;  %v1265_v52 = vld [vmem:[#allocation2 + $0xc8] sm:$0x1]  ;;  %v1509_v9 = vrot.slane %v1507_v25, 5 }
 0x165   : > { %v975_v4 = vor.u32 %v973_v58, %v7297_v54  ;;  %2422 = vmatmul.bf16.gmra.mxu1 %v2129_v57  ;;  %v784_v6 = vmax.f32 %v729_v0, 0.0  ;;  %v1099_v8 = vrot.slane %v1097_v31, 7  ;;  %v1504_v5 = vor.u32 %v1503_v55, %v1499_v1  ;;  %v7319_v59 = vld [vmem:[#allocation2 + $0x10] sm:$0xf] }
 0x166   : > { %v1495_v14 = vrot.slane %v1494_v7, 4  ;;  %v1512_v19 = vshrl.u32 %v1284_v2, 16  ;;  %v1515_v27 = vshll.u32 %v1284_v2, 16  ;;  %v5734_v20 = vrot.slane %v1903_v11, 9 }
 0x167   : > { %v1213_v12 = vsel %vm6992_vm12, %v975_v4, %v1212_v56  ;;  %v816_v13 = vpack.c.bf16 %v784_v6, %v784_v6  ;;  %v6257_v16 = vld [vmem:[#allocation2 + $0x60] sm:$0xff]  ;;  %v1102_v15 = vor.u32 %v1100_v42, %v1099_v8  ;;  %v1104_v22 = vrot.slane %v1099_v8, 4  ;;  %v6311_v4 = vld [vmem:[#allocation8 + $0xf0] sm:$0xff] }
 0x168   : > { %v1285_v18 = vld [vmem:[#allocation2 + $0x64] sm:$0xf]  ;;  %1214 = vst [vmem:[#allocation2 + $0x6c] sm:$0xf] %v1213_v12  ;;  %v1505_v24 = vrot.slane %v1504_v5, 4  ;;  %v1500_v41 = vsel %vm6985_vm10, %v1495_v14, %v1499_v1  ;;  %2701 = vmatmul.bf16.gmra.mxu3 %v6257_v16  ;;  %v976_v46 = vrot.slane %v7297_v54, 4  ;;  %2469 = vmatpush.bf16.msrb.mxu2 %v6311_v4 }
 0x169   : > { %v978_v30 = vshrl.u32 %v816_v13, 16  ;;  %v981_v33 = vshll.u32 %v816_v13, 16  ;;  %v1103_v34 = vsel %vm7005_vm14, %v1095_v61, %v1102_v15  ;;  %v1266_v17 = vsel %vm6949_vm2, %v1104_v22, %v1265_v52  ;;  %v1308_v23 = vld [vmem:[#allocation2 + $0x68] sm:$0x1]  ;;  %v7333_v52 = vpop.f32.mrf.mxu3 }
 0x16a   : > { %v1510_v37 = vsel %vm6985_vm10, %v1505_v24, %v1509_v9  ;;  %v1525_v25 = vshrl.u32 %v1285_v18, 16  ;;  %1264 = vst [vmem:[#allocation2 + $0xc4] sm:$0xf] %v1103_v34  ;;  %v1813_v38 = vunpack.c.l.b16 %v1500_v41  ;;  %v2004_v44 = vrot.slane %v1285_v18, 5  ;;  %v7335_v9 = vld [vmem:[#allocation2 + $0x14] sm:$0x1] }
 0x16b   : > { %v980_v36 = vrot.slane %v978_v30, 7  ;;  %v1814_v40 = vunpack.c.l.b16 %v1510_v37  ;;  %1267 = vst [vmem:[#allocation2 + $0xc8] sm:$0x1] %v1266_v17  ;;  %v1514_v45 = vrot.slane %v1512_v19, 4  ;;  %v1517_v47 = vrot.slane %v1515_v27, 5  ;;  %v7341_v19 = vpop.f32.mrf.mxu1 }
 0x16c   : > { %v1521_v48 = vshll.u32 %v1285_v18, 16  ;;  %v2005_v53 = vsel %vm6970_vm7, %v5734_v20, %v2004_v44  ;;  %v2006_v55 = vrot.slane %v2004_v44, 4  ;;  %v2007_v58 = vrot.slane %v1308_v23, 5  ;;  %v7331_v8 = vpop.f32.mrf.mxu0 }
 0x16d   : > { %v983_v49 = vor.u32 %v981_v33, %v980_v36  ;;  %v985_v50 = vrot.slane %v980_v36, 4  ;;  %v1838_v51 = vpack.c.b16 %v1814_v40, %v1813_v38  ;;  %v1518_v56 = vor.u32 %v1517_v47, %v1514_v45 }
 0x16e   : > { %v1523_v57 = vrot.slane %v1521_v48, 5  ;;  %v1531_v0 = vshll.u32 %v1308_v23, 16  ;;  %v1527_v31 = vrot.slane %v1525_v25, 4  ;;  %v2008_v42 = vsel %vm6970_vm7, %v2006_v55, %v2007_v58 }
 0x16f   : > { %v984_v60 = vsel %vm7005_vm14, %v976_v46, %v983_v49  ;;  %v1217_v54 = vsel %vm6949_vm2, %v985_v50, %v1216_v35  ;;  %2785 = vmatmul.bf16.gmra.mxu0 %v1838_v51  ;;  %v2106_v1 = vunpack.c.l.b16 %v2005_v53  ;;  %v2882_v2 = vrot.slane %v2880_v43, 4  ;;  %v1286_v12 = vld [vmem:[#allocation2 + $0x6c] sm:$0xf] }
 0x170   : > { %1215 = vst [vmem:[#allocation2 + $0x70] sm:$0xf] %v984_v60  ;;  %v2107_v61 = vunpack.c.l.b16 %v2008_v42  ;;  %v1528_v6 = vor.u32 %v1527_v31, %v1523_v57  ;;  %v2889_v63 = vshll.u32 %v7319_v59, 16  ;;  %v2893_v7 = vshrl.u32 %v7319_v59, 16  ;;  %v1904_v21 = vld [vmem:[#allocation2 + $0x6c] sm:$0xe] }
 0x171   : > { %1218 = vst [vmem:[#allocation2 + $0x74] sm:$0x1] %v1217_v54  ;;  %v1519_v5 = vrot.slane %v1518_v56, 4  ;;  %v2885_v11 = vrot.slane %v2883_v3, 5  ;;  %v1533_v14 = vrot.slane %v1531_v0, 5  ;;  %v2899_v10 = vshll.u32 %v7335_v9, 16 }
 0x172   : > { %v2130_v43 = vpack.c.b16 %v2107_v61, %v2106_v1  ;;  %v1529_v13 = vrot.slane %v1528_v6, 4  ;;  %v2891_v16 = vrot.slane %v2889_v63, 5  ;;  %v2895_v15 = vrot.slane %v2893_v7, 4  ;;  %v2834_v0 = vld [vmem:[#allocation2 + $0x18] sm:$0xf] }
 0x173   : > { %v1524_v18 = vsel %vm6985_vm10, %v1519_v5, %v1523_v57  ;;  %v1536_v3 = vshrl.u32 %v1286_v12, 16  ;;  %v1539_v24 = vshll.u32 %v1286_v12, 16  ;;  %v5735_v20 = vrot.slane %v1904_v21, 9  ;;  %v2835_v31 = vld [vmem:[#allocation2 + $0x1c] sm:$0xf]  ;;  %v6310_v12 = vld [vmem:[#allocation8 + $0xe8] sm:$0xff] }
 0x174   : > { %v1534_v22 = vsel %vm6985_vm10, %v1529_v13, %v1533_v14  ;;  %v2896_v27 = vor.u32 %v2895_v15, %v2891_v16  ;;  %v2886_v35 = vor.u32 %v2885_v11, %v2882_v2  ;;  %v1815_v34 = vunpack.c.l.b16 %v1524_v18  ;;  %v7348_v51 = vpop.f32.mrf.mxu0  ;;  %v1289_v61 = vld [vmem:[#allocation2 + $0x7c] sm:$0xf]  ;;  %v7360_v5 = vld [vmem:[#allocation2 + $0x80] sm:$0x1]  ;;  %2470 = vmatpush.bf16.msrb.mxu2 %v6310_v12 }
 0x175   : > { %2427 = vmatmul.bf16.gmra.mxu1 %v2130_v43  ;;  %v1816_v30 = vunpack.c.l.b16 %v1534_v22  ;;  %v2901_v38 = vrot.slane %v2899_v10, 5  ;;  %v1538_v40 = vrot.slane %v1536_v3, 4  ;;  %v1541_v23 = vrot.slane %v1539_v24, 5  ;;  %v1905_v43 = vld [vmem:[#allocation2 + $0x78] sm:$0xe] }
 0x176   : > { %v2897_v36 = vrot.slane %v2896_v27, 4  ;;  %v2887_v58 = vrot.slane %v2886_v35, 4  ;;  %v2018_v11 = vrot.slane %v1289_v61, 5  ;;  %v2904_v13 = vshrl.u32 %v2834_v0, 16 }
 0x177   : > { %v6258_v33 = vld [vmem:[#allocation2 + $0x6c] sm:$0xff]  ;;  %v1839_v49 = vpack.c.b16 %v1816_v30, %v1815_v34  ;;  %v1542_v4 = vor.u32 %v1541_v23, %v1538_v40  ;;  %v2907_v14 = vshll.u32 %v2834_v0, 16  ;;  %v2913_v18 = vshll.u32 %v2835_v31, 16  ;;  %v2838_v0 = vld [vmem:[#allocation2 + $0x28] sm:$0xf] }
 0x178   : > { %v1287_v41 = vld [vmem:[#allocation2 + $0x70] sm:$0xf]  ;;  %v1309_v17 = vld [vmem:[#allocation2 + $0x74] sm:$0x1]  ;;  %2706 = vmatmul.bf16.gmra.mxu3 %v6258_v33  ;;  %v2902_v56 = vsel %vm6985_vm10, %v2897_v36, %v2901_v38  ;;  %v2892_v2 = vsel %vm6985_vm10, %v2887_v58, %v2891_v16  ;;  %v2917_v21 = vshrl.u32 %v2835_v31, 16  ;;  %v5736_v30 = vrot.slane %v1905_v43, 9 }
 0x179   : > { %v1549_v37 = vshrl.u32 %v1287_v41, 16  ;;  %v2011_v25 = vrot.slane %v1287_v41, 5  ;;  %v1545_v44 = vshll.u32 %v1287_v41, 16  ;;  %v2014_v47 = vrot.slane %v1309_v17, 5  ;;  %v2836_v16 = vld [vmem:[#allocation2 + $0x20] sm:$0x1] }
 0x17a   : > { %v1555_v1 = vshll.u32 %v1309_v17, 16  ;;  %v3440_v63 = vunpack.c.l.b16 %v2902_v56  ;;  %v3439_v15 = vunpack.c.l.b16 %v2892_v2  ;;  %v1543_v22 = vrot.slane %v1542_v4, 4 }
 0x17b   : > { %v2012_v46 = vsel %vm6970_vm7, %v5735_v20, %v2011_v25  ;;  %v2013_v45 = vrot.slane %v2011_v25, 4  ;;  %v1551_v48 = vrot.slane %v1549_v37, 4  ;;  %v1547_v50 = vrot.slane %v1545_v44, 5  ;;  %v7350_v53 = vpop.f32.mrf.mxu3  ;;  %v1288_v20 = vld [vmem:[#allocation2 + $0x78] sm:$0xf] }
 0x17c   : > { %v2108_v57 = vunpack.c.l.b16 %v2012_v46  ;;  %v1557_v10 = vrot.slane %v1555_v1, 5  ;;  %v7362_v3 = vrot.slane %v2913_v18, 5  ;;  %v2919_v24 = vrot.slane %v2917_v21, 4 }
 0x17d   : > { %v2015_v55 = vsel %vm6970_vm7, %v2013_v45, %v2014_v47  ;;  %v1552_v54 = vor.u32 %v1551_v48, %v1547_v50  ;;  %v3471_v27 = vpack.c.b16 %v3440_v63, %v3439_v15  ;;  %v2020_v33 = vrot.slane %v2018_v11, 4 }
 0x17e   : > { %v2109_v60 = vunpack.c.l.b16 %v2015_v55  ;;  %v2021_v41 = vrot.slane %v7360_v5, 5  ;;  %v2906_v17 = vrot.slane %v2904_v13, 4  ;;  %v2909_v37 = vrot.slane %v2907_v14, 5  ;;  %v2837_v13 = vld [vmem:[#allocation2 + $0x24] sm:$0xf] }
 0x17f   : > { %v7356_v42 = vpop.f32.mrf.mxu1  ;;  %2790 = vmatmul.bf16.gmra.mxu0 %v1839_v49  ;;  %v1553_v7 = vrot.slane %v1552_v54, 4  ;;  %v2920_v25 = vor.u32 %v2919_v24, %v7362_v3  ;;  %v1573_v36 = vshrl.u32 %v1289_v61, 16  ;;  %v2923_v38 = vshll.u32 %v2836_v16, 16  ;;  %v6259_v49 = vld [vmem:[#allocation2 + $0x78] sm:$0xff] }
 0x180   : > { %v2131_v6 = vpack.c.b16 %v2109_v60, %v2108_v57  ;;  %v1548_v23 = vsel %vm6985_vm10, %v1543_v22, %v1547_v50  ;;  %v1560_v46 = vshrl.u32 %v1288_v20, 16  ;;  %v1563_v45 = vshll.u32 %v1288_v20, 16 }
 0x181   : > { %v1558_v34 = vsel %vm6985_vm10, %v1553_v7, %v1557_v10  ;;  %v1569_v47 = vshll.u32 %v1289_v61, 16  ;;  %v2019_v55 = vsel %vm6970_vm7, %v5736_v30, %v2018_v11  ;;  %v2022_v58 = vsel %vm6970_vm7, %v2020_v33, %v2021_v41  ;;  %v1291_v10 = vld [vmem:[#allocation2 + $0x88] sm:$0xf]  ;;  %v7392_v30 = vld [vmem:[#allocation2 + $0x8c] sm:$0x1] }
 0x182   : > { %2432 = vmatmul.bf16.vlgmr.msra.gmra.mxu2 %v2131_v6  ;;  %v1818_v48 = vunpack.c.l.b16 %v1558_v34  ;;  %v2910_v56 = vor.u32 %v2909_v37, %v2906_v17  ;;  %v2921_v57 = vrot.slane %v2920_v25, 4  ;;  %v1817_v60 = vunpack.c.l.b16 %v1548_v23  ;;  %v6309_v25 = vld [vmem:[#allocation8 + $0xe0] sm:$0xff]  ;;  %v1290_v23 = vld [vmem:[#allocation2 + $0x84] sm:$0xf] }
 0x183   : > { %v7365_v35 = vpop.f32.mrf.mxu3  ;;  %v2925_v54 = vrot.slane %v2923_v38, 5  ;;  %v1562_v50 = vrot.slane %v1560_v46, 4  ;;  %v1565_v31 = vrot.slane %v1563_v45, 5  ;;  %v1571_v1 = vrot.slane %v1569_v47, 5  ;;  %2471 = vmatpush.bf16.msrb.mxu2 %v6309_v25 }
 0x184   : > { %v1575_v2 = vrot.slane %v1573_v36, 4  ;;  %v1840_v4 = vpack.c.b16 %v1818_v48, %v1817_v60  ;;  %v2110_v61 = vunpack.c.l.b16 %v2019_v55  ;;  %v2111_v6 = vunpack.c.l.b16 %v2022_v58  ;;  %v2839_v48 = vld [vmem:[#allocation2 + $0x2c] sm:$0x1] }
 0x185   : > { %3704 = vmatmul.bf16.vlgmr.msrb.gmra.mxu1 %v3471_v27  ;;  %v7370_v40 = vpop.f32.mrf.mxu0  ;;  %v2911_v7 = vrot.slane %v2910_v56, 4  ;;  %v2926_v11 = vsel %vm6985_vm10, %v2921_v57, %v2925_v54  ;;  %v2937_v12 = vshll.u32 %v2838_v0, 16  ;;  %v1579_v43 = vshll.u32 %v7360_v5, 16  ;;  %v1906_v5 = vld [vmem:[#allocation2 + $0x84] sm:$0xe] }
 0x186   : > { %v1566_v15 = vor.u32 %v1565_v31, %v1562_v50  ;;  %v1576_v22 = vor.u32 %v1575_v2, %v1571_v1  ;;  %v2941_v16 = vshrl.u32 %v2838_v0, 16  ;;  %v2132_v24 = vpack.c.b16 %v2111_v6, %v2110_v61 }
 0x187   : > { %v7374_v44 = vpop.f32.mrf.mxu1  ;;  %v2916_v21 = vsel %vm6985_vm10, %v2911_v7, %v7362_v3  ;;  %v3442_v27 = vunpack.c.l.b16 %v2926_v11  ;;  %v2025_v33 = vrot.slane %v1291_v10, 5  ;;  %v2928_v41 = vshrl.u32 %v2837_v13, 16  ;;  %v6260_v7 = vld [vmem:[#allocation2 + $0x84] sm:$0xff] }
 0x188   : > { %2711 = vmatmul.bf16.gmra.mxu3 %v6259_v49  ;;  %v2931_v20 = vshll.u32 %v2837_v13, 16  ;;  %v7394_v34 = vrot.slane %v2937_v12, 5  ;;  %v2943_v17 = vrot.slane %v2941_v16, 4  ;;  %v3441_v37 = vunpack.c.l.b16 %v2916_v21  ;;  %v2841_v16 = vld [vmem:[#allocation2 + $0x34] sm:$0xf] }
 0x189   : > { %v1567_v3 = vrot.slane %v1566_v15, 4  ;;  %v1577_v36 = vrot.slane %v1576_v22, 4  ;;  %v1581_v38 = vrot.slane %v1579_v43, 5  ;;  %v5737_v45 = vrot.slane %v1906_v5, 9 }
 0x18a   : > { %v3472_v46 = vpack.c.b16 %v3442_v27, %v3441_v37  ;;  %v2028_v47 = vrot.slane %v7392_v30, 5  ;;  %v2027_v55 = vrot.slane %v2025_v33, 4  ;;  %v2930_v58 = vrot.slane %v2928_v41, 4 }
 0x18b   : > { %v7380_v63 = vpop.f32.mrf.mxu3  ;;  %v2933_v56 = vrot.slane %v2931_v20, 5  ;;  %v2944_v57 = vor.u32 %v2943_v17, %v7394_v34  ;;  %v1597_v60 = vshrl.u32 %v1291_v10, 16  ;;  %v1584_v54 = vshrl.u32 %v1290_v23, 16 }
 0x18c   : > { %8620 = vst [vmem:[#allocation19_spill] sm:$0xff] %v7380_v63  ;;  %v1587_v0 = vshll.u32 %v1290_v23, 16  ;;  %v1572_v31 = vsel %vm6985_vm10, %v1567_v3, %v1571_v1  ;;  %v1582_v2 = vsel %vm6985_vm10, %v1577_v36, %v1581_v38  ;;  %v2947_v61 = vshll.u32 %v2839_v48, 16  ;;  %v2840_v38 = vld [vmem:[#allocation2 + $0x30] sm:$0xf] }
 0x18d   : > { %v7385_v14 = vpop.f32.mrf.mxu0  ;;  %v1593_v6 = vshll.u32 %v1291_v10, 16  ;;  %v2026_v11 = vsel %vm6970_vm7, %v5737_v45, %v2025_v33  ;;  %v2029_v12 = vsel %vm6970_vm7, %v2027_v55, %v2028_v47  ;;  %v2934_v43 = vor.u32 %v2933_v56, %v2930_v58  ;;  %v1293_v47 = vld [vmem:[#allocation2 + $0x94] sm:$0xf]  ;;  %v3929_v63 = vld [vmem:[#allocation2 + $0x9c] sm:$0xf] }
 0x18e   : > { %8621 = vst [vmem:[#allocation20_spill] sm:$0xff] %v7385_v14  ;;  %v2945_v13 = vrot.slane %v2944_v57, 4  ;;  %v1819_v21 = vunpack.c.l.b16 %v1572_v31  ;;  %v1820_v15 = vunpack.c.l.b16 %v1582_v2  ;;  %v1586_v1 = vrot.slane %v1584_v54, 4  ;;  %v7424_v57 = vld [vmem:[#allocation2 + $0x98] sm:$0x1]  ;;  %v6308_v54 = vld [vmem:[#allocation8 + $0xd8] sm:$0xff] }
 0x18f   : > { %v7387_v18 = vpop.f32.mrf.mxu1  ;;  %2795 = vmatmul.bf16.gmra.mxu0 %v1840_v4  ;;  %v1589_v22 = vrot.slane %v1587_v0, 5  ;;  %v1595_v27 = vrot.slane %v1593_v6, 5  ;;  %v1599_v5 = vrot.slane %v1597_v60, 4  ;;  %v2112_v41 = vunpack.c.l.b16 %v2026_v11  ;;  %v1907_v0 = vld [vmem:[#allocation2 + $0x90] sm:$0xe]  ;;  %2472 = vmatpush.bf16.msrb.mxu2 %v6308_v54 }
 0x190   : > { %8622 = vst [vmem:[#allocation21_spill] sm:$0xff] %v7387_v18  ;;  %v2113_v10 = vunpack.c.l.b16 %v2029_v12  ;;  %v2935_v17 = vrot.slane %v2934_v43, 4  ;;  %v2961_v37 = vshll.u32 %v2841_v16, 16  ;;  %v2965_v25 = vshrl.u32 %v2841_v16, 16 }
 0x191   : > { %v1841_v3 = vpack.c.b16 %v1820_v15, %v1819_v21  ;;  %v1590_v36 = vor.u32 %v1589_v22, %v1586_v1  ;;  %v1603_v23 = vshll.u32 %v7392_v30, 16  ;;  %v1600_v45 = vor.u32 %v1599_v5, %v1595_v27  ;;  %v2842_v21 = vld [vmem:[#allocation2 + $0x38] sm:$0x1]  ;;  %v1292_v15 = vld [vmem:[#allocation2 + $0x90] sm:$0xf] }
 0x192   : > { %2437 = vmatmul.bf16.gmra.mxu2 %v2132_v24  ;;  %v2949_v24 = vrot.slane %v2947_v61, 5  ;;  %v2133_v58 = vpack.c.b16 %v2113_v10, %v2112_v41  ;;  %v2032_v60 = vrot.slane %v1293_v47, 5  ;;  %v2952_v31 = vshrl.u32 %v2840_v38, 16 }
 0x193   : > { %v7397_v49 = vpop.f32.mrf.mxu3  ;;  %v2955_v30 = vshll.u32 %v2840_v38, 16  ;;  %v7426_v2 = vrot.slane %v2961_v37, 5  ;;  %v2967_v61 = vrot.slane %v2965_v25, 4  ;;  %v1591_v6 = vrot.slane %v1590_v36, 4  ;;  %v6261_v38 = vld [vmem:[#allocation2 + $0x90] sm:$0xff] }
 0x194   : > { %8623 = vst [vmem:[#allocation22_spill] sm:$0xff] %v7397_v49  ;;  %v2950_v33 = vsel %vm6985_vm10, %v2945_v13, %v2949_v24  ;;  %v1605_v11 = vrot.slane %v1603_v23, 5  ;;  %v5738_v43 = vrot.slane %v1907_v0, 9  ;;  %v2035_v13 = vrot.slane %v7424_v57, 5 }
 0x195   : > { %3709 = vmatmul.bf16.gmra.mxu1 %v3472_v46  ;;  %v2940_v46 = vsel %vm6985_vm10, %v2935_v17, %v7394_v34  ;;  %v3444_v56 = vunpack.c.l.b16 %v2950_v33  ;;  %v2034_v22 = vrot.slane %v2032_v60, 4  ;;  %v2954_v16 = vrot.slane %v2952_v31, 4 }
 0x196   : > { %v7400_v50 = vpop.f32.mrf.mxu0  ;;  %v3443_v34 = vunpack.c.l.b16 %v2940_v46  ;;  %v2957_v24 = vrot.slane %v2955_v30, 5  ;;  %v2968_v5 = vor.u32 %v2967_v61, %v7426_v2  ;;  %v1596_v41 = vsel %vm6985_vm10, %v1591_v6, %v1595_v27  ;;  %v2844_v27 = vld [vmem:[#allocation2 + $0x40] sm:$0xf] }
 0x197   : > { %8624 = vst [vmem:[#allocation23_spill] sm:$0xff] %v7400_v50  ;;  %v7406_v4 = vpop.f32.mrf.mxu1  ;;  %v1621_v10 = vshrl.u32 %v1293_v47, 16  ;;  %v1617_v17 = vshll.u32 %v1293_v47, 16  ;;  %v2971_v37 = vshll.u32 %v2842_v21, 16  ;;  %v1608_v25 = vshrl.u32 %v1292_v15, 16 }
 0x198   : > { %8625 = vst [vmem:[#allocation24_spill] sm:$0xff] %v7406_v4  ;;  %2716 = vmatmul.bf16.gmra.mxu3 %v6260_v7  ;;  %v1601_v7 = vrot.slane %v1600_v45, 4  ;;  %v3473_v12 = vpack.c.b16 %v3444_v56, %v3443_v34  ;;  %v2033_v23 = vsel %vm6970_vm7, %v5738_v43, %v2032_v60  ;;  %v2036_v46 = vsel %vm6970_vm7, %v2034_v22, %v2035_v13  ;;  %v2843_v60 = vld [vmem:[#allocation2 + $0x3c] sm:$0xf] }
 0x199   : > { %v2958_v45 = vor.u32 %v2957_v24, %v2954_v16  ;;  %v1821_v47 = vunpack.c.l.b16 %v1596_v41  ;;  %v7444_v0 = vrot.slane %v1617_v17, 5  ;;  %v1623_v31 = vrot.slane %v1621_v10, 4 }
 0x19a   : > { %v1606_v33 = vsel %vm6985_vm10, %v1601_v7, %v1605_v11  ;;  %v2973_v30 = vrot.slane %v2971_v37, 5  ;;  %v1610_v61 = vrot.slane %v1608_v25, 4  ;;  %v2114_v6 = vunpack.c.l.b16 %v2033_v23  ;;  %v1295_v37 = vld [vmem:[#allocation2 + $0xa0] sm:$0xf]  ;;  %v7459_v23 = vld [vmem:[#allocation2 + $0xa4] sm:$0x1] }
 0x19b   : > { %v7412_v20 = vpop.f32.mrf.mxu3  ;;  %v1822_v54 = vunpack.c.l.b16 %v1606_v33  ;;  %v2115_v7 = vunpack.c.l.b16 %v2036_v46  ;;  %v2985_v11 = vshll.u32 %v2844_v27, 16  ;;  %v2959_v43 = vrot.slane %v2958_v45, 4 }
 0x19c   : > { %8626 = vst [vmem:[#allocation25_spill] sm:$0xff] %v7412_v20  ;;  %v2989_v21 = vshrl.u32 %v2844_v27, 16  ;;  %v1627_v22 = vshll.u32 %v7424_v57, 16  ;;  %v1624_v16 = vor.u32 %v1623_v31, %v7444_v0  ;;  %v2976_v41 = vshrl.u32 %v2843_v60, 16  ;;  %v1908_v57 = vld [vmem:[#allocation2 + $0x9c] sm:$0xe] }
 0x19d   : > { %v2964_v24 = vsel %vm6985_vm10, %v2959_v43, %v7426_v2  ;;  %v2979_v10 = vshll.u32 %v2843_v60, 16  ;;  %v2134_v17 = vpack.c.b16 %v2115_v7, %v2114_v6  ;;  %v7455_v25 = vrot.slane %v2985_v11, 5  ;;  %v2845_v11 = vld [vmem:[#allocation2 + $0x44] sm:$0x1] }
 0x19e   : > { %v7420_v48 = vpop.f32.mrf.mxu0  ;;  %v2039_v46 = vrot.slane %v1295_v37, 5  ;;  %v2991_v45 = vrot.slane %v2989_v21, 4  ;;  %v3445_v2 = vunpack.c.l.b16 %v2964_v24  ;;  %v1625_v27 = vrot.slane %v1624_v16, 4 }
 0x19f   : > { %2800 = vmatmul.bf16.gmra.mxu0 %v1841_v3  ;;  %8627 = vst [vmem:[#allocation26_spill] sm:$0xff] %v7420_v48  ;;  %v1611_v3 = vshll.u32 %v1292_v15, 16  ;;  %v1842_v15 = vpack.c.b16 %v1822_v54, %v1821_v47  ;;  %v1629_v47 = vrot.slane %v1627_v22, 5  ;;  %v1294_v54 = vld [vmem:[#allocation2 + $0x9c] sm:$0xf]  ;;  %v5739_v7 = vrot.slane %v1908_v57, 9 }
 0x1a0   : > { %v7422_v55 = vpop.f32.mrf.mxu1  ;;  %v2042_v60 = vrot.slane %v7459_v23, 5  ;;  %v1641_v43 = vshll.u32 %v1295_v37, 16  ;;  %v2041_v21 = vrot.slane %v2039_v46, 4  ;;  %v1632_v24 = vshrl.u32 %v1294_v54, 16  ;;  %v6352_v22 = vld [vmem:[#allocation8 + $0x1b8] sm:$0xff] }
 0x1a1   : > { %8628 = vst [vmem:[#allocation27_spill] sm:$0xff] %v7422_v55  ;;  %v1613_v34 = vrot.slane %v1611_v3, 5  ;;  %v6307_v3 = vld [vmem:[#allocation8 + $0xd0] sm:$0xff]  ;;  %v1635_v16 = vshll.u32 %v1294_v54, 16  ;;  %4628 = vmatpush.bf16.msra.mxu3 %v6352_v22 }
 0x1a2   : > { %2442 = vmatmul.bf16.gmra.mxu2 %v2133_v58  ;;  %v2969_v58 = vrot.slane %v2968_v5, 4  ;;  %v7474_v57 = vrot.slane %v1641_v43, 5 }
 0x1a3   : > { %v7429_v1 = vpop.f32.mrf.mxu3  ;;  %v1614_v5 = vor.u32 %v1613_v34, %v1610_v61  ;;  %v2978_v61 = vrot.slane %v2976_v41, 4  ;;  %v2981_v34 = vrot.slane %v2979_v10, 5  ;;  %2473 = vmatpush.bf16.msrb.mxu2 %v6307_v3  ;;  %v1630_v41 = vsel %vm6985_vm10, %v1625_v27, %v1629_v47 }
 0x1a4   : > { %8629 = vst [vmem:[#allocation28_spill] sm:$0xff] %v7429_v1  ;;  %v2974_v13 = vsel %vm6985_vm10, %v2969_v58, %v2973_v30  ;;  %v1645_v30 = vshrl.u32 %v1295_v37, 16  ;;  %v2995_v10 = vshll.u32 %v2845_v11, 16  ;;  %v2040_v37 = vsel %vm6970_vm7, %v5739_v7, %v2039_v46  ;;  %v2846_v46 = vld [vmem:[#allocation2 + $0x48] sm:$0xf] }
 0x1a5   : > { %3714 = vmatmul.bf16.gmra.mxu1 %v3473_v12  ;;  %v3446_v33 = vunpack.c.l.b16 %v2974_v13  ;;  %v1615_v31 = vrot.slane %v1614_v5, 4  ;;  %v2982_v3 = vor.u32 %v2981_v34, %v2978_v61  ;;  %v1637_v27 = vrot.slane %v1635_v16, 5  ;;  %v6350_v16 = vld [vmem:[#allocation8 + $0x1a8] sm:$0xff] }
 0x1a6   : > { %v1824_v11 = vunpack.c.l.b16 %v1630_v41  ;;  %v2997_v39 = vrot.slane %v2995_v10, 5  ;;  %v2116_v7 = vunpack.c.l.b16 %v2040_v37  ;;  %v3000_v10 = vshrl.u32 %v2846_v46, 16 }
 0x1a7   : > { %v3474_v6 = vpack.c.b16 %v3446_v33, %v3445_v2  ;;  %v1620_v5 = vsel %vm6985_vm10, %v1615_v31, %v7444_v0  ;;  %v6262_v33 = vld [vmem:[#allocation2 + $0x9c] sm:$0xff]  ;;  %v2847_v2 = vld [vmem:[#allocation2 + $0x4c] sm:$0xf]  ;;  %v2043_v0 = vsel %vm6970_vm7, %v2041_v21, %v2042_v60  ;;  %v2983_v21 = vrot.slane %v2982_v3, 4 }
 0x1a8   : > { %v7436_v36 = vpop.f32.mrf.mxu1  ;;  %2721 = vmatmul.bf16.gmra.mxu3 %v6261_v38  ;;  %v1823_v47 = vunpack.c.l.b16 %v1620_v5  ;;  %v3009_v61 = vshll.u32 %v2847_v2, 16  ;;  %v3013_v34 = vshrl.u32 %v2847_v2, 16  ;;  %v2117_v43 = vunpack.c.l.b16 %v2043_v0  ;;  %v6306_v5 = vld [vmem:[#allocation8 + $0xc8] sm:$0xff]  ;;  %v1297_v0 = vld [vmem:[#allocation2 + $0xac] sm:$0xf] }
 0x1a9   : > { %8630 = vst [vmem:[#allocation29_spill] sm:$0xff] %v7436_v36  ;;  %v7442_v56 = vpop.f32.mrf.mxu0  ;;  %2474 = vmatpush.bf16.msrb.mxu2 %v6306_v5 }
 0x1aa   : > { %8631 = vst [vmem:[#allocation30_spill] sm:$0xff] %v7442_v56  ;;  %v1843_v41 = vpack.c.b16 %v1824_v11, %v1823_v47  ;;  %v3015_v37 = vrot.slane %v3013_v34, 4  ;;  %v2135_v3 = vpack.c.b16 %v2117_v43, %v2116_v7  ;;  %v2046_v11 = vrot.slane %v1297_v0, 5  ;;  %v1296_v43 = vld [vmem:[#allocation2 + $0xa8] sm:$0xf] }
 0x1ab   : > { %v7446_v12 = vpop.f32.mrf.mxu3 }
 0x1ac   : > { %8632 = vst [vmem:[#allocation31_spill] sm:$0xff] %v7446_v12 }
 0x1af   : > { %2805 = vmatmul.bf16.gmra.mxu0 %v1842_v15  ;;  %v2992_v15 = vor.u32 %v2991_v45, %v7455_v25  ;;  %v1647_v45 = vrot.slane %v1645_v30, 4  ;;  %v1651_v30 = vshll.u32 %v7459_v23, 16  ;;  %v3003_v23 = vshll.u32 %v2846_v46, 16  ;;  %v7495_v46 = vld [vmem:[#allocation2 + $0xb0] sm:$0x1] }
 0x1b0   : > { %v7457_v38 = vpop.f32.mrf.mxu1 }
 0x1b1   : > { %8633 = vst [vmem:[#allocation32_spill] sm:$0xff] %v7457_v38  ;;  %v7461_v58 = vpop.f32.mrf.mxu0  ;;  %v2993_v31 = vrot.slane %v2992_v15, 4  ;;  %v1648_v28 = vor.u32 %v1647_v45, %v7474_v57  ;;  %v3005_v7 = vrot.slane %v3003_v23, 5  ;;  %v6359_v23 = vld [vmem:[#allocation8 + $0x1f0] sm:$0xff] }
 0x1b2   : > { %8634 = vst [vmem:[#allocation33_spill] sm:$0xff] %v7461_v58  ;;  %2447 = vmatmul.bf16.gmra.mxu2 %v2134_v17  ;;  %v6351_v17 = vld [vmem:[#allocation8 + $0x1b0] sm:$0xff] }
 0x1b3   : > { %v7464_v13 = vpop.f32.mrf.mxu3  ;;  %4629 = vmatpush.bf16.msra.mxu3 %v6351_v17  ;;  %v2998_v15 = vsel %vm6985_vm10, %v2993_v31, %v2997_v39  ;;  %v2988_v17 = vsel %vm6985_vm10, %v2983_v21, %v7455_v25  ;;  %v1649_v2 = vrot.slane %v1648_v28, 4  ;;  %v1653_v39 = vrot.slane %v1651_v30, 5  ;;  %v6360_v31 = vld [vmem:[#allocation8 + $0x1f8] sm:$0xff] }
 0x1b4   : > { %8635 = vst [vmem:[#allocation34_spill] sm:$0xff] %v7464_v13  ;;  %v3448_v45 = vunpack.c.l.b16 %v2998_v15  ;;  %v3447_v25 = vunpack.c.l.b16 %v2988_v17  ;;  %4717 = vmatpush.bf16.msra.mxu0 %v6360_v31  ;;  %v3002_v21 = vrot.slane %v3000_v10, 4  ;;  %v2848_v15 = vld [vmem:[#allocation2 + $0x50] sm:$0x1]  ;;  %v2048_v17 = vrot.slane %v2046_v11, 4 }
 0x1b5   : > { %3719 = vmatmul.bf16.gmra.mxu1 %v3474_v6  ;;  %v1634_v6 = vrot.slane %v1632_v24, 4  ;;  %v1654_v30 = vsel %vm6985_vm10, %v1649_v2, %v1653_v39  ;;  %v2049_v10 = vrot.slane %v7495_v46, 5  ;;  %v1656_v31 = vshrl.u32 %v1296_v43, 16 }
 0x1b6   : > { %v3475_v28 = vpack.c.b16 %v3448_v45, %v3447_v25  ;;  %v1669_v45 = vshrl.u32 %v1297_v0, 16  ;;  %v1665_v2 = vshll.u32 %v1297_v0, 16  ;;  %v3006_v39 = vor.u32 %v3005_v7, %v3002_v21 }
 0x1b7   : > { %v1638_v24 = vor.u32 %v1637_v27, %v1634_v6  ;;  %4630 = vmatpush.bf16.msra.mxu3 %v6350_v16  ;;  %v6349_v6 = vld [vmem:[#allocation8 + $0x1a0] sm:$0xff]  ;;  %v3019_v25 = vshll.u32 %v2848_v15, 16  ;;  %v1658_v0 = vrot.slane %v1656_v31, 4 }
 0x1b8   : > { %v7476_v54 = vpop.f32.mrf.mxu1  ;;  %2726 = vmatmul.bf16.gmra.mxu3 %v6262_v33  ;;  %v7491_v33 = vrot.slane %v3009_v61, 5  ;;  %v1909_v61 = vld [vmem:[#allocation2 + $0xa8] sm:$0xe]  ;;  %4718 = vmatpush.bf16.msra.mxu0 %v6359_v23  ;;  %v7514_v7 = vrot.slane %v1665_v2, 5  ;;  %v1671_v15 = vrot.slane %v1669_v45, 4  ;;  %v6357_v31 = vld [vmem:[#allocation8 + $0x1e0] sm:$0xff] }
 0x1b9   : > { %8636 = vst [vmem:[#allocation35_spill] sm:$0xff] %v7476_v54  ;;  %v1639_v47 = vrot.slane %v1638_v24, 4  ;;  %v2850_v23 = vld [vmem:[#allocation2 + $0x58] sm:$0xf]  ;;  %v6346_v2 = vld [vmem:[#allocation8 + $0x188] sm:$0xff] }
 0x1ba   : > { %v7480_v22 = vpop.f32.mrf.mxu0  ;;  %v3016_v24 = vor.u32 %v3015_v37, %v7491_v33  ;;  %v6358_v37 = vld [vmem:[#allocation8 + $0x1e8] sm:$0xff]  ;;  %v3037_v45 = vshrl.u32 %v2850_v23, 16 }
 0x1bb   : > { %8637 = vst [vmem:[#allocation36_spill] sm:$0xff] %v7480_v22  ;;  %v7484_v60 = vpop.f32.mrf.mxu3  ;;  %4631 = vmatpush.bf16.msra.mxu3 %v6349_v6  ;;  %v1644_v5 = vsel %vm6985_vm10, %v1639_v47, %v7474_v57  ;;  %v1659_v6 = vshll.u32 %v1296_v43, 16  ;;  %v1826_v47 = vunpack.c.l.b16 %v1654_v30  ;;  %v2849_v43 = vld [vmem:[#allocation2 + $0x54] sm:$0xf]  ;;  %v2856_v22 = vld [vmem:[#allocation2 + $0x70] sm:$0xf] }
 0x1bc   : > { %8638 = vst [vmem:[#allocation37_spill] sm:$0xff] %v7484_v60  ;;  %v6263_v60 = vld [vmem:[#allocation2 + $0xa8] sm:$0xff]  ;;  %v1825_v57 = vunpack.c.l.b16 %v1644_v5  ;;  %4719 = vmatpush.bf16.msra.mxu0 %v6358_v37  ;;  %v3027_v13 = vshll.u32 %v2849_v43, 16 }
 0x1bd   : > { %v1661_v21 = vrot.slane %v1659_v6, 5  ;;  %v6305_v6 = vld [vmem:[#allocation8 + $0xc0] sm:$0xff] }
 0x1be   : > { %2475 = vmatpush.bf16.msrb.mxu2 %v6305_v6 }
 0x1bf   : > { %2810 = vmatmul.bf16.gmra.mxu0 %v1843_v41  ;;  %v5740_v41 = vrot.slane %v1909_v61, 9 }
 0x1c0   : > { %v7493_v27 = vpop.f32.mrf.mxu1  ;;  %4720 = vmatpush.bf16.msra.mxu0 %v6357_v31  ;;  %v1910_v31 = vld [vmem:[#allocation2 + $0xb4] sm:$0xe] }
 0x1c1   : > { %8639 = vst [vmem:[#allocation38_spill] sm:$0xff] %v7493_v27  ;;  %v2047_v27 = vsel %vm6970_vm7, %v5740_v41, %v2046_v11 }
 0x1c2   : > { %2452 = vmatmul.bf16.gmra.mxu2 %v2135_v3  ;;  %v7497_v34 = vpop.f32.mrf.mxu0  ;;  %v6348_v3 = vld [vmem:[#allocation8 + $0x198] sm:$0xff]  ;;  %v2118_v30 = vunpack.c.l.b16 %v2047_v27  ;;  %v1672_v27 = vor.u32 %v1671_v15, %v7514_v7 }
 0x1c3   : > { %8640 = vst [vmem:[#allocation39_spill] sm:$0xff] %v7497_v34  ;;  %v7502_v16 = vpop.f32.mrf.mxu3  ;;  %4632 = vmatpush.bf16.msra.mxu3 %v6348_v3  ;;  %v3017_v34 = vrot.slane %v3016_v24, 4  ;;  %v3007_v3 = vrot.slane %v3006_v39, 4  ;;  %v3021_v24 = vrot.slane %v3019_v25, 5  ;;  %v1844_v39 = vpack.c.b16 %v1826_v47, %v1825_v57 }
 0x1c4   : > { %8641 = vst [vmem:[#allocation40_spill] sm:$0xff] %v7502_v16  ;;  %v6347_v16 = vld [vmem:[#allocation8 + $0x190] sm:$0xff] }
 0x1c5   : > { %3724 = vmatmul.bf16.gmra.mxu1 %v3475_v28  ;;  %v2050_v28 = vsel %vm6970_vm7, %v2048_v17, %v2049_v10  ;;  %v3022_v17 = vsel %vm6985_vm10, %v3017_v34, %v3021_v24  ;;  %v3033_v10 = vshll.u32 %v2850_v23, 16  ;;  %v3012_v25 = vsel %vm6985_vm10, %v3007_v3, %v7491_v33  ;;  %v6356_v23 = vld [vmem:[#allocation8 + $0x1d8] sm:$0xff]  ;;  %v6345_v24 = vld [vmem:[#allocation8 + $0x180] sm:$0xff] }
 0x1c6   : > { %v2119_v5 = vunpack.c.l.b16 %v2050_v28  ;;  %v3450_v37 = vunpack.c.l.b16 %v3022_v17  ;;  %v1299_v28 = vld [vmem:[#allocation2 + $0xb8] sm:$0xf]  ;;  %v1673_v33 = vrot.slane %v1672_v27, 4  ;;  %v7529_v3 = vld [vmem:[#allocation2 + $0xbc] sm:$0x1]  ;;  %4721 = vmatpush.bf16.msra.mxu0 %v6356_v23  ;;  %v6328_v23 = vld [vmem:[#allocation8 + $0x178] sm:$0xff] }
 0x1c7   : > { %4633 = vmatpush.bf16.msra.mxu3 %v6347_v16  ;;  %v1662_v16 = vor.u32 %v1661_v21, %v1658_v0  ;;  %v2053_v57 = vrot.slane %v1299_v28, 5  ;;  %v7527_v47 = vrot.slane %v3033_v10, 5  ;;  %v3039_v0 = vrot.slane %v3037_v45, 4  ;;  %v1298_v17 = vld [vmem:[#allocation2 + $0xb4] sm:$0xf]  ;;  %3785 = vmatpush.bf16.msra.mxu2 %v6328_v23 }
 0x1c8   : > { %v7508_v61 = vpop.f32.mrf.mxu1  ;;  %2731 = vmatmul.bf16.gmra.mxu3 %v6263_v60  ;;  %v1675_v60 = vshll.u32 %v7495_v46, 16  ;;  %v2136_v46 = vpack.c.b16 %v2119_v5, %v2118_v30  ;;  %v3449_v21 = vunpack.c.l.b16 %v3012_v25  ;;  %v2851_v5 = vld [vmem:[#allocation2 + $0x5c] sm:$0x1]  ;;  %v5741_v45 = vrot.slane %v1910_v31, 9 }
 0x1c9   : > { %8642 = vst [vmem:[#allocation41_spill] sm:$0xff] %v7508_v61  ;;  %v3024_v61 = vshrl.u32 %v2849_v43, 16  ;;  %v3029_v43 = vrot.slane %v3027_v13, 5  ;;  %v1663_v15 = vrot.slane %v1662_v16, 4  ;;  %v2055_v6 = vrot.slane %v2053_v57, 4  ;;  %v6355_v16 = vld [vmem:[#allocation8 + $0x1d0] sm:$0xff] }
 0x1ca   : > { %v1683_v31 = vshll.u32 %v1298_v17, 16  ;;  %v1689_v13 = vshll.u32 %v1299_v28, 16  ;;  %4722 = vmatpush.bf16.msra.mxu0 %v6355_v16 }
 0x1cb   : > { %v7518_v41 = vpop.f32.mrf.mxu3  ;;  %v3026_v34 = vrot.slane %v3024_v61, 4  ;;  %4634 = vmatpush.bf16.msra.mxu3 %v6346_v2  ;;  %v3476_v61 = vpack.c.b16 %v3450_v37, %v3449_v21  ;;  %v2056_v2 = vrot.slane %v7529_v3, 5  ;;  %v1668_v27 = vsel %vm6985_vm10, %v1663_v15, %v7514_v7 }
 0x1cc   : > { %v7516_v11 = vpop.f32.mrf.mxu0  ;;  %8644 = vst [vmem:[#allocation43_spill] sm:$0xff] %v7518_v41  ;;  %v1677_v41 = vrot.slane %v1675_v60, 5  ;;  %v3043_v37 = vshll.u32 %v2851_v5, 16  ;;  %v1680_v21 = vshrl.u32 %v1298_v17, 16  ;;  %v2054_v7 = vsel %vm6970_vm7, %v5741_v45, %v2053_v57  ;;  %v7551_v17 = vld [vmem:[#allocation2 + $0x1c] sm:$0xf] }
 0x1cd   : > { %8643 = vst [vmem:[#allocation42_spill] sm:$0xff] %v7516_v11  ;;  %v1827_v15 = vunpack.c.l.b16 %v1668_v27  ;;  %v2852_v57 = vld [vmem:[#allocation2 + $0x60] sm:$0xf]  ;;  %v2120_v45 = vunpack.c.l.b16 %v2054_v7  ;;  %v3332_v27 = vrot.slane %v7335_v9, 5  ;;  %v4888_v7 = vrot.slane %v7551_v17, 5 }
 0x1ce   : > { %v1678_v25 = vsel %vm6985_vm10, %v1673_v33, %v1677_v41  ;;  %v2057_v41 = vsel %vm6970_vm7, %v2055_v6, %v2056_v2  ;;  %v1682_v23 = vrot.slane %v1680_v21, 4  ;;  %v3048_v21 = vshrl.u32 %v2852_v57, 16 }
 0x1cf   : > { %2815 = vmatmul.bf16.gmra.mxu0 %v1844_v39  ;;  %4635 = vmatpush.bf16.msra.mxu3 %v6345_v24  ;;  %v3040_v39 = vor.u32 %v3039_v0, %v7527_v47  ;;  %v1693_v24 = vshrl.u32 %v1299_v28, 16  ;;  %v8648_v0 = vrot.slane %v7319_v59, 5  ;;  %v1828_v33 = vunpack.c.l.b16 %v1678_v25 }
 0x1d0   : > { %v3045_v28 = vrot.slane %v3043_v37, 5  ;;  %v2121_v6 = vunpack.c.l.b16 %v2057_v41  ;;  %v6353_v37 = vld [vmem:[#allocation8 + $0x1c0] sm:$0xff] }
 0x1d1   : > { %v1695_v11 = vrot.slane %v1693_v24, 4  ;;  %v1699_v24 = vshll.u32 %v7529_v3, 16  ;;  %v7576_v3 = vld [vmem:[#allocation2 + $0x20] sm:$0x1] }
 0x1d2   : > { %2457 = vmatmul.bf16.gmra.mxu2 %v2136_v46  ;;  %v7531_v30 = vpop.f32.mrf.mxu1  ;;  %v3030_v46 = vor.u32 %v3029_v43, %v3026_v34  ;;  %v3041_v34 = vrot.slane %v3040_v39, 4  ;;  %v2853_v43 = vld [vmem:[#allocation2 + $0x64] sm:$0xf] }
 0x1d3   : > { %8645 = vst [vmem:[#allocation44_spill] sm:$0xff] %v7531_v30  ;;  %v7536_v10 = vpop.f32.mrf.mxu3  ;;  %v1685_v30 = vrot.slane %v1683_v31, 5  ;;  %v3057_v2 = vshll.u32 %v2853_v43, 16  ;;  %v3061_v39 = vshrl.u32 %v2853_v43, 16  ;;  %v3907_v31 = vld [vmem:[#allocation2 + $0x18] sm:$0xf] }
 0x1d4   : > { %v7534_v60 = vpop.f32.mrf.mxu0  ;;  %8647 = vst [vmem:[#allocation46_spill] sm:$0xff] %v7536_v10  ;;  %v6354_v10 = vld [vmem:[#allocation8 + $0x1c8] sm:$0xff]  ;;  %v3031_v5 = vrot.slane %v3030_v46, 4  ;;  %v3051_v43 = vshll.u32 %v2852_v57, 16  ;;  %v4890_v57 = vrot.slane %v4888_v7, 4 }
 0x1d5   : > { %8646 = vst [vmem:[#allocation45_spill] sm:$0xff] %v7534_v60  ;;  %3729 = vmatmul.bf16.gmra.mxu1 %v3476_v61  ;;  %v6264_v60 = vld [vmem:[#allocation2 + $0xb4] sm:$0xff]  ;;  %v3331_v61 = vrot.slane %v8648_v0, 4  ;;  %v7555_v0 = vrot.slane %v1689_v13, 5  ;;  %4723 = vmatpush.bf16.msra.mxu0 %v6354_v10  ;;  %v3046_v13 = vsel %vm6985_vm10, %v3041_v34, %v3045_v28  ;;  %v1845_v10 = vpack.c.b16 %v1828_v33, %v1827_v15 }
 0x1d6   : > { %v3036_v46 = vsel %vm6985_vm10, %v3031_v5, %v7527_v47  ;;  %v1686_v9 = vor.u32 %v1685_v30, %v1682_v23  ;;  %v2137_v47 = vpack.c.b16 %v2121_v6, %v2120_v45  ;;  %v3452_v34 = vunpack.c.l.b16 %v3046_v13  ;;  %v4838_v33 = vld [vmem:[#allocation2 + $0x18] sm:$0xe] }
 0x1d7   : > { %v1696_v41 = vor.u32 %v1695_v11, %v7555_v0  ;;  %v7574_v5 = vrot.slane %v3057_v2, 5  ;;  %v3063_v15 = vrot.slane %v3061_v39, 4  ;;  %v3956_v28 = vshrl.u32 %v3907_v31, 16 }
 0x1d8   : > { %2736 = vmatmul.bf16.gmra.mxu3 %v6264_v60  ;;  %v3451_v30 = vunpack.c.l.b16 %v3036_v46  ;;  %v1701_v23 = vrot.slane %v1699_v24, 5  ;;  %v3959_v11 = vshll.u32 %v3907_v31, 16  ;;  %v4891_v45 = vrot.slane %v7576_v3, 5 }
 0x1d9   : > { %4724 = vmatpush.bf16.msra.mxu0 %v6353_v37  ;;  %v3050_v2 = vrot.slane %v3048_v21, 4  ;;  %v3053_v39 = vrot.slane %v3051_v43, 5  ;;  %v3064_v13 = vor.u32 %v3063_v15, %v7574_v5  ;;  %v3965_v24 = vshll.u32 %v7551_v17, 16 }
 0x1da   : > { %v7553_v16 = vpop.f32.mrf.mxu1  ;;  %v3477_v6 = vpack.c.b16 %v3452_v34, %v3451_v30  ;;  %v3969_v31 = vshrl.u32 %v7551_v17, 16  ;;  %v4892_v21 = vsel %vm6970_vm7, %v4890_v57, %v4891_v45  ;;  %v4839_v34 = vld [vmem:[#allocation2 + $0x24] sm:$0xe] }
 0x1db   : > { %8649 = vst [vmem:[#allocation47_spill] sm:$0xff] %v7553_v16  ;;  %v7560_v25 = vpop.f32.mrf.mxu3  ;;  %v7582_v16 = vld [vmem:[#allocation2 + $0x28] sm:$0xf]  ;;  %v5015_v30 = vunpack.c.l.b16 %v4892_v21  ;;  %v7602_v45 = vrot.slane %v3965_v24, 5 }
 0x1dc   : > { %v7558_v60 = vpop.f32.mrf.mxu0  ;;  %8651 = vst [vmem:[#allocation49_spill] sm:$0xff] %v7560_v25  ;;  %v7572_v25 = vsel %vm6970_vm7, %v3331_v61, %v3332_v27  ;;  %v1697_v61 = vrot.slane %v1696_v41, 4  ;;  %v2854_v27 = vld [vmem:[#allocation2 + $0x68] sm:$0x1]  ;;  %v4895_v17 = vrot.slane %v7582_v16, 5 }
 0x1dd   : > { %8650 = vst [vmem:[#allocation48_spill] sm:$0xff] %v7558_v60  ;;  %v1687_v60 = vrot.slane %v1686_v9, 4  ;;  %v6368_v9 = vld [vmem:[#allocation9 + $0x38] sm:$0xff]  ;;  %v3067_v43 = vshll.u32 %v2854_v27, 16  ;;  %v3961_v27 = vrot.slane %v3959_v11, 5 }
 0x1de   : > { %5126 = vmatpush.bf16.msra.mxu1 %v6368_v9 }
 0x1df   : > { %2820 = vmatmul.bf16.gmra.mxu0 %v1845_v10  ;;  %v6142_v10 = vrot.slane %v4838_v33, 9  ;;  %v1692_v15 = vsel %vm6985_vm10, %v1687_v60, %v7555_v0  ;;  %v1702_v33 = vsel %vm6985_vm10, %v1697_v61, %v1701_v23  ;;  %v6143_v0 = vrot.slane %v4839_v34, 9  ;;  %v7604_v61 = vld [vmem:[#allocation2 + $0x34] sm:$0xf] }
 0x1e0   : > { %v1829_v60 = vunpack.c.l.b16 %v1692_v15  ;;  %v1830_v54 = vunpack.c.l.b16 %v1702_v33  ;;  %v3069_v23 = vrot.slane %v3067_v43, 5 }
 0x1e1   : > { %v4889_v41 = vsel %vm6970_vm7, %v6142_v10, %v4888_v7  ;;  %v3065_v7 = vrot.slane %v3064_v13, 4  ;;  %v3958_v10 = vrot.slane %v3956_v28, 4  ;;  %v4896_v28 = vsel %vm6970_vm7, %v6143_v0, %v4895_v17 }
 0x1e2   : > { %2462 = vmatmul.bf16.gmra.mxu2 %v2137_v47  ;;  %v7578_v37 = vpop.f32.mrf.mxu1  ;;  %v5014_v57 = vunpack.c.l.b16 %v4889_v41  ;;  %v3081_v41 = vshll.u32 %v2856_v22, 16 }
 0x1e3   : > { %8652 = vst [vmem:[#allocation50_spill] sm:$0xff] %v7578_v37  ;;  %v7586_v46 = vpop.f32.mrf.mxu3  ;;  %v7600_v37 = vld [vmem:[#allocation2 + $0x2c] sm:$0x1]  ;;  %v3070_v24 = vsel %vm6985_vm10, %v3065_v7, %v3069_v23  ;;  %v3962_v34 = vor.u32 %v3961_v27, %v3958_v10  ;;  %v3975_v10 = vshll.u32 %v7576_v3, 16 }
 0x1e4   : > { %v7584_v47 = vpop.f32.mrf.mxu0  ;;  %8654 = vst [vmem:[#allocation52_spill] sm:$0xff] %v7586_v46  ;;  %v6329_v46 = vld [vmem:[#allocation2 + $0x18] sm:$0xff]  ;;  %v7606_v9 = vpack.c.b16 %v5015_v30, %v5014_v57  ;;  %v4898_v11 = vrot.slane %v7600_v37, 5  ;;  %v4840_v30 = vld [vmem:[#allocation2 + $0x30] sm:$0xe]  ;;  %v3454_v23 = vunpack.c.l.b16 %v3070_v24 }
 0x1e5   : > { %8653 = vst [vmem:[#allocation51_spill] sm:$0xff] %v7584_v47  ;;  %3734 = vmatmul.bf16.gmra.mxu1 %v3477_v6  ;;  %v3054_v47 = vor.u32 %v3053_v39, %v3050_v2  ;;  %v3971_v6 = vrot.slane %v3969_v31, 4  ;;  %v4897_v39 = vrot.slane %v4895_v17, 4  ;;  %v2855_v31 = vld [vmem:[#allocation2 + $0x6c] sm:$0xf]  ;;  %v4902_v17 = vrot.slane %v7604_v61, 5 }
 0x1e6   : > { %v7626_v57 = vld [vmem:[#allocation2 + $0x38] sm:$0x1]  ;;  %v3072_v27 = vshrl.u32 %v2855_v31, 16 }
 0x1e7   : > { %v3055_v13 = vrot.slane %v3054_v47, 4  ;;  %v3972_v15 = vor.u32 %v3971_v6, %v7602_v45  ;;  %v4899_v33 = vsel %vm6970_vm7, %v4897_v39, %v4898_v11  ;;  %v1846_v47 = vpack.c.b16 %v1830_v54, %v1829_v60 }
 0x1e8   : > { %4636 = vmatmul.bf16.vlgmr.msra.gmra.mxu3 %v6329_v46  ;;  %v3085_v46 = vshrl.u32 %v2856_v22, 16  ;;  %v5016_v22 = vunpack.c.l.b16 %v4896_v28  ;;  %v5017_v0 = vunpack.c.l.b16 %v4899_v33  ;;  %v3075_v6 = vshll.u32 %v2855_v31, 16 }
 0x1e9   : > { %v3060_v7 = vsel %vm6985_vm10, %v3055_v13, %v7574_v5  ;;  %v7629_v39 = vrot.slane %v3081_v41, 5  ;;  %v6144_v54 = vrot.slane %v4840_v30, 9  ;;  %v4905_v5 = vrot.slane %v7626_v57, 5  ;;  %v7634_v13 = vld [vmem:[#allocation2 + $0x24] sm:$0xf] }
 0x1ea   : > { %v7608_v2 = vpop.f32.mrf.mxu1  ;;  %v3087_v11 = vrot.slane %v3085_v46, 4  ;;  %v3453_v60 = vunpack.c.l.b16 %v3060_v7  ;;  %v3973_v28 = vrot.slane %v3972_v15, 4  ;;  %v3963_v41 = vrot.slane %v3962_v34, 4  ;;  %v2857_v46 = vld [vmem:[#allocation2 + $0x74] sm:$0x1] }
 0x1eb   : > { %8655 = vst [vmem:[#allocation53_spill] sm:$0xff] %v7608_v2  ;;  %v7617_v43 = vpop.f32.mrf.mxu3  ;;  %v4904_v2 = vrot.slane %v4902_v17, 4  ;;  %v4903_v3 = vsel %vm6970_vm7, %v6144_v54, %v4902_v17  ;;  %v3977_v33 = vrot.slane %v3975_v10, 5  ;;  %v3074_v7 = vrot.slane %v3072_v27, 4  ;;  %v7643_v15 = vld [vmem:[#allocation2 + $0x40] sm:$0xf] }
 0x1ec   : > { %v7615_v21 = vpop.f32.mrf.mxu0  ;;  %8657 = vst [vmem:[#allocation55_spill] sm:$0xff] %v7617_v43  ;;  %v6281_v43 = vld [vmem:[#allocation2 + $0xc] sm:$0xff]  ;;  %v3478_v31 = vpack.c.b16 %v3454_v23, %v3453_v60  ;;  %v3968_v34 = vsel %vm6985_vm10, %v3963_v41, %v7602_v45  ;;  %v3980_v23 = vshrl.u32 %v7634_v13, 16  ;;  %v5018_v10 = vunpack.c.l.b16 %v4903_v3  ;;  %v4841_v60 = vld [vmem:[#allocation2 + $0x3c] sm:$0xe]  ;;  %v6330_v41 = vld [vmem:[#allocation2 + $0x24] sm:$0xff] }
 0x1ed   : > { %8656 = vst [vmem:[#allocation54_spill] sm:$0xff] %v7615_v21  ;;  %v7631_v21 = vpack.c.b16 %v5017_v0, %v5016_v22  ;;  %v4906_v30 = vsel %vm6970_vm7, %v4904_v2, %v4905_v5  ;;  %v3077_v22 = vrot.slane %v3075_v6, 5  ;;  %v3989_v2 = vshll.u32 %v7582_v16, 16  ;;  %v6327_v54 = vld [vmem:[#allocation8 + $0x170] sm:$0xff]  ;;  %v7660_v3 = vld [vmem:[#allocation2 + $0x44] sm:$0x1] }
 0x1ee   : > { %v5019_v0 = vunpack.c.l.b16 %v4906_v30  ;;  %v3978_v27 = vsel %vm6985_vm10, %v3973_v28, %v3977_v33  ;;  %v3091_v6 = vshll.u32 %v2857_v46, 16  ;;  %v4435_v45 = vunpack.c.l.b16 %v3968_v34  ;;  %3786 = vmatpush.bf16.msra.mxu2 %v6327_v54  ;;  %v2858_v46 = vld [vmem:[#allocation2 + $0x78] sm:$0xf] }
 0x1ef   : > { %2825 = vmatmul.bf16.gmra.mxu0 %v1846_v47  ;;  %v3263_v47 = vld [vmem:[#allocation2 + $0xc] sm:$0xe]  ;;  %v3983_v33 = vshll.u32 %v7634_v13, 16 }
 0x1f0   : > { %v5934_v5 = vrot.slane %v3263_v47, 9  ;;  %v7657_v30 = vpack.c.b16 %v5019_v0, %v5018_v10  ;;  %v6145_v47 = vrot.slane %v4841_v60, 9  ;;  %v3504_v0 = vunpack.c.l.b16 %v7572_v25 }
 0x1f1   : > { %v3093_v34 = vrot.slane %v3091_v6, 5  ;;  %v3982_v10 = vrot.slane %v3980_v23, 4  ;;  %v3096_v60 = vshrl.u32 %v2858_v46, 16  ;;  %v3099_v6 = vshll.u32 %v2858_v46, 16 }
 0x1f2   : > { %2476 = vmatmul.bf16.vlgmr.msrb.gmra.mxu2 %v6281_v43  ;;  %v7638_v24 = vpop.f32.mrf.mxu1  ;;  %v3088_v43 = vor.u32 %v3087_v11, %v7629_v39  ;;  %v3993_v11 = vshrl.u32 %v7582_v16, 16  ;;  %v4436_v16 = vunpack.c.l.b16 %v3978_v27  ;;  %v4912_v27 = vrot.slane %v7660_v3, 5 }
 0x1f3   : > { %8658 = vst [vmem:[#allocation56_spill] sm:$0xff] %v7638_v24  ;;  %v7647_v17 = vpop.f32.mrf.mxu3  ;;  %v3985_v58 = vrot.slane %v3983_v33, 5 }
 0x1f4   : > { %v7645_v12 = vpop.f32.mrf.mxu0  ;;  %8660 = vst [vmem:[#allocation58_spill] sm:$0xff] %v7647_v17  ;;  %v4909_v17 = vrot.slane %v7643_v15, 5  ;;  %v3089_v24 = vrot.slane %v3088_v43, 4  ;;  %v2859_v43 = vld [vmem:[#allocation2 + $0x7c] sm:$0xf] }
 0x1f5   : > { %8659 = vst [vmem:[#allocation57_spill] sm:$0xff] %v7645_v12  ;;  %3739 = vmatmul.bf16.gmra.mxu1 %v3478_v31  ;;  %v3078_v12 = vor.u32 %v3077_v22, %v3074_v7  ;;  %v8661_v31 = vrot.slane %v7319_v59, 5  ;;  %v7668_v7 = vrot.slane %v3989_v2, 5  ;;  %v3995_v22 = vrot.slane %v3993_v11, 4 }
 0x1f6   : > { %v4910_v59 = vsel %vm6970_vm7, %v6145_v47, %v4909_v17  ;;  %v3094_v25 = vsel %vm6985_vm10, %v3089_v24, %v3093_v34  ;;  %v3105_v11 = vshll.u32 %v2859_v43, 16  ;;  %v6282_v34 = vld [vmem:[#allocation2 + $0x18] sm:$0xff] }
 0x1f7   : > { %v3330_v28 = vsel %vm6970_vm7, %v5934_v5, %v8661_v31  ;;  %v4911_v5 = vrot.slane %v4909_v17, 4  ;;  %v3079_v31 = vrot.slane %v3078_v12, 4  ;;  %v4467_v17 = vpack.c.b16 %v4436_v16, %v4435_v45  ;;  %v3911_v16 = vld [vmem:[#allocation2 + $0x30] sm:$0xf] }
 0x1f8   : > { %4641 = vmatmul.bf16.gmra.mxu3 %v6330_v41  ;;  %v3503_v13 = vunpack.c.l.b16 %v3330_v28  ;;  %v3109_v41 = vshrl.u32 %v2859_v43, 16  ;;  %v5020_v28 = vunpack.c.l.b16 %v4910_v59  ;;  %v3996_v46 = vor.u32 %v3995_v22, %v7668_v7  ;;  %v2860_v59 = vld [vmem:[#allocation2 + $0x80] sm:$0x1] }
 0x1f9   : > { %v3084_v24 = vsel %vm6985_vm10, %v3079_v31, %v7629_v39  ;;  %v3999_v43 = vshll.u32 %v7600_v37, 16  ;;  %v7694_v39 = vld [vmem:[#allocation2 + $0x4c] sm:$0xf]  ;;  %v4004_v37 = vshrl.u32 %v3911_v16, 16 }
 0x1fa   : > { %v7670_v54 = vpop.f32.mrf.mxu1  ;;  %v7683_v47 = vpack.c.b16 %v3504_v0, %v3503_v13  ;;  %v3101_v0 = vrot.slane %v3099_v6, 5  ;;  %v3111_v45 = vrot.slane %v3109_v41, 4  ;;  %v3455_v33 = vunpack.c.l.b16 %v3084_v24 }
 0x1fb   : > { %8662 = vst [vmem:[#allocation59_spill] sm:$0xff] %v7670_v54  ;;  %v7679_v2 = vpop.f32.mrf.mxu3  ;;  %v4913_v54 = vsel %vm6970_vm7, %v4911_v5, %v4912_v27  ;;  %v3098_v5 = vrot.slane %v3096_v60, 4  ;;  %v7692_v27 = vrot.slane %v3105_v11, 5  ;;  %v3997_v13 = vrot.slane %v3996_v46, 4 }
 0x1fc   : > { %v7677_v23 = vpop.f32.mrf.mxu0  ;;  %8664 = vst [vmem:[#allocation61_spill] sm:$0xff] %v7679_v2  ;;  %v5021_v12 = vunpack.c.l.b16 %v4913_v54  ;;  %v3456_v2 = vunpack.c.l.b16 %v3094_v25  ;;  %v3986_v54 = vor.u32 %v3985_v58, %v3982_v10  ;;  %v4001_v25 = vrot.slane %v3999_v43, 5 }
 0x1fd   : > { %8663 = vst [vmem:[#allocation60_spill] sm:$0xff] %v7677_v23  ;;  %v3102_v6 = vor.u32 %v3101_v0, %v3098_v5  ;;  %v3112_v11 = vor.u32 %v3111_v45, %v7692_v27  ;;  %v3115_v41 = vshll.u32 %v2860_v59, 16  ;;  %v4916_v58 = vrot.slane %v7694_v39, 5  ;;  %v7710_v5 = vld [vmem:[#allocation2 + $0x50] sm:$0x1] }
 0x1fe   : > { %v7690_v23 = vpack.c.b16 %v5021_v12, %v5020_v28  ;;  %v3479_v31 = vpack.c.b16 %v3456_v2, %v3455_v33  ;;  %v6367_v28 = vld [vmem:[#allocation9 + $0x30] sm:$0xff]  ;;  %v3987_v24 = vrot.slane %v3986_v54, 4  ;;  %v4007_v46 = vshll.u32 %v3911_v16, 16  ;;  %v6331_v45 = vld [vmem:[#allocation2 + $0x30] sm:$0xff]  ;;  %v2861_v33 = vld [vmem:[#allocation2 + $0x84] sm:$0xf] }
 0x1ff   : > { %4725 = vmatmul.bf16.vlgmr.msra.gmra.mxu0 %v4467_v17  ;;  %v4842_v12 = vld [vmem:[#allocation2 + $0x48] sm:$0xe]  ;;  %v4002_v2 = vsel %vm6985_vm10, %v3997_v13, %v4001_v25  ;;  %v4017_v43 = vshrl.u32 %v7604_v61, 16  ;;  %5127 = vmatpush.bf16.msra.mxu1 %v6367_v28  ;;  %v3103_v54 = vrot.slane %v3102_v6, 4  ;;  %v3113_v16 = vrot.slane %v3112_v11, 4 }
 0x200   : > { %v3992_v0 = vsel %vm6985_vm10, %v3987_v24, %v7668_v7  ;;  %v6146_v59 = vrot.slane %v4842_v12, 9  ;;  %v2862_v13 = vld [vmem:[#allocation2 + $0x88] sm:$0xf]  ;;  %v4438_v25 = vunpack.c.l.b16 %v4002_v2  ;;  %v4919_v28 = vrot.slane %v7710_v5, 5 }
 0x201   : > { %v4019_v24 = vrot.slane %v4017_v43, 4  ;;  %v3120_v1 = vshrl.u32 %v2861_v33, 16  ;;  %v3123_v12 = vshll.u32 %v2861_v33, 16  ;;  %v4437_v56 = vunpack.c.l.b16 %v3992_v0 }
 0x202   : > { %2481 = vmatmul.bf16.gmra.mxu2 %v6282_v34  ;;  %v7696_v22 = vpop.f32.mrf.mxu1  ;;  %v4013_v34 = vshll.u32 %v7604_v61, 16  ;;  %v4917_v61 = vsel %vm6970_vm7, %v6146_v59, %v4916_v58  ;;  %v3129_v6 = vshll.u32 %v2862_v13, 16  ;;  %v3133_v11 = vshrl.u32 %v2862_v13, 16 }
 0x203   : > { %v7704_v10 = vpop.f32.mrf.mxu3  ;;  %v3122_v13 = vrot.slane %v3120_v1, 4  ;;  %v4037_v1 = vshll.u32 %v7643_v15, 16 }
 0x204   : > { %v7698_v17 = vpop.f32.mrf.mxu0  ;;  %8667 = vst [vmem:[#allocation64_spill] sm:$0xff] %v7704_v10  ;;  %v3117_v10 = vrot.slane %v3115_v41, 5  ;;  %v4015_v7 = vrot.slane %v4013_v34, 5  ;;  %v5022_v34 = vunpack.c.l.b16 %v4917_v61  ;;  %v7735_v20 = vrot.slane %v3129_v6, 5 }
 0x205   : > { %8665 = vst [vmem:[#allocation62_spill] sm:$0xff] %v7698_v17  ;;  %v7700_v60 = vpop.f32.mrf.mxu2  ;;  %3744 = vmatmul.bf16.gmra.mxu1 %v3479_v31  ;;  %v4918_v31 = vrot.slane %v4916_v58, 4  ;;  %v4006_v17 = vrot.slane %v4004_v37, 4  ;;  %v3108_v58 = vsel %vm6985_vm10, %v3103_v54, %v7692_v27  ;;  %v3135_v27 = vrot.slane %v3133_v11, 4  ;;  %v2863_v54 = vld [vmem:[#allocation2 + $0x8c] sm:$0x1] }
 0x206   : > { %8666 = vst [vmem:[#allocation63_spill] sm:$0xff] %v7700_v60  ;;  %v4009_v60 = vrot.slane %v4007_v46, 5  ;;  %v3118_v2 = vsel %vm6985_vm10, %v3113_v16, %v3117_v10  ;;  %v4020_v59 = vor.u32 %v4019_v24, %v4015_v7  ;;  %v4023_v10 = vshll.u32 %v7626_v57, 16 }
 0x207   : > { %v4920_v37 = vsel %vm6970_vm7, %v4918_v31, %v4919_v28  ;;  %v3125_v31 = vrot.slane %v3123_v12, 5  ;;  %v3458_v36 = vunpack.c.l.b16 %v3118_v2  ;;  %v3136_v24 = vor.u32 %v3135_v27, %v7735_v20  ;;  %v3913_v2 = vld [vmem:[#allocation2 + $0x3c] sm:$0xf]  ;;  %v2865_v27 = vld [vmem:[#allocation2 + $0x94] sm:$0xf] }
 0x208   : > { %4646 = vmatmul.bf16.gmra.mxu3 %v6331_v45  ;;  %v5023_v43 = vunpack.c.l.b16 %v4920_v37  ;;  %v4468_v45 = vpack.c.b16 %v4438_v25, %v4437_v56  ;;  %v4010_v33 = vor.u32 %v4009_v60, %v4006_v17  ;;  %v4021_v16 = vrot.slane %v4020_v59, 4  ;;  %v7755_v59 = vld [vmem:[#allocation2 + $0x58] sm:$0xf] }
 0x209   : > { %v3126_v17 = vor.u32 %v3125_v31, %v3122_v13  ;;  %v4041_v60 = vshrl.u32 %v7643_v15, 16  ;;  %v3139_v12 = vshll.u32 %v2863_v54, 16  ;;  %v4025_v57 = vrot.slane %v4023_v10, 5  ;;  %v4843_v13 = vld [vmem:[#allocation2 + $0x54] sm:$0xe] }
 0x20a   : > { %v7718_v38 = vpop.f32.mrf.mxu1  ;;  %v7733_v28 = vpack.c.b16 %v5023_v43, %v5022_v34  ;;  %v4011_v61 = vrot.slane %v4010_v33, 4  ;;  %v7753_v34 = vrot.slane %v4037_v1, 5  ;;  %v2864_v31 = vld [vmem:[#allocation2 + $0x90] sm:$0xf]  ;;  %v4028_v54 = vshrl.u32 %v3913_v2, 16 }
 0x20b   : > { %v7731_v0 = vpop.f32.mrf.mxu3  ;;  %v4026_v15 = vsel %vm6985_vm10, %v4021_v16, %v4025_v57  ;;  %v4043_v43 = vrot.slane %v4041_v60, 4  ;;  %v3141_v33 = vrot.slane %v3139_v12, 5  ;;  %v7757_v16 = vld [vmem:[#allocation2 + $0x5c] sm:$0x1]  ;;  %v3144_v57 = vshrl.u32 %v2864_v31, 16 }
 0x20c   : > { %v7722_v41 = vpop.f32.mrf.mxu0  ;;  %8670 = vst [vmem:[#allocation67_spill] sm:$0xff] %v7731_v0  ;;  %v4030_v0 = vrot.slane %v4028_v54, 4 }
 0x20d   : > { %8668 = vst [vmem:[#allocation65_spill] sm:$0xff] %v7722_v41  ;;  %v7724_v46 = vpop.f32.mrf.mxu2  ;;  %v6283_v41 = vld [vmem:[#allocation2 + $0x24] sm:$0xff]  ;;  %v4044_v60 = vor.u32 %v4043_v43, %v7753_v34  ;;  %v3146_v48 = vrot.slane %v3144_v57, 4 }
 0x20e   : > { %8669 = vst [vmem:[#allocation66_spill] sm:$0xff] %v7724_v46  ;;  %v3457_v46 = vunpack.c.l.b16 %v3108_v58  ;;  %v6326_v58 = vld [vmem:[#allocation8 + $0x168] sm:$0xff]  ;;  %v3915_v57 = vld [vmem:[#allocation2 + $0x48] sm:$0xf] }
 0x20f   : > { %4730 = vmatmul.bf16.gmra.mxu0 %v4468_v45  ;;  %v3137_v45 = vrot.slane %v3136_v24, 4  ;;  %3787 = vmatpush.bf16.msra.mxu2 %v6326_v58  ;;  %v4923_v24 = vrot.slane %v7755_v59, 5  ;;  %v3153_v58 = vshll.u32 %v2865_v27, 16 }
 0x210   : > { %v3480_v25 = vpack.c.b16 %v3458_v36, %v3457_v46  ;;  %v6332_v36 = vld [vmem:[#allocation2 + $0x3c] sm:$0xff]  ;;  %v3127_v46 = vrot.slane %v3126_v17, 4 }
 0x211   : > { %v3142_v12 = vsel %vm6985_vm10, %v3137_v45, %v3141_v33  ;;  %v4047_v45 = vshll.u32 %v7660_v3, 16  ;;  %v4045_v33 = vrot.slane %v4044_v60, 4  ;;  %v7782_v3 = vld [vmem:[#allocation2 + $0x64] sm:$0xf] }
 0x212   : > { %2486 = vmatmul.bf16.gmra.mxu2 %v6283_v41  ;;  %v7738_v56 = vpop.f32.mrf.mxu1  ;;  %v4016_v41 = vsel %vm6985_vm10, %v4011_v61, %v4015_v7  ;;  %v4440_v7 = vunpack.c.l.b16 %v4026_v15  ;;  %v3132_v1 = vsel %vm6985_vm10, %v3127_v46, %v7735_v20  ;;  %v6147_v61 = vrot.slane %v4843_v13, 9 }
 0x213   : > { %v7747_v37 = vpop.f32.mrf.mxu3  ;;  %v4439_v10 = vunpack.c.l.b16 %v4016_v41  ;;  %v3147_v41 = vshll.u32 %v2864_v31, 16  ;;  %v4925_v20 = vrot.slane %v4923_v24, 4  ;;  %v4926_v46 = vrot.slane %v7757_v16, 5 }
 0x214   : > { %v7743_v6 = vpop.f32.mrf.mxu0  ;;  %8673 = vst [vmem:[#allocation70_spill] sm:$0xff] %v7747_v37  ;;  %v4924_v37 = vsel %vm6970_vm7, %v6147_v61, %v4923_v24  ;;  %v2866_v24 = vld [vmem:[#allocation2 + $0x98] sm:$0x1] }
 0x215   : > { %8671 = vst [vmem:[#allocation68_spill] sm:$0xff] %v7743_v6  ;;  %v7745_v11 = vpop.f32.mrf.mxu2  ;;  %3749 = vmatmul.bf16.gmra.mxu1 %v3480_v25  ;;  %v4031_v25 = vshll.u32 %v3913_v2, 16  ;;  %v3157_v2 = vshrl.u32 %v2865_v27, 16  ;;  %v4469_v43 = vpack.c.b16 %v4440_v7, %v4439_v10  ;;  %v4927_v31 = vsel %vm6970_vm7, %v4925_v20, %v4926_v46  ;;  %v4844_v20 = vld [vmem:[#allocation2 + $0x60] sm:$0xe] }
 0x216   : > { %8672 = vst [vmem:[#allocation69_spill] sm:$0xff] %v7745_v11  ;;  %v3459_v27 = vunpack.c.l.b16 %v3132_v1  ;;  %v5024_v11 = vunpack.c.l.b16 %v4924_v37  ;;  %v5025_v61 = vunpack.c.l.b16 %v4927_v31  ;;  %v3149_v55 = vrot.slane %v3147_v41, 5  ;;  %v7790_v41 = vld [vmem:[#allocation2 + $0x68] sm:$0x1] }
 0x217   : > { %v4033_v6 = vrot.slane %v4031_v25, 5  ;;  %v7780_v10 = vrot.slane %v3153_v58, 5  ;;  %v3159_v7 = vrot.slane %v3157_v2, 4  ;;  %v4049_v25 = vrot.slane %v4047_v45, 5 }
 0x218   : > { %4651 = vmatmul.bf16.gmra.mxu3 %v6332_v36  ;;  %v7784_v60 = vpack.c.b16 %v5025_v61, %v5024_v11  ;;  %v6366_v11 = vld [vmem:[#allocation9 + $0x28] sm:$0xff]  ;;  %v6148_v2 = vrot.slane %v4844_v20, 9  ;;  %v4065_v31 = vshrl.u32 %v7694_v39, 16  ;;  %v4055_v20 = vshll.u32 %v3915_v57, 16 }
 0x219   : > { %v4034_v54 = vor.u32 %v4033_v6, %v4030_v0  ;;  %v4050_v37 = vsel %vm6985_vm10, %v4045_v33, %v4049_v25  ;;  %v3150_v0 = vor.u32 %v3149_v55, %v3146_v48  ;;  %v3160_v6 = vor.u32 %v3159_v7, %v7780_v10  ;;  %5128 = vmatpush.bf16.msra.mxu1 %v6366_v11  ;;  %v6333_v25 = vld [vmem:[#allocation2 + $0x48] sm:$0xff] }
 0x21a   : > { %v7759_v17 = vpop.f32.mrf.mxu1  ;;  %v4061_v33 = vshll.u32 %v7694_v39, 16  ;;  %v4933_v55 = vrot.slane %v7790_v41, 5  ;;  %v4442_v7 = vunpack.c.l.b16 %v4050_v37  ;;  %v4057_v4 = vrot.slane %v4055_v20, 5 }
 0x21b   : > { %8674 = vst [vmem:[#allocation71_spill] sm:$0xff] %v7759_v17  ;;  %v7775_v13 = vpop.f32.mrf.mxu3  ;;  %v4035_v45 = vrot.slane %v4034_v54, 4  ;;  %v2867_v54 = vld [vmem:[#allocation2 + $0x9c] sm:$0xf] }
 0x21c   : > { %v7768_v15 = vpop.f32.mrf.mxu0  ;;  %8677 = vst [vmem:[#allocation74_spill] sm:$0xff] %v7775_v13  ;;  %v3161_v13 = vrot.slane %v3160_v6, 4 }
 0x21d   : > { %8675 = vst [vmem:[#allocation72_spill] sm:$0xff] %v7768_v15  ;;  %v7770_v36 = vpop.f32.mrf.mxu2  ;;  %v6284_v15 = vld [vmem:[#allocation2 + $0x30] sm:$0xff] }
 0x21e   : > { %8676 = vst [vmem:[#allocation73_spill] sm:$0xff] %v7770_v36  ;;  %v3460_v36 = vunpack.c.l.b16 %v3142_v12  ;;  %v3163_v12 = vshll.u32 %v2866_v24, 16  ;;  %v4040_v24 = vsel %vm6985_vm10, %v4035_v45, %v7753_v34  ;;  %v3171_v34 = vshll.u32 %v2867_v54, 16 }
 0x21f   : > { %4735 = vmatmul.bf16.gmra.mxu0 %v4469_v43  ;;  %v4930_v43 = vrot.slane %v7782_v3, 5 }
 0x220   : > { %v3481_v1 = vpack.c.b16 %v3460_v36, %v3459_v27  ;;  %v4052_v27 = vshrl.u32 %v3915_v57, 16  ;;  %v3165_v39 = vrot.slane %v3163_v12, 5  ;;  %v4441_v57 = vunpack.c.l.b16 %v4040_v24 }
 0x221   : > { %v4931_v61 = vsel %vm6970_vm7, %v6148_v2, %v4930_v43  ;;  %v4932_v48 = vrot.slane %v4930_v43, 4  ;;  %v4063_v2 = vrot.slane %v4061_v33, 5  ;;  %v4067_v43 = vrot.slane %v4065_v31, 4 }
 0x222   : > { %2491 = vmatmul.bf16.gmra.mxu2 %v6284_v15  ;;  %v7786_v46 = vpop.f32.mrf.mxu1  ;;  %v4054_v50 = vrot.slane %v4052_v27, 4  ;;  %v3166_v31 = vsel %vm6985_vm10, %v3161_v13, %v3165_v39  ;;  %v3173_v27 = vrot.slane %v3171_v34, 5 }
 0x223   : > { %8678 = vst [vmem:[#allocation75_spill] sm:$0xff] %v7786_v46  ;;  %v7798_v36 = vpop.f32.mrf.mxu3  ;;  %v4934_v11 = vsel %vm6970_vm7, %v4932_v48, %v4933_v55  ;;  %v3168_v46 = vshrl.u32 %v2867_v54, 16  ;;  %v4068_v55 = vor.u32 %v4067_v43, %v4063_v2  ;;  %v3462_v54 = vunpack.c.l.b16 %v3166_v31 }
 0x224   : > { %v7792_v58 = vpop.f32.mrf.mxu0  ;;  %8681 = vst [vmem:[#allocation78_spill] sm:$0xff] %v7798_v36  ;;  %v3151_v36 = vrot.slane %v3150_v0, 4 }
 0x225   : > { %8679 = vst [vmem:[#allocation76_spill] sm:$0xff] %v7792_v58  ;;  %v7794_v15 = vpop.f32.mrf.mxu2  ;;  %3754 = vmatmul.bf16.gmra.mxu1 %v3481_v1  ;;  %v2868_v1 = vld [vmem:[#allocation2 + $0xa0] sm:$0xf]  ;;  %v5026_v58 = vunpack.c.l.b16 %v4931_v61  ;;  %v4470_v61 = vpack.c.b16 %v4442_v7, %v4441_v57  ;;  %v3170_v24 = vrot.slane %v3168_v46, 4 }
 0x226   : > { %8680 = vst [vmem:[#allocation77_spill] sm:$0xff] %v7794_v15  ;;  %v5027_v15 = vunpack.c.l.b16 %v4934_v11  ;;  %v3177_v37 = vshll.u32 %v2868_v1, 16  ;;  %v3181_v45 = vshrl.u32 %v2868_v1, 16  ;;  %v3156_v33 = vsel %vm6985_vm10, %v3151_v36, %v7780_v10 }
 0x227   : > { %v3461_v20 = vunpack.c.l.b16 %v3156_v33  ;;  %v4058_v1 = vor.u32 %v4057_v4, %v4054_v50  ;;  %v4071_v11 = vshll.u32 %v7710_v5, 16  ;;  %v4069_v10 = vrot.slane %v4068_v55, 4  ;;  %v6325_v33 = vld [vmem:[#allocation8 + $0x160] sm:$0xff]  ;;  %v3917_v55 = vld [vmem:[#allocation2 + $0x54] sm:$0xf] }
 0x228   : > { %4656 = vmatmul.bf16.gmra.mxu3 %v6333_v25  ;;  %v7812_v0 = vpack.c.b16 %v5027_v15, %v5026_v58  ;;  %v3179_v25 = vrot.slane %v3177_v37, 5  ;;  %v3183_v58 = vrot.slane %v3181_v45, 4  ;;  %v6285_v15 = vld [vmem:[#allocation2 + $0x3c] sm:$0xff]  ;;  %v3174_v13 = vor.u32 %v3173_v27, %v3170_v24  ;;  %v6334_v27 = vld [vmem:[#allocation2 + $0x54] sm:$0xff]  ;;  %3788 = vmatpush.bf16.msra.mxu2 %v6325_v33 }
 0x229   : > { %v3482_v43 = vpack.c.b16 %v3462_v54, %v3461_v20  ;;  %v4059_v46 = vrot.slane %v4058_v1, 4  ;;  %v4073_v34 = vrot.slane %v4071_v11, 5  ;;  %v4085_v5 = vshll.u32 %v7755_v59, 16 }
 0x22a   : > { %v7810_v49 = vpop.f32.mrf.mxu1  ;;  %v3184_v7 = vor.u32 %v3183_v58, %v3179_v25  ;;  %v4089_v24 = vshrl.u32 %v7755_v59, 16  ;;  %v2870_v58 = vld [vmem:[#allocation2 + $0xa8] sm:$0xf]  ;;  %v4079_v1 = vshll.u32 %v3917_v55, 16 }
 0x22b   : > { %8682 = vst [vmem:[#allocation79_spill] sm:$0xff] %v7810_v49  ;;  %v7823_v48 = vpop.f32.mrf.mxu3  ;;  %v4064_v50 = vsel %vm6985_vm10, %v4059_v46, %v4063_v2  ;;  %v4074_v4 = vsel %vm6985_vm10, %v4069_v10, %v4073_v34  ;;  %v4076_v2 = vshrl.u32 %v3917_v55, 16  ;;  %v3192_v59 = vshrl.u32 %v2870_v58, 16 }
 0x22c   : > { %v7814_v12 = vpop.f32.mrf.mxu0  ;;  %8685 = vst [vmem:[#allocation82_spill] sm:$0xff] %v7823_v48  ;;  %v3185_v31 = vrot.slane %v3184_v7, 4  ;;  %v4443_v20 = vunpack.c.l.b16 %v4064_v50  ;;  %v4444_v54 = vunpack.c.l.b16 %v4074_v4  ;;  %v4087_v7 = vrot.slane %v4085_v5, 5 }
 0x22d   : > { %8683 = vst [vmem:[#allocation80_spill] sm:$0xff] %v7814_v12  ;;  %v7816_v6 = vpop.f32.mrf.mxu2  ;;  %v2869_v12 = vld [vmem:[#allocation2 + $0xa4] sm:$0x1]  ;;  %v3194_v5 = vrot.slane %v3192_v59, 4 }
 0x22e   : > { %8684 = vst [vmem:[#allocation81_spill] sm:$0xff] %v7816_v6  ;;  %v3187_v39 = vshll.u32 %v2869_v12, 16  ;;  %v3175_v12 = vrot.slane %v3174_v13, 4  ;;  %v4471_v4 = vpack.c.b16 %v4444_v54, %v4443_v20  ;;  %v2878_v6 = vld [vmem:[#allocation2 + $0xc8] sm:$0x1] }
 0x22f   : > { %4740 = vmatmul.bf16.gmra.mxu0 %v4470_v61 }
 0x230   : > { %v3189_v61 = vrot.slane %v3187_v39, 5  ;;  %v3180_v10 = vsel %vm6985_vm10, %v3175_v12, %v3179_v25  ;;  %v4091_v39 = vrot.slane %v4089_v24, 4  ;;  %v4081_v25 = vrot.slane %v4079_v1, 5 }
 0x232   : > { %2496 = vmatmul.bf16.gmra.mxu2 %v6285_v15  ;;  %v7826_v36 = vpop.f32.mrf.mxu1  ;;  %v2871_v15 = vld [vmem:[#allocation2 + $0xac] sm:$0xf]  ;;  %v3190_v13 = vsel %vm6985_vm10, %v3185_v31, %v3189_v61  ;;  %v4092_v12 = vor.u32 %v4091_v39, %v4087_v7 }
 0x233   : > { %8686 = vst [vmem:[#allocation83_spill] sm:$0xff] %v7826_v36  ;;  %v7832_v57 = vpop.f32.mrf.mxu3  ;;  %v3201_v46 = vshll.u32 %v2871_v15, 16  ;;  %v3205_v34 = vshrl.u32 %v2871_v15, 16  ;;  %v3464_v48 = vunpack.c.l.b16 %v3190_v13  ;;  %v6286_v31 = vld [vmem:[#allocation2 + $0x48] sm:$0xff]  ;;  %v4095_v15 = vshll.u32 %v7757_v16, 16 }
 0x234   : > { %v7828_v37 = vpop.f32.mrf.mxu0  ;;  %8689 = vst [vmem:[#allocation86_spill] sm:$0xff] %v7832_v57  ;;  %v3463_v57 = vunpack.c.l.b16 %v3180_v10 }
 0x235   : > { %8687 = vst [vmem:[#allocation84_spill] sm:$0xff] %v7828_v37  ;;  %v7830_v45 = vpop.f32.mrf.mxu2  ;;  %3759 = vmatmul.bf16.gmra.mxu1 %v3482_v43  ;;  %v3195_v43 = vshll.u32 %v2870_v58, 16  ;;  %v3203_v24 = vrot.slane %v3201_v46, 5  ;;  %v3207_v58 = vrot.slane %v3205_v34, 4  ;;  %v2872_v37 = vld [vmem:[#allocation2 + $0xb0] sm:$0x1] }
 0x236   : > { %8688 = vst [vmem:[#allocation85_spill] sm:$0xff] %v7830_v45  ;;  %v3483_v54 = vpack.c.b16 %v3464_v48, %v3463_v57  ;;  %v3211_v13 = vshll.u32 %v2872_v37, 16  ;;  %v4097_v59 = vrot.slane %v4095_v15, 5  ;;  %v4113_v48 = vshrl.u32 %v7782_v3, 16  ;;  %v6335_v37 = vld [vmem:[#allocation2 + $0x60] sm:$0xff] }
 0x237   : > { %v3197_v61 = vrot.slane %v3195_v43, 5  ;;  %v3208_v10 = vor.u32 %v3207_v58, %v3203_v24  ;;  %v6365_v43 = vld [vmem:[#allocation9 + $0x20] sm:$0xff]  ;;  %v2873_v58 = vld [vmem:[#allocation2 + $0xb4] sm:$0xf] }
 0x238   : > { %4661 = vmatmul.bf16.gmra.mxu3 %v6334_v27  ;;  %v4078_v27 = vrot.slane %v4076_v2, 4  ;;  %5129 = vmatpush.bf16.msra.mxu1 %v6365_v43  ;;  %v2874_v15 = vld [vmem:[#allocation2 + $0xb8] sm:$0xf]  ;;  %v3219_v43 = vshll.u32 %v2873_v58, 16 }
 0x239   : > { %v3198_v2 = vor.u32 %v3197_v61, %v3194_v5 }
 0x23a   : > { %v7840_v11 = vpop.f32.mrf.mxu1 }
 0x23b   : > { %8690 = vst [vmem:[#allocation87_spill] sm:$0xff] %v7840_v11  ;;  %v7850_v55 = vpop.f32.mrf.mxu3  ;;  %v3199_v57 = vrot.slane %v3198_v2, 4  ;;  %v3930_v11 = vld [vmem:[#allocation2 + $0xa0] sm:$0xf] }
 0x23c   : > { %v7846_v33 = vpop.f32.mrf.mxu0  ;;  %8693 = vst [vmem:[#allocation90_spill] sm:$0xff] %v7850_v55 }
 0x23d   : > { %8691 = vst [vmem:[#allocation88_spill] sm:$0xff] %v7846_v33  ;;  %v7848_v50 = vpop.f32.mrf.mxu2  ;;  %v4082_v33 = vor.u32 %v4081_v25, %v4078_v27  ;;  %v4109_v27 = vshll.u32 %v7782_v3, 16  ;;  %v3209_v25 = vrot.slane %v3208_v10, 4  ;;  %v3204_v3 = vsel %vm6985_vm10, %v3199_v57, %v3203_v24  ;;  %v6287_v57 = vld [vmem:[#allocation2 + $0x54] sm:$0xff] }
 0x23e   : > { %8692 = vst [vmem:[#allocation89_spill] sm:$0xff] %v7848_v50  ;;  %v4093_v50 = vrot.slane %v4092_v12, 4  ;;  %v3213_v12 = vrot.slane %v3211_v13, 5 }
 0x23f   : > { %4745 = vmatmul.bf16.gmra.mxu0 %v4471_v4  ;;  %v4083_v16 = vrot.slane %v4082_v33, 4  ;;  %v3919_v4 = vld [vmem:[#allocation2 + $0x60] sm:$0xf] }
 0x240   : > { %v4098_v34 = vsel %vm6985_vm10, %v4093_v50, %v4097_v59  ;;  %v4100_v61 = vshrl.u32 %v3919_v4, 16  ;;  %v4103_v33 = vshll.u32 %v3919_v4, 16  ;;  %v7867_v50 = vrot.slane %v4109_v27, 5 }
 0x241   : > { %v4446_v5 = vunpack.c.l.b16 %v4098_v34  ;;  %v3214_v2 = vsel %vm6985_vm10, %v3209_v25, %v3213_v12  ;;  %v3229_v34 = vshrl.u32 %v2874_v15, 16  ;;  %v3465_v25 = vunpack.c.l.b16 %v3204_v3 }
 0x242   : > { %2501 = vmatmul.bf16.gmra.mxu2 %v6286_v31  ;;  %v7853_v20 = vpop.f32.mrf.mxu1  ;;  %v4088_v31 = vsel %vm6985_vm10, %v4083_v16, %v4087_v7  ;;  %v3216_v7 = vshrl.u32 %v2873_v58, 16  ;;  %v3225_v16 = vshll.u32 %v2874_v15, 16  ;;  %v3466_v12 = vunpack.c.l.b16 %v3214_v2  ;;  %v2875_v15 = vld [vmem:[#allocation2 + $0xbc] sm:$0x1] }
 0x243   : > { %8694 = vst [vmem:[#allocation91_spill] sm:$0xff] %v7853_v20  ;;  %v7859_v46 = vpop.f32.mrf.mxu3  ;;  %v4445_v59 = vunpack.c.l.b16 %v4088_v31  ;;  %v4105_v31 = vrot.slane %v4103_v33, 5  ;;  %v3231_v55 = vrot.slane %v3229_v34, 4 }
 0x244   : > { %v7855_v1 = vpop.f32.mrf.mxu0  ;;  %8697 = vst [vmem:[#allocation94_spill] sm:$0xff] %v7859_v46  ;;  %v4119_v46 = vshll.u32 %v7790_v41, 16  ;;  %v3227_v58 = vrot.slane %v3225_v16, 5 }
 0x245   : > { %8695 = vst [vmem:[#allocation92_spill] sm:$0xff] %v7855_v1  ;;  %v7857_v39 = vpop.f32.mrf.mxu2  ;;  %3764 = vmatmul.bf16.gmra.mxu1 %v3483_v54  ;;  %v4115_v54 = vrot.slane %v4113_v48, 4  ;;  %v4472_v4 = vpack.c.b16 %v4446_v5, %v4445_v59  ;;  %v4102_v48 = vrot.slane %v4100_v61, 4  ;;  %v7883_v1 = vld [vmem:[#allocation2 + $0x70] sm:$0xf]  ;;  %v3484_v61 = vpack.c.b16 %v3466_v12, %v3465_v25 }
 0x246   : > { %8696 = vst [vmem:[#allocation93_spill] sm:$0xff] %v7857_v39  ;;  %v3232_v2 = vor.u32 %v3231_v55, %v3227_v58  ;;  %v4133_v16 = vshll.u32 %v7883_v1, 16  ;;  %v4137_v34 = vshrl.u32 %v7883_v1, 16 }
 0x247   : > { %v4116_v24 = vor.u32 %v4115_v54, %v7867_v50  ;;  %v4106_v5 = vor.u32 %v4105_v31, %v4102_v48  ;;  %v6324_v48 = vld [vmem:[#allocation8 + $0x158] sm:$0xff] }
 0x248   : > { %4666 = vmatmul.bf16.gmra.mxu3 %v6335_v37  ;;  %3789 = vmatpush.bf16.msra.mxu2 %v6324_v48  ;;  %v3233_v25 = vrot.slane %v3232_v2, 4 }
 0x249   : > { %v4117_v59 = vrot.slane %v4116_v24, 4 }
 0x24a   : > { %v7877_v37 = vpop.f32.mrf.mxu1 }
 0x24b   : > { %8700 = vst [vmem:[#allocation97_spill] sm:$0xff] %v7877_v37  ;;  %v7879_v27 = vpop.f32.mrf.mxu3 }
 0x24c   : > { %v7873_v10 = vpop.f32.mrf.mxu0  ;;  %8701 = vst [vmem:[#allocation98_spill] sm:$0xff] %v7879_v27  ;;  %v3235_v27 = vshll.u32 %v2875_v15, 16 }
 0x24d   : > { %8698 = vst [vmem:[#allocation95_spill] sm:$0xff] %v7873_v10  ;;  %v7875_v13 = vpop.f32.mrf.mxu2  ;;  %v3218_v10 = vrot.slane %v3216_v7, 4  ;;  %v4107_v7 = vrot.slane %v4106_v5, 4 }
 0x24e   : > { %8699 = vst [vmem:[#allocation96_spill] sm:$0xff] %v7875_v13  ;;  %v3221_v13 = vrot.slane %v3219_v43, 5  ;;  %v3921_v43 = vld [vmem:[#allocation2 + $0x6c] sm:$0xf]  ;;  %v3237_v12 = vrot.slane %v3235_v27, 5 }
 0x24f   : > { %4750 = vmatmul.bf16.gmra.mxu0 %v4472_v4  ;;  %v4121_v4 = vrot.slane %v4119_v46, 5  ;;  %v4112_v55 = vsel %vm6985_vm10, %v4107_v7, %v7867_v50  ;;  %v6336_v46 = vld [vmem:[#allocation2 + $0x6c] sm:$0xff]  ;;  %v4124_v5 = vshrl.u32 %v3921_v43, 16 }
 0x250   : > { %v3222_v3 = vor.u32 %v3221_v13, %v3218_v10  ;;  %v2876_v10 = vld [vmem:[#allocation2 + $0xc0] sm:$0xf]  ;;  %v2877_v13 = vld [vmem:[#allocation2 + $0xc4] sm:$0xf]  ;;  %v4447_v45 = vunpack.c.l.b16 %v4112_v55  ;;  %v3238_v27 = vsel %vm6985_vm10, %v3233_v25, %v3237_v12  ;;  %v6364_v55 = vld [vmem:[#allocation9 + $0x18] sm:$0xff] }
 0x251   : > { %v4122_v31 = vsel %vm6985_vm10, %v4117_v59, %v4121_v4  ;;  %v4139_v59 = vrot.slane %v4137_v34, 4  ;;  %v3240_v4 = vshrl.u32 %v2876_v10, 16  ;;  %v3253_v39 = vshrl.u32 %v2877_v13, 16  ;;  %5130 = vmatpush.bf16.msra.mxu1 %v6364_v55  ;;  %v3923_v12 = vld [vmem:[#allocation2 + $0x78] sm:$0xf] }
 0x252   : > { %2506 = vmatmul.bf16.gmra.mxu2 %v6287_v57  ;;  %v7895_v24 = vpop.f32.mrf.mxu1  ;;  %v3223_v57 = vrot.slane %v3222_v3, 4  ;;  %v4448_v15 = vunpack.c.l.b16 %v4122_v31  ;;  %v4126_v34 = vrot.slane %v4124_v5, 4 }
 0x253   : > { %v7889_v41 = vpop.f32.mrf.mxu3  ;;  %8705 = vst [vmem:[#allocation102_spill] sm:$0xff] %v7895_v24 }
 0x254   : > { %v7885_v33 = vpop.f32.mrf.mxu0  ;;  %8704 = vst [vmem:[#allocation101_spill] sm:$0xff] %v7889_v41  ;;  %v7900_v41 = vrot.slane %v4133_v16, 5  ;;  %v3228_v3 = vsel %vm6985_vm10, %v3223_v57, %v3227_v58  ;;  %v4473_v2 = vpack.c.b16 %v4448_v15, %v4447_v45  ;;  %v7912_v16 = vld [vmem:[#allocation2 + $0x74] sm:$0x1]  ;;  %v3468_v57 = vunpack.c.l.b16 %v3238_v27  ;;  %v6363_v45 = vld [vmem:[#allocation9 + $0x10] sm:$0xff] }
 0x255   : > { %8702 = vst [vmem:[#allocation99_spill] sm:$0xff] %v7885_v33  ;;  %v7887_v54 = vpop.f32.mrf.mxu2  ;;  %3769 = vmatmul.bf16.gmra.mxu1 %v3484_v61  ;;  %v4127_v61 = vshll.u32 %v3921_v43, 16  ;;  %v3243_v33 = vshll.u32 %v2876_v10, 16  ;;  %v3467_v58 = vunpack.c.l.b16 %v3228_v3  ;;  %v4143_v25 = vshll.u32 %v7912_v16, 16 }
 0x256   : > { %8703 = vst [vmem:[#allocation100_spill] sm:$0xff] %v7887_v54  ;;  %v3249_v54 = vshll.u32 %v2877_v13, 16  ;;  %v4140_v31 = vor.u32 %v4139_v59, %v7900_v41  ;;  %v4151_v3 = vshll.u32 %v3923_v12, 16  ;;  %5131 = vmatpush.bf16.msra.mxu1 %v6363_v45 }
 0x257   : > { %v4129_v48 = vrot.slane %v4127_v61, 5  ;;  %v3245_v10 = vrot.slane %v3243_v33, 5  ;;  %v7918_v61 = vld [vmem:[#allocation2 + $0x7c] sm:$0xf] }
 0x258   : > { %4671 = vmatmul.bf16.gmra.mxu3 %v6336_v46  ;;  %v3242_v46 = vrot.slane %v3240_v4, 4  ;;  %v3251_v13 = vrot.slane %v3249_v54, 5  ;;  %v4141_v59 = vrot.slane %v4140_v31, 4  ;;  %v3485_v4 = vpack.c.b16 %v3468_v57, %v3467_v58  ;;  %v6362_v31 = vld [vmem:[#allocation9 + $0x8] sm:$0xff]  ;;  %v6337_v58 = vld [vmem:[#allocation2 + $0x78] sm:$0xff] }
 0x259   : > { %v4130_v5 = vor.u32 %v4129_v48, %v4126_v34  ;;  %v4157_v24 = vshll.u32 %v7918_v61, 16  ;;  %v4153_v45 = vrot.slane %v4151_v3, 5  ;;  %v7941_v3 = vld [vmem:[#allocation2 + $0x8c] sm:$0x1] }
 0x25a   : > { %v7916_v15 = vpop.f32.mrf.mxu1  ;;  %v3246_v33 = vor.u32 %v3245_v10, %v3242_v46  ;;  %5132 = vmatpush.bf16.msra.mxu1 %v6362_v31 }
 0x25b   : > { %v7910_v43 = vpop.f32.mrf.mxu3  ;;  %8709 = vst [vmem:[#allocation106_spill] sm:$0xff] %v7916_v15  ;;  %v4131_v48 = vrot.slane %v4130_v5, 4  ;;  %v7933_v5 = vld [vmem:[#allocation2 + $0x80] sm:$0x1] }
 0x25c   : > { %v7902_v50 = vpop.f32.mrf.mxu0  ;;  %8708 = vst [vmem:[#allocation105_spill] sm:$0xff] %v7910_v43  ;;  %v4145_v43 = vrot.slane %v4143_v25, 5  ;;  %v6361_v25 = vld [vmem:[#allocation9] sm:$0xff] }
 0x25d   : > { %8706 = vst [vmem:[#allocation103_spill] sm:$0xff] %v7902_v50  ;;  %v7904_v7 = vpop.f32.mrf.mxu2  ;;  %v3255_v50 = vrot.slane %v3253_v39, 4  ;;  %v3259_v39 = vshll.u32 %v2878_v6, 16 }
 0x25e   : > { %8707 = vst [vmem:[#allocation104_spill] sm:$0xff] %v7904_v7  ;;  %v6288_v7 = vld [vmem:[#allocation2 + $0x60] sm:$0xff]  ;;  %v4146_v6 = vsel %vm6985_vm10, %v4141_v59, %v4145_v43  ;;  %5133 = vmatpush.bf16.msra.mxu1 %v6361_v25 }
 0x25f   : > { %4755 = vmatmul.bf16.gmra.mxu0 %v4473_v2  ;;  %v3256_v54 = vor.u32 %v3255_v50, %v3251_v13  ;;  %v4148_v2 = vshrl.u32 %v3923_v12, 16  ;;  %v3247_v50 = vrot.slane %v3246_v33, 4  ;;  %v3261_v10 = vrot.slane %v3259_v39, 5 }
 0x260   : > { %v4136_v12 = vsel %vm6985_vm10, %v4131_v48, %v7900_v41  ;;  %v4167_v48 = vshll.u32 %v7933_v5, 16 }
 0x261   : > { %v3257_v46 = vrot.slane %v3256_v54, 4  ;;  %v4150_v57 = vrot.slane %v4148_v2, 4  ;;  %v3252_v43 = vsel %vm6985_vm10, %v3247_v50, %v3251_v13  ;;  %v4449_v54 = vunpack.c.l.b16 %v4136_v12  ;;  %v3926_v2 = vld [vmem:[#allocation2 + $0x88] sm:$0xf] }
 0x262   : > { %2511 = vmatmul.bf16.gmra.mxu2 %v6288_v7  ;;  %v4161_v7 = vshrl.u32 %v7918_v61, 16  ;;  %v7939_v33 = vpop.f32.mrf.mxu1  ;;  %v4951_v31 = vrot.slane %v3926_v2, 5  ;;  %v3469_v50 = vunpack.c.l.b16 %v3252_v43 }
 0x263   : > { %v7926_v34 = vpop.f32.mrf.mxu3  ;;  %v3262_v59 = vsel %vm6985_vm10, %v3257_v46, %v3261_v10  ;;  %8713 = vst [vmem:[#allocation110_spill] sm:$0xff] %v7939_v33  ;;  %v4154_v39 = vor.u32 %v4153_v45, %v4150_v57  ;;  %v4847_v10 = vld [vmem:[#allocation2 + $0x84] sm:$0xe]  ;;  %v4954_v57 = vrot.slane %v7941_v3, 5  ;;  %v6289_v45 = vld [vmem:[#allocation2 + $0x6c] sm:$0xff] }
 0x264   : > { %v7920_v27 = vpop.f32.mrf.mxu0  ;;  %8712 = vst [vmem:[#allocation109_spill] sm:$0xff] %v7926_v34  ;;  %v4450_v34 = vunpack.c.l.b16 %v4146_v6  ;;  %v3470_v46 = vunpack.c.l.b16 %v3262_v59  ;;  %v4953_v12 = vrot.slane %v4951_v31, 4 }
 0x265   : > { %8710 = vst [vmem:[#allocation107_spill] sm:$0xff] %v7920_v27  ;;  %v7922_v55 = vpop.f32.mrf.mxu2  ;;  %3774 = vmatmul.bf16.gmra.mxu1 %v3485_v4  ;;  %v4159_v4 = vrot.slane %v4157_v24, 5  ;;  %v4163_v27 = vrot.slane %v4161_v7, 4  ;;  %v4155_v25 = vrot.slane %v4154_v39, 4 }
 0x266   : > { %8711 = vst [vmem:[#allocation108_spill] sm:$0xff] %v7922_v55  ;;  %v4474_v13 = vpack.c.b16 %v4450_v34, %v4449_v54  ;;  %v3486_v34 = vpack.c.b16 %v3470_v46, %v3469_v50  ;;  %v3925_v54 = vld [vmem:[#allocation2 + $0x84] sm:$0xf] }
 0x267   : > { %v4164_v7 = vor.u32 %v4163_v27, %v4159_v4  ;;  %v4160_v39 = vsel %vm6985_vm10, %v4155_v25, %v4159_v4  ;;  %v4172_v50 = vshrl.u32 %v3925_v54, 16  ;;  %v4175_v46 = vshll.u32 %v3925_v54, 16 }
 0x268   : > { %4676 = vmatmul.bf16.gmra.mxu3 %v6337_v58  ;;  %v6151_v58 = vrot.slane %v4847_v10, 9 }
 0x269   : > { %v4165_v55 = vrot.slane %v4164_v7, 4 }
 0x26a   : > { %v4952_v27 = vsel %vm6970_vm7, %v6151_v58, %v4951_v31  ;;  %v4185_v58 = vshrl.u32 %v3926_v2, 16 }
 0x26b   : > { %v4637_v6 = vpop.f32.mrf.mxu3  ;;  %v5032_v43 = vunpack.c.l.b16 %v4952_v27 }
 0x26c   : > { %v7943_v41 = vpop.f32.mrf.mxu0  ;;  %v4187_v25 = vrot.slane %v4185_v58, 4  ;;  %v6290_v58 = vld [vmem:[#allocation2 + $0x78] sm:$0xff] }
 0x26d   : > { %8714 = vst [vmem:[#allocation111_spill] sm:$0xff] %v7943_v41  ;;  %v7945_v24 = vpop.f32.mrf.mxu2  ;;  %v4169_v41 = vrot.slane %v4167_v48, 5  ;;  %v7963_v48 = vpop.f32.mrf.mxu1 }
 0x26e   : > { %8715 = vst [vmem:[#allocation112_spill] sm:$0xff] %v7945_v24  ;;  %v4955_v24 = vsel %vm6970_vm7, %v4953_v12, %v4954_v57  ;;  %v6323_v12 = vld [vmem:[#allocation8 + $0x150] sm:$0xff] }
 0x26f   : > { %4760 = vmatmul.bf16.gmra.mxu0 %v4474_v13  ;;  %v5033_v59 = vunpack.c.l.b16 %v4955_v24  ;;  %v4170_v7 = vsel %vm6985_vm10, %v4165_v55, %v4169_v41  ;;  %8717 = vst [vmem:[#allocation114_spill] sm:$0xff] %v7963_v48  ;;  %v4181_v24 = vshll.u32 %v3926_v2, 16  ;;  %v6338_v57 = vld [vmem:[#allocation2 + $0x84] sm:$0xff]  ;;  %3790 = vmatpush.bf16.msra.mxu2 %v6323_v12  ;;  %v7968_v48 = vld [vmem:[#allocation2 + $0x98] sm:$0x1] }
 0x270   : > { %v4452_v27 = vunpack.c.l.b16 %v4170_v7  ;;  %v4961_v37 = vrot.slane %v7968_v48, 5 }
 0x271   : > { %v7953_v10 = vpack.c.b16 %v5033_v59, %v5032_v43  ;;  %v4174_v43 = vrot.slane %v4172_v50, 4  ;;  %v4177_v59 = vrot.slane %v4175_v46, 5  ;;  %v4183_v4 = vrot.slane %v4181_v24, 5 }
 0x272   : > { %2516 = vmatmul.bf16.gmra.mxu2 %v6289_v45  ;;  %v4451_v45 = vunpack.c.l.b16 %v4160_v39 }
 0x273   : > { %v4639_v31 = vpop.f32.mrf.mxu3  ;;  %v4178_v39 = vor.u32 %v4177_v59, %v4174_v43  ;;  %v4188_v7 = vor.u32 %v4187_v25, %v4183_v4  ;;  %v3927_v59 = vld [vmem:[#allocation2 + $0x90] sm:$0xf] }
 0x274   : > { %v7955_v33 = vpop.f32.mrf.mxu0  ;;  %v4475_v15 = vpack.c.b16 %v4452_v27, %v4451_v45 }
 0x275   : > { %8716 = vst [vmem:[#allocation113_spill] sm:$0xff] %v7955_v33  ;;  %v7957_v13 = vpop.f32.mrf.mxu2  ;;  %3779 = vmatmul.bf16.gmra.mxu1 %v3486_v34  ;;  %v3928_v33 = vld [vmem:[#allocation2 + $0x94] sm:$0xf]  ;;  %v4191_v34 = vshll.u32 %v7941_v3, 16  ;;  %v7972_v24 = vpop.f32.mrf.mxu1 }
 0x276   : > { %v4958_v54 = vrot.slane %v3928_v33, 5  ;;  %8718 = vst [vmem:[#allocation115_spill] sm:$0xff] %v7972_v24 }
 0x277   : > { %v4193_v20 = vrot.slane %v4191_v34, 5 }
 0x278   : > { %4681 = vmatmul.bf16.gmra.mxu3 %v6338_v57  ;;  %v4848_v57 = vld [vmem:[#allocation2 + $0x90] sm:$0xe]  ;;  %v4960_v46 = vrot.slane %v4958_v54, 4 }
 0x279   : > { %v6152_v50 = vrot.slane %v4848_v57, 9 }
 0x27a   : > { %v4962_v45 = vsel %vm6970_vm7, %v4960_v46, %v4961_v37  ;;  %v4196_v37 = vshrl.u32 %v3927_v59, 16  ;;  %v4209_v46 = vshrl.u32 %v3928_v33, 16 }
 0x27b   : > { %v4642_v12 = vpop.f32.mrf.mxu3  ;;  %v4959_v3 = vsel %vm6970_vm7, %v6152_v50, %v4958_v54  ;;  %v5035_v43 = vunpack.c.l.b16 %v4962_v45  ;;  %v4205_v50 = vshll.u32 %v3928_v33, 16 }
 0x27c   : > { %v4726_v55 = vpop.f32.mrf.mxu0  ;;  %v5034_v27 = vunpack.c.l.b16 %v4959_v3 }
 0x27d   : > { %v7965_v41 = vpop.f32.mrf.mxu2  ;;  %v7970_v2 = vadd.f32 %v4726_v55, %v4637_v6  ;;  %v4179_v6 = vrot.slane %v4178_v39, 4  ;;  %v4189_v55 = vrot.slane %v4188_v7, 4  ;;  %v4199_v7 = vshll.u32 %v3927_v59, 16  ;;  %v7990_v3 = vpop.f32.mrf.mxu1 }
 0x27e   : > { %8719 = vst [vmem:[#allocation116_spill] sm:$0xff] %v7990_v3  ;;  %v4215_v3 = vshll.u32 %v7968_v48, 16 }
 0x27f   : > { %4765 = vmatmul.bf16.gmra.mxu0 %v4475_v15  ;;  %v7981_v15 = vpack.c.b16 %v5035_v43, %v5034_v27  ;;  %v4184_v54 = vsel %vm6985_vm10, %v4179_v6, %v4183_v4  ;;  %v4194_v39 = vsel %vm6985_vm10, %v4189_v55, %v4193_v20  ;;  %v4201_v43 = vrot.slane %v4199_v7, 5  ;;  %v7994_v6 = vld [vmem:[#allocation2 + $0xa4] sm:$0x1] }
 0x280   : > { %v4453_v45 = vunpack.c.l.b16 %v4184_v54  ;;  %v4454_v27 = vunpack.c.l.b16 %v4194_v39  ;;  %v4965_v20 = vrot.slane %v3930_v11, 5  ;;  %v4849_v54 = vld [vmem:[#allocation2 + $0x9c] sm:$0xe]  ;;  %v4217_v48 = vrot.slane %v4215_v3, 5 }
 0x282   : > { %2521 = vmatmul.bf16.gmra.mxu2 %v6290_v58  ;;  %v6339_v58 = vld [vmem:[#allocation2 + $0x90] sm:$0xff]  ;;  %v4476_v33 = vpack.c.b16 %v4454_v27, %v4453_v45  ;;  %v4967_v7 = vrot.slane %v4965_v20, 4 }
 0x283   : > { %v4644_v34 = vpop.f32.mrf.mxu3 }
 0x284   : > { %v4728_v25 = vpop.f32.mrf.mxu0 }
 0x285   : > { %v7979_v57 = vpop.f32.mrf.mxu2  ;;  %v7983_v24 = vadd.f32 %v4728_v25, %v4639_v31  ;;  %5134 = vmatmul.bf16.vlgmr.msra.gmra.mxu1 %v7606_v9  ;;  %v4198_v31 = vrot.slane %v4196_v37, 4  ;;  %v4207_v9 = vrot.slane %v4205_v50, 5  ;;  %v4211_v25 = vrot.slane %v4209_v46, 4  ;;  %v6291_v50 = vld [vmem:[#allocation2 + $0x84] sm:$0xff] }
 0x286   : > { %v6153_v37 = vrot.slane %v4849_v54, 9  ;;  %v4968_v46 = vrot.slane %v7994_v6, 5 }
 0x287   : > { %v4202_v39 = vor.u32 %v4201_v43, %v4198_v31  ;;  %v8004_v43 = vpop.f32.mrf.mxu1 }
 0x288   : > { %4686 = vmatmul.bf16.gmra.mxu3 %v6339_v58  ;;  %v4212_v58 = vor.u32 %v4211_v25, %v4207_v9  ;;  %v4966_v49 = vsel %vm6970_vm7, %v6153_v37, %v4965_v20  ;;  %8721 = vst [vmem:[#allocation118_spill] sm:$0xff] %v8004_v43  ;;  %v4220_v37 = vshrl.u32 %v3929_v63, 16  ;;  %v3932_v43 = vld [vmem:[#allocation2 + $0xac] sm:$0xf] }
 0x289   : > { %v4203_v45 = vrot.slane %v4202_v39, 4  ;;  %v4257_v18 = vshrl.u32 %v3932_v43, 16 }
 0x28a   : > { %v4213_v27 = vrot.slane %v4212_v58, 4  ;;  %v4229_v58 = vshll.u32 %v3930_v11, 16 }
 0x28b   : > { %v4647_v59 = vpop.f32.mrf.mxu3  ;;  %v4208_v3 = vsel %vm6985_vm10, %v4203_v45, %v4207_v9  ;;  %v4972_v9 = vrot.slane %v3932_v43, 5 }
 0x28c   : > { %v4731_v36 = vpop.f32.mrf.mxu0  ;;  %v4218_v39 = vsel %vm6985_vm10, %v4213_v27, %v4217_v48 }
 0x28d   : > { %v7992_v4 = vpop.f32.mrf.mxu2  ;;  %v7996_v55 = vadd.f32 %v4731_v36, %v4642_v12  ;;  %v4969_v36 = vsel %vm6970_vm7, %v4967_v7, %v4968_v46  ;;  %v5036_v12 = vunpack.c.l.b16 %v4966_v49  ;;  %v4223_v7 = vshll.u32 %v3929_v63, 16  ;;  %v6322_v49 = vld [vmem:[#allocation8 + $0x148] sm:$0xff]  ;;  %v8017_v63 = vld [vmem:[#allocation2 + $0xb0] sm:$0x1] }
 0x28e   : > { %v5037_v31 = vunpack.c.l.b16 %v4969_v36  ;;  %v6340_v46 = vld [vmem:[#allocation2 + $0x9c] sm:$0xff]  ;;  %3791 = vmatpush.bf16.msra.mxu2 %v6322_v49  ;;  %v4455_v36 = vunpack.c.l.b16 %v4208_v3  ;;  %v4239_v3 = vshll.u32 %v7994_v6, 16 }
 0x28f   : > { %8720 = vst [vmem:[#allocation117_spill] sm:$0xff] %v7996_v55  ;;  %4770 = vmatmul.bf16.gmra.mxu0 %v4476_v33  ;;  %v8021_v45 = vpop.f32.mrf.mxu1 }
 0x290   : > { %v8008_v54 = vpack.c.b16 %v5037_v31, %v5036_v12  ;;  %v4456_v12 = vunpack.c.l.b16 %v4218_v39  ;;  %v4225_v31 = vrot.slane %v4223_v7, 5  ;;  %8725 = vst [vmem:[#allocation122_spill] sm:$0xff] %v8021_v45 }
 0x292   : > { %2526 = vmatmul.bf16.gmra.mxu2 %v6291_v50  ;;  %v4233_v50 = vshrl.u32 %v3930_v11, 16  ;;  %v4477_v11 = vpack.c.b16 %v4456_v12, %v4455_v36 }
 0x293   : > { %v4649_v20 = vpop.f32.mrf.mxu3 }
 0x294   : > { %v4733_v25 = vpop.f32.mrf.mxu0 }
 0x295   : > { %v8006_v33 = vpop.f32.mrf.mxu2  ;;  %v8010_v17 = vadd.f32 %v4733_v25, %v4644_v34  ;;  %5139 = vmatmul.bf16.gmra.mxu1 %v7631_v21  ;;  %v4222_v34 = vrot.slane %v4220_v37, 4  ;;  %v4231_v21 = vrot.slane %v4229_v58, 5  ;;  %v4235_v25 = vrot.slane %v4233_v50, 4  ;;  %v4850_v37 = vld [vmem:[#allocation2 + $0xa8] sm:$0xe] }
 0x296   : > { %8722 = vst [vmem:[#allocation119_spill] sm:$0xff] %v8006_v33  ;;  %v6154_v39 = vrot.slane %v4850_v37, 9  ;;  %v4974_v58 = vrot.slane %v4972_v9, 4  ;;  %v4975_v50 = vrot.slane %v8017_v63, 5  ;;  %v3931_v33 = vld [vmem:[#allocation2 + $0xa8] sm:$0xf] }
 0x297   : > { %8723 = vst [vmem:[#allocation120_spill] sm:$0xff] %v8010_v17  ;;  %v4226_v49 = vor.u32 %v4225_v31, %v4222_v34  ;;  %v4236_v7 = vor.u32 %v4235_v25, %v4231_v21  ;;  %v4241_v34 = vrot.slane %v4239_v3, 5  ;;  %v4244_v31 = vshrl.u32 %v3931_v33, 16  ;;  %v6341_v3 = vld [vmem:[#allocation2 + $0xa8] sm:$0xff] }
 0x298   : > { %4691 = vmatmul.bf16.gmra.mxu3 %v6340_v46  ;;  %v6292_v46 = vld [vmem:[#allocation2 + $0x90] sm:$0xff]  ;;  %v4247_v25 = vshll.u32 %v3931_v33, 16  ;;  %v8044_v33 = vpop.f32.mrf.mxu1 }
 0x299   : > { %v4227_v12 = vrot.slane %v4226_v49, 4  ;;  %v4237_v6 = vrot.slane %v4236_v7, 4  ;;  %8728 = vst [vmem:[#allocation125_spill] sm:$0xff] %v8044_v33  ;;  %v4246_v7 = vrot.slane %v4244_v31, 4 }
 0x29b   : > { %v4652_v48 = vpop.f32.mrf.mxu3  ;;  %v4242_v49 = vsel %vm6985_vm10, %v4237_v6, %v4241_v34 }
 0x29c   : > { %v4736_v17 = vpop.f32.mrf.mxu0 }
 0x29d   : > { %v8019_v14 = vpop.f32.mrf.mxu2  ;;  %v8023_v27 = vadd.f32 %v4736_v17, %v4647_v59  ;;  %v4976_v17 = vsel %vm6970_vm7, %v4974_v58, %v4975_v50  ;;  %v4259_v50 = vrot.slane %v4257_v18, 4 }
 0x29e   : > { %8724 = vst [vmem:[#allocation121_spill] sm:$0xff] %v8019_v14  ;;  %v4973_v14 = vsel %vm6970_vm7, %v6154_v39, %v4972_v9  ;;  %v5039_v36 = vunpack.c.l.b16 %v4976_v17  ;;  %v4249_v39 = vrot.slane %v4247_v25, 5  ;;  %v4851_v25 = vld [vmem:[#allocation2 + $0xb4] sm:$0xe] }
 0x29f   : > { %8726 = vst [vmem:[#allocation123_spill] sm:$0xff] %v8023_v27  ;;  %4775 = vmatmul.bf16.gmra.mxu0 %v4477_v11  ;;  %v5038_v59 = vunpack.c.l.b16 %v4973_v14  ;;  %v4253_v27 = vshll.u32 %v3932_v43, 16  ;;  %v4232_v14 = vsel %vm6985_vm10, %v4227_v12, %v4231_v21 }
 0x2a0   : > { %v4457_v43 = vunpack.c.l.b16 %v4232_v14 }
 0x2a1   : > { %v8031_v37 = vpack.c.b16 %v5039_v36, %v5038_v59  ;;  %v4255_v58 = vrot.slane %v4253_v27, 5  ;;  %v4263_v36 = vshll.u32 %v8017_v63, 16  ;;  %v6155_v27 = vrot.slane %v4851_v25, 9 }
 0x2a2   : > { %2531 = vmatmul.bf16.gmra.mxu2 %v6292_v46  ;;  %v3952_v46 = vld [vmem:[#allocation2 + $0xbc] sm:$0x1] }
 0x2a3   : > { %v8038_v9 = vpop.f32.mrf.mxu3  ;;  %v4260_v21 = vor.u32 %v4259_v50, %v4255_v58  ;;  %v4982_v14 = vrot.slane %v3952_v46, 5  ;;  %v8055_v50 = vpop.f32.mrf.mxu1 }
 0x2a4   : > { %v4738_v45 = vpop.f32.mrf.mxu0  ;;  %8727 = vst [vmem:[#allocation124_spill] sm:$0xff] %v8038_v9 }
 0x2a5   : > { %v8033_v11 = vpop.f32.mrf.mxu2  ;;  %v8035_v55 = vadd.f32 %v4738_v45, %v4649_v20  ;;  %5144 = vmatmul.bf16.gmra.mxu1 %v7657_v30  ;;  %v4458_v20 = vunpack.c.l.b16 %v4242_v49  ;;  %v4250_v45 = vor.u32 %v4249_v39, %v4246_v7  ;;  %v3934_v30 = vld [vmem:[#allocation2 + $0xb8] sm:$0xf]  ;;  %v6293_v49 = vld [vmem:[#allocation2 + $0x9c] sm:$0xff]  ;;  %v4261_v7 = vrot.slane %v4260_v21, 4  ;;  %8730 = vst [vmem:[#allocation127_spill] sm:$0xff] %v8055_v50 }
 0x2a6   : > { %v4979_v12 = vrot.slane %v3934_v30, 5  ;;  %v4265_v39 = vrot.slane %v4263_v36, 5 }
 0x2a7   : > { %v4478_v34 = vpack.c.b16 %v4458_v20, %v4457_v43  ;;  %v3933_v20 = vld [vmem:[#allocation2 + $0xb4] sm:$0xf] }
 0x2a8   : > { %4696 = vmatmul.bf16.gmra.mxu3 %v6341_v3  ;;  %v4981_v18 = vrot.slane %v4979_v12, 4  ;;  %v4251_v3 = vrot.slane %v4250_v45, 4  ;;  %v4980_v33 = vsel %vm6970_vm7, %v6155_v27, %v4979_v12  ;;  %v4266_v21 = vsel %vm6985_vm10, %v4261_v7, %v4265_v39 }
 0x2a9   : > { %v4268_v12 = vshrl.u32 %v3933_v20, 16  ;;  %v4271_v27 = vshll.u32 %v3933_v20, 16 }
 0x2aa   : > { %v4983_v63 = vsel %vm6970_vm7, %v4981_v18, %v4982_v14  ;;  %v4256_v45 = vsel %vm6985_vm10, %v4251_v3, %v4255_v58  ;;  %v4281_v18 = vshrl.u32 %v3934_v30, 16  ;;  %v6321_v14 = vld [vmem:[#allocation8 + $0x140] sm:$0xff] }
 0x2ab   : > { %v4657_v31 = vpop.f32.mrf.mxu3  ;;  %v5041_v43 = vunpack.c.l.b16 %v4983_v63  ;;  %3792 = vmatpush.bf16.msra.mxu2 %v6321_v14  ;;  %v4459_v63 = vunpack.c.l.b16 %v4256_v45  ;;  %v4273_v50 = vrot.slane %v4271_v27, 5  ;;  %v8068_v3 = vpop.f32.mrf.mxu1  ;;  %v6294_v45 = vld [vmem:[#allocation2 + $0xa8] sm:$0xff] }
 0x2ac   : > { %v4741_v17 = vpop.f32.mrf.mxu0  ;;  %v4283_v58 = vrot.slane %v4281_v18, 4  ;;  %8733 = vst [vmem:[#allocation130_spill] sm:$0xff] %v8068_v3  ;;  %v8074_v18 = vld [vmem:[#allocation2 + $0xc4] sm:$0xf] }
 0x2ad   : > { %v8046_v59 = vpop.f32.mrf.mxu2  ;;  %v8049_v6 = vadd.f32 %v4741_v17, %v4652_v48  ;;  %v5040_v48 = vunpack.c.l.b16 %v4980_v33  ;;  %v4277_v33 = vshll.u32 %v3934_v30, 16 }
 0x2af   : > { %8729 = vst [vmem:[#allocation126_spill] sm:$0xff] %v8049_v6  ;;  %4780 = vmatmul.bf16.gmra.mxu0 %v4478_v34  ;;  %v8057_v17 = vpack.c.b16 %v5041_v43, %v5040_v48  ;;  %v4460_v48 = vunpack.c.l.b16 %v4266_v21  ;;  %v4270_v43 = vrot.slane %v4268_v12, 4  ;;  %v4287_v6 = vshll.u32 %v3952_v46, 16 }
 0x2b1   : > { %v4479_v39 = vpack.c.b16 %v4460_v48, %v4459_v63  ;;  %v4274_v30 = vor.u32 %v4273_v50, %v4270_v43  ;;  %v4289_v27 = vrot.slane %v4287_v6, 5  ;;  %v4301_v43 = vshll.u32 %v8074_v18, 16 }
 0x2b2   : > { %2536 = vmatmul.bf16.gmra.mxu2 %v6293_v49  ;;  %v6342_v49 = vld [vmem:[#allocation2 + $0xb4] sm:$0xff] }
 0x2b3   : > { %v4659_v36 = vpop.f32.mrf.mxu3  ;;  %v4275_v21 = vrot.slane %v4274_v30, 4  ;;  %v8078_v63 = vpop.f32.mrf.mxu1 }
 0x2b4   : > { %v8059_v25 = vpop.f32.mrf.mxu0  ;;  %8735 = vst [vmem:[#allocation132_spill] sm:$0xff] %v8078_v63  ;;  %v8089_v63 = vld [vmem:[#allocation2 + $0xc8] sm:$0x1] }
 0x2b5   : > { %8731 = vst [vmem:[#allocation128_spill] sm:$0xff] %v8059_v25  ;;  %v8061_v34 = vpop.f32.mrf.mxu2  ;;  %5149 = vmatmul.bf16.gmra.mxu1 %v7690_v23  ;;  %v4279_v25 = vrot.slane %v4277_v33, 5  ;;  %v3935_v33 = vld [vmem:[#allocation2 + $0xc0] sm:$0xf] }
 0x2b6   : > { %8732 = vst [vmem:[#allocation129_spill] sm:$0xff] %v8061_v34  ;;  %v4292_v6 = vshrl.u32 %v3935_v33, 16  ;;  %v4295_v48 = vshll.u32 %v3935_v33, 16 }
 0x2b7   : > { %v4284_v34 = vor.u32 %v4283_v58, %v4279_v25  ;;  %v4280_v46 = vsel %vm6985_vm10, %v4275_v21, %v4279_v25  ;;  %v4305_v58 = vshrl.u32 %v8074_v18, 16 }
 0x2b8   : > { %4701 = vmatmul.bf16.gmra.mxu3 %v6342_v49 }
 0x2b9   : > { %v4285_v12 = vrot.slane %v4284_v34, 4 }
 0x2bb   : > { %v4662_v20 = vpop.f32.mrf.mxu3  ;;  %v4290_v34 = vsel %vm6985_vm10, %v4285_v12, %v4289_v27 }
 0x2bc   : > { %v4746_v7 = vpop.f32.mrf.mxu0  ;;  %v4462_v30 = vunpack.c.l.b16 %v4290_v34  ;;  %v6295_v34 = vld [vmem:[#allocation2 + $0xb4] sm:$0xff] }
 0x2bd   : > { %v8070_v23 = vpop.f32.mrf.mxu2  ;;  %v8072_v9 = vadd.f32 %v4746_v7, %v4657_v31  ;;  %v6343_v7 = vld [vmem:[#allocation2 + $0xc0] sm:$0xff] }
 0x2bf   : > { %4785 = vmatmul.bf16.gmra.mxu0 %v4479_v39  ;;  %v4461_v39 = vunpack.c.l.b16 %v4280_v46  ;;  %v8096_v46 = vpop.f32.mrf.mxu1 }
 0x2c0   : > { %8738 = vst [vmem:[#allocation135_spill] sm:$0xff] %v8096_v46 }
 0x2c1   : > { %v4480_v27 = vpack.c.b16 %v4462_v30, %v4461_v39 }
 0x2c2   : > { %2541 = vmatmul.bf16.gmra.mxu2 %v6294_v45  ;;  %v4297_v45 = vrot.slane %v4295_v48, 5 }
 0x2c3   : > { %v4664_v50 = vpop.f32.mrf.mxu3 }
 0x2c4   : > { %v4748_v14 = vpop.f32.mrf.mxu0 }
 0x2c5   : > { %v8076_v49 = vpop.f32.mrf.mxu2  ;;  %v8080_v31 = vadd.f32 %v4748_v14, %v4659_v36  ;;  %5154 = vmatmul.bf16.gmra.mxu1 %v7733_v28  ;;  %v4294_v36 = vrot.slane %v4292_v6, 4  ;;  %v4303_v28 = vrot.slane %v4301_v43, 5  ;;  %v4307_v14 = vrot.slane %v4305_v58, 4 }
 0x2c6   : > { %8734 = vst [vmem:[#allocation131_spill] sm:$0xff] %v8076_v49  ;;  %v4311_v49 = vshll.u32 %v8089_v63, 16 }
 0x2c7   : > { %8736 = vst [vmem:[#allocation133_spill] sm:$0xff] %v8080_v31  ;;  %v4298_v3 = vor.u32 %v4297_v45, %v4294_v36  ;;  %v4308_v31 = vor.u32 %v4307_v14, %v4303_v28  ;;  %v8107_v36 = vpop.f32.mrf.mxu1 }
 0x2c8   : > { %4706 = vmatmul.bf16.gmra.mxu3 %v6343_v7  ;;  %v4313_v43 = vrot.slane %v4311_v49, 5  ;;  %8739 = vst [vmem:[#allocation136_spill] sm:$0xff] %v8107_v36 }
 0x2c9   : > { %v4299_v6 = vrot.slane %v4298_v3, 4  ;;  %v4309_v48 = vrot.slane %v4308_v31, 4 }
 0x2cb   : > { %v4667_v33 = vpop.f32.mrf.mxu3  ;;  %v4304_v39 = vsel %vm6985_vm10, %v4299_v6, %v4303_v28  ;;  %v4314_v30 = vsel %vm6985_vm10, %v4309_v48, %v4313_v43  ;;  %v4937_v6 = vrot.slane %v7883_v1, 5 }
 0x2cc   : > { %v4751_v25 = vpop.f32.mrf.mxu0  ;;  %v4463_v45 = vunpack.c.l.b16 %v4304_v39  ;;  %v4464_v3 = vunpack.c.l.b16 %v4314_v30  ;;  %v4940_v39 = vrot.slane %v7912_v16, 5 }
 0x2cd   : > { %v8091_v21 = vpop.f32.mrf.mxu2  ;;  %v8093_v12 = vadd.f32 %v4751_v25, %v4662_v20  ;;  %v4939_v43 = vrot.slane %v4937_v6, 4 }
 0x2ce   : > { %8737 = vst [vmem:[#allocation134_spill] sm:$0xff] %v8091_v21 }
 0x2cf   : > { %4790 = vmatmul.bf16.gmra.mxu0 %v4480_v27  ;;  %v8113_v27 = vpop.f32.mrf.mxu1 }
 0x2d0   : > { %8740 = vst [vmem:[#allocation137_spill] sm:$0xff] %v8113_v27 }
 0x2d2   : > { %2546 = vmatmul.bf16.gmra.mxu2 %v6295_v34 }
 0x2d3   : > { %v4669_v20 = vpop.f32.mrf.mxu3 }
 0x2d4   : > { %v4753_v58 = vpop.f32.mrf.mxu0 }
 0x2d5   : > { %v8098_v7 = vpop.f32.mrf.mxu2  ;;  %v8100_v21 = vadd.f32 %v4753_v58, %v4664_v50  ;;  %5159 = vmatmul.bf16.gmra.mxu1 %v7784_v60  ;;  %v4481_v50 = vpack.c.b16 %v4464_v3, %v4463_v45  ;;  %v6296_v60 = vld [vmem:[#allocation2 + $0xc0] sm:$0xff] }
 0x2db   : > { %v4672_v25 = vpop.f32.mrf.mxu3 }
 0x2dc   : > { %v4756_v31 = vpop.f32.mrf.mxu0 }
 0x2dd   : > { %v8109_v49 = vpop.f32.mrf.mxu2  ;;  %v8111_v14 = vadd.f32 %v4756_v31, %v4667_v33  ;;  %v4845_v33 = vld [vmem:[#allocation2 + $0x6c] sm:$0xe]  ;;  %v4941_v31 = vsel %vm6970_vm7, %v4939_v43, %v4940_v39  ;;  %v4944_v39 = vrot.slane %v7918_v61, 5 }
 0x2de   : > { %v6149_v3 = vrot.slane %v4845_v33, 9 }
 0x2df   : > { %4795 = vmatmul.bf16.gmra.mxu0 %v4481_v50  ;;  %v8126_v50 = vpop.f32.mrf.mxu1 }
 0x2e0   : > { %8742 = vst [vmem:[#allocation139_spill] sm:$0xff] %v8126_v50  ;;  %v4938_v1 = vsel %vm6970_vm7, %v6149_v3, %v4937_v6  ;;  %v6485_v6 = vld [vmem:[#allocation2 + $0x20] sm:$0x1] }
 0x2e1   : > { %v5028_v16 = vunpack.c.l.b16 %v4938_v1  ;;  %v3339_v3 = vrot.slane %v6485_v6, 5 }
 0x2e2   : > { %2551 = vmatmul.bf16.gmra.mxu2 %v6296_v60 }
 0x2e3   : > { %v4674_v58 = vpop.f32.mrf.mxu3 }
 0x2e4   : > { %v4758_v28 = vpop.f32.mrf.mxu0 }
 0x2e5   : > { %v8115_v34 = vpop.f32.mrf.mxu2  ;;  %v8118_v48 = vadd.f32 %v4758_v28, %v4669_v20  ;;  %5164 = vmatmul.bf16.gmra.mxu1 %v7812_v0  ;;  %v5029_v0 = vunpack.c.l.b16 %v4941_v31  ;;  %v6484_v20 = vld [vmem:[#allocation2 + $0x1c] sm:$0xf] }
 0x2e6   : > { %v3336_v28 = vrot.slane %v6484_v20, 5 }
 0x2e7   : > { %v5053_v36 = vpack.c.b16 %v5029_v0, %v5028_v16  ;;  %v8138_v31 = vpop.f32.mrf.mxu1  ;;  %v4946_v0 = vrot.slane %v4944_v39, 4  ;;  %v4947_v16 = vrot.slane %v7933_v5, 5 }
 0x2e8   : > { %v3338_v43 = vrot.slane %v3336_v28, 4  ;;  %8745 = vst [vmem:[#allocation142_spill] sm:$0xff] %v8138_v31 }
 0x2eb   : > { %v4677_v27 = vpop.f32.mrf.mxu3 }
 0x2ec   : > { %v4761_v30 = vpop.f32.mrf.mxu0 }
 0x2ed   : > { %v8122_v45 = vpop.f32.mrf.mxu2  ;;  %v8128_v60 = vadd.f32 %v4761_v30, %v4672_v25  ;;  %v4846_v30 = vld [vmem:[#allocation2 + $0x78] sm:$0xe] }
 0x2ee   : > { %8741 = vst [vmem:[#allocation138_spill] sm:$0xff] %v8122_v45  ;;  %v3264_v45 = vld [vmem:[#allocation2 + $0x18] sm:$0xe]  ;;  %v6150_v1 = vrot.slane %v4846_v30, 9 }
 0x2ef   : > { %v5935_v20 = vrot.slane %v3264_v45, 9  ;;  %v4948_v45 = vsel %vm6970_vm7, %v4946_v0, %v4947_v16  ;;  %v6487_v0 = vld [vmem:[#allocation2 + $0x2c] sm:$0x1] }
 0x2f0   : > { %v5031_v5 = vunpack.c.l.b16 %v4948_v45  ;;  %v3346_v16 = vrot.slane %v6487_v0, 5 }
 0x2f1   : > { %v3337_v50 = vsel %vm6970_vm7, %v5935_v20, %v3336_v28  ;;  %v8153_v28 = vpop.f32.mrf.mxu1 }
 0x2f2   : > { %3793 = vmatmul.bf16.vlgmr.msra.gmra.mxu2 %v7683_v47  ;;  %v3340_v47 = vsel %vm6970_vm7, %v3338_v43, %v3339_v3  ;;  %v3505_v30 = vunpack.c.l.b16 %v3337_v50  ;;  %8747 = vst [vmem:[#allocation144_spill] sm:$0xff] %v8153_v28 }
 0x2f3   : > { %v3506_v61 = vunpack.c.l.b16 %v3340_v47  ;;  %v4679_v43 = vpop.f32.mrf.mxu3 }
 0x2f4   : > { %v4763_v46 = vpop.f32.mrf.mxu0 }
 0x2f5   : > { %v8133_v33 = vpop.f32.mrf.mxu2  ;;  %v8136_v25 = vadd.f32 %v4763_v46, %v4674_v58  ;;  %5169 = vmatmul.bf16.gmra.mxu1 %v5053_v36  ;;  %v4945_v36 = vsel %vm6970_vm7, %v6150_v1, %v4944_v39  ;;  %v3536_v3 = vpack.c.b16 %v3506_v61, %v3505_v30 }
 0x2f6   : > { %8743 = vst [vmem:[#allocation140_spill] sm:$0xff] %v8133_v33  ;;  %v5030_v31 = vunpack.c.l.b16 %v4945_v36 }
 0x2f7   : > { %8744 = vst [vmem:[#allocation141_spill] sm:$0xff] %v8136_v25  ;;  %v6486_v25 = vld [vmem:[#allocation2 + $0x28] sm:$0xf] }
 0x2f8   : > { %v3343_v33 = vrot.slane %v6486_v25, 5  ;;  %v5054_v20 = vpack.c.b16 %v5031_v5, %v5030_v31 }
 0x2f9   : > { %v8163_v36 = vpop.f32.mrf.mxu1 }
 0x2fa   : > { %v3345_v39 = vrot.slane %v3343_v33, 4  ;;  %8748 = vst [vmem:[#allocation145_spill] sm:$0xff] %v8163_v36 }
 0x2fb   : > { %v4682_v50 = vpop.f32.mrf.mxu3 }
 0x2fc   : > { %v4766_v46 = vpop.f32.mrf.mxu0 }
 0x2fd   : > { %v8145_v58 = vpop.f32.mrf.mxu2  ;;  %v8151_v6 = vadd.f32 %v4766_v46, %v4677_v27  ;;  %v3265_v27 = vld [vmem:[#allocation2 + $0x24] sm:$0xe]  ;;  %v3347_v46 = vsel %vm6970_vm7, %v3345_v39, %v3346_v16 }
 0x2fe   : > { %8746 = vst [vmem:[#allocation143_spill] sm:$0xff] %v8145_v58  ;;  %v5936_v61 = vrot.slane %v3265_v27, 9  ;;  %v3508_v31 = vunpack.c.l.b16 %v3347_v46  ;;  %v6489_v46 = vld [vmem:[#allocation2 + $0x38] sm:$0x1] }
 0x300   : > { %v3344_v25 = vsel %vm6970_vm7, %v5936_v61, %v3343_v33  ;;  %v3266_v61 = vld [vmem:[#allocation2 + $0x30] sm:$0xe] }
 0x301   : > { %v8171_v16 = vpop.f32.mrf.mxu1 }
 0x302   : > { %3798 = vmatmul.bf16.gmra.mxu2 %v3536_v3  ;;  %v3507_v3 = vunpack.c.l.b16 %v3344_v25  ;;  %8751 = vst [vmem:[#allocation148_spill] sm:$0xff] %v8171_v16 }
 0x303   : > { %v4684_v0 = vpop.f32.mrf.mxu3 }
 0x304   : > { %v4768_v47 = vpop.f32.mrf.mxu0  ;;  %v3537_v5 = vpack.c.b16 %v3508_v31, %v3507_v3 }
 0x305   : > { %v8155_v58 = vpop.f32.mrf.mxu2  ;;  %v8157_v1 = vadd.f32 %v4768_v47, %v4679_v43  ;;  %5174 = vmatmul.bf16.gmra.mxu1 %v5054_v20  ;;  %v6488_v20 = vld [vmem:[#allocation2 + $0x34] sm:$0xf] }
 0x306   : > { %v3350_v47 = vrot.slane %v6488_v20, 5 }
 0x308   : > { %v3352_v39 = vrot.slane %v3350_v47, 4 }
 0x30b   : > { %v4687_v3 = vpop.f32.mrf.mxu3 }
 0x30c   : > { %v4771_v45 = vpop.f32.mrf.mxu0 }
 0x30d   : > { %v8165_v30 = vpop.f32.mrf.mxu2  ;;  %v8167_v43 = vadd.f32 %v4771_v45, %v4682_v50  ;;  %v3353_v50 = vrot.slane %v6489_v46, 5  ;;  %v5937_v45 = vrot.slane %v3266_v61, 9 }
 0x30f   : > { %8749 = vst [vmem:[#allocation146_spill] sm:$0xff] %v8167_v43  ;;  %v3354_v25 = vsel %vm6970_vm7, %v3352_v39, %v3353_v50  ;;  %v3351_v31 = vsel %vm6970_vm7, %v5937_v45, %v3350_v47  ;;  %v3267_v47 = vld [vmem:[#allocation2 + $0x3c] sm:$0xe]  ;;  %v6491_v50 = vld [vmem:[#allocation2 + $0x44] sm:$0x1] }
 0x310   : > { %v3360_v45 = vrot.slane %v6491_v50, 5  ;;  %v6499_v43 = vld [vmem:[#allocation2 + $0x74] sm:$0x1] }
 0x312   : > { %3803 = vmatmul.bf16.gmra.mxu2 %v3537_v5  ;;  %v3510_v5 = vunpack.c.l.b16 %v3354_v25  ;;  %v5938_v25 = vrot.slane %v3267_v47, 9 }
 0x314   : > { %v4773_v27 = vpop.f32.mrf.mxu0 }
 0x315   : > { %v8169_v28 = vpop.f32.mrf.mxu2  ;;  %v8173_v33 = vadd.f32 %v4773_v27, %v4684_v0  ;;  %5179 = vmatmul.bf16.gmra.mxu1 %v7953_v10  ;;  %v3509_v0 = vunpack.c.l.b16 %v3351_v31  ;;  %v8184_v27 = vpop.f32.mrf.mxu1 }
 0x316   : > { %8750 = vst [vmem:[#allocation147_spill] sm:$0xff] %v8169_v28 }
 0x317   : > { %8752 = vst [vmem:[#allocation149_spill] sm:$0xff] %v8173_v33  ;;  %v3538_v10 = vpack.c.b16 %v3510_v5, %v3509_v0  ;;  %v6490_v33 = vld [vmem:[#allocation2 + $0x40] sm:$0xf] }
 0x318   : > { %8755 = vst [vmem:[#allocation152_spill] sm:$0xff] %v8184_v27  ;;  %v3357_v46 = vrot.slane %v6490_v33, 5  ;;  %v6492_v27 = vld [vmem:[#allocation2 + $0x4c] sm:$0xf] }
 0x31a   : > { %v3359_v39 = vrot.slane %v3357_v46, 4  ;;  %v3358_v31 = vsel %vm6970_vm7, %v5938_v25, %v3357_v46 }
 0x31b   : > { %v3511_v0 = vunpack.c.l.b16 %v3358_v31 }
 0x31c   : > { %v4776_v20 = vpop.f32.mrf.mxu0 }
 0x31d   : > { %v8180_v36 = vpop.f32.mrf.mxu2  ;;  %v8182_v16 = vadd.f32 %v4776_v20, %v4687_v3  ;;  %v3361_v3 = vsel %vm6970_vm7, %v3359_v39, %v3360_v45  ;;  %v8191_v20 = vpop.f32.mrf.mxu1  ;;  %v3268_v39 = vld [vmem:[#allocation2 + $0x48] sm:$0xe]  ;;  %v6493_v45 = vld [vmem:[#allocation2 + $0x50] sm:$0x1] }
 0x31e   : > { %8753 = vst [vmem:[#allocation150_spill] sm:$0xff] %v8180_v36  ;;  %v3512_v5 = vunpack.c.l.b16 %v3361_v3  ;;  %v4986_v36 = vrot.slane %v8074_v18, 5 }
 0x31f   : > { %8754 = vst [vmem:[#allocation151_spill] sm:$0xff] %v8182_v16  ;;  %v5939_v16 = vrot.slane %v3268_v39, 9  ;;  %v3269_v39 = vld [vmem:[#allocation2 + $0x54] sm:$0xe] }
 0x320   : > { %8757 = vst [vmem:[#allocation154_spill] sm:$0xff] %v8191_v20  ;;  %v3367_v20 = vrot.slane %v6493_v45, 5 }
 0x322   : > { %3808 = vmatmul.bf16.gmra.mxu2 %v3538_v10  ;;  %v3539_v10 = vpack.c.b16 %v3512_v5, %v3511_v0 }
 0x325   : > { %v8186_v61 = vpop.f32.mrf.mxu2  ;;  %5184 = vmatmul.bf16.gmra.mxu1 %v7981_v15  ;;  %v8197_v15 = vpop.f32.mrf.mxu1 }
 0x326   : > { %8756 = vst [vmem:[#allocation153_spill] sm:$0xff] %v8186_v61  ;;  %v3364_v61 = vrot.slane %v6492_v27, 5 }
 0x328   : > { %v3366_v47 = vrot.slane %v3364_v61, 4  ;;  %v3365_v25 = vsel %vm6970_vm7, %v5939_v16, %v3364_v61  ;;  %v5940_v16 = vrot.slane %v3269_v39, 9 }
 0x329   : > { %v3513_v5 = vunpack.c.l.b16 %v3365_v25 }
 0x32a   : > { %v3368_v46 = vsel %vm6970_vm7, %v3366_v47, %v3367_v20  ;;  %v6495_v20 = vld [vmem:[#allocation2 + $0x5c] sm:$0x1] }
 0x32b   : > { %v3514_v3 = vunpack.c.l.b16 %v3368_v46  ;;  %v3374_v47 = vrot.slane %v6495_v20, 5 }
 0x32d   : > { %v8195_v33 = vpop.f32.mrf.mxu2  ;;  %v8208_v31 = vpop.f32.mrf.mxu1  ;;  %v3540_v0 = vpack.c.b16 %v3514_v3, %v3513_v5 }
 0x32e   : > { %8758 = vst [vmem:[#allocation155_spill] sm:$0xff] %v8195_v33 }
 0x332   : > { %3813 = vmatmul.bf16.gmra.mxu2 %v3539_v10  ;;  %v6494_v10 = vld [vmem:[#allocation2 + $0x58] sm:$0xf] }
 0x335   : > { %v8199_v50 = vpop.f32.mrf.mxu2  ;;  %5189 = vmatmul.bf16.gmra.mxu1 %v8008_v54  ;;  %v8213_v33 = vpop.f32.mrf.mxu1 }
 0x336   : > { %8759 = vst [vmem:[#allocation156_spill] sm:$0xff] %v8199_v50  ;;  %v3371_v50 = vrot.slane %v6494_v10, 5  ;;  %v6496_v10 = vld [vmem:[#allocation2 + $0x64] sm:$0xf] }
 0x338   : > { %v3373_v45 = vrot.slane %v3371_v50, 4  ;;  %v3372_v46 = vsel %vm6970_vm7, %v5940_v16, %v3371_v50  ;;  %v6497_v50 = vld [vmem:[#allocation2 + $0x68] sm:$0x1] }
 0x339   : > { %v3515_v5 = vunpack.c.l.b16 %v3372_v46 }
 0x33a   : > { %v3375_v61 = vsel %vm6970_vm7, %v3373_v45, %v3374_v47  ;;  %v4852_v45 = vld [vmem:[#allocation2 + $0xc0] sm:$0xe]  ;;  %v3381_v47 = vrot.slane %v6497_v50, 5 }
 0x33b   : > { %v3516_v25 = vunpack.c.l.b16 %v3375_v61  ;;  %v6156_v46 = vrot.slane %v4852_v45, 9 }
 0x33d   : > { %v8206_v27 = vpop.f32.mrf.mxu2 }
 0x33e   : > { %8760 = vst [vmem:[#allocation157_spill] sm:$0xff] %v8206_v27  ;;  %v3270_v27 = vld [vmem:[#allocation2 + $0x60] sm:$0xe] }
 0x33f   : > { %v5941_v16 = vrot.slane %v3270_v27, 9 }
 0x342   : > { %3818 = vmatmul.bf16.gmra.mxu2 %v3540_v0  ;;  %v3541_v0 = vpack.c.b16 %v3516_v25, %v3515_v5  ;;  %v4988_v25 = vrot.slane %v4986_v36, 4  ;;  %v4989_v5 = vrot.slane %v8089_v63, 5 }
 0x344   : > { %v4990_v27 = vsel %vm6970_vm7, %v4988_v25, %v4989_v5 }
 0x345   : > { %v8210_v54 = vpop.f32.mrf.mxu2  ;;  %5194 = vmatmul.bf16.gmra.mxu1 %v8031_v37  ;;  %v8221_v37 = vpop.f32.mrf.mxu1 }
 0x346   : > { %8761 = vst [vmem:[#allocation158_spill] sm:$0xff] %v8210_v54  ;;  %v3378_v54 = vrot.slane %v6496_v10, 5 }
 0x348   : > { %v3380_v39 = vrot.slane %v3378_v54, 4 }
 0x34a   : > { %v3382_v61 = vsel %vm6970_vm7, %v3380_v39, %v3381_v47  ;;  %v5043_v47 = vunpack.c.l.b16 %v4990_v27 }
 0x34d   : > { %v8219_v3 = vpop.f32.mrf.mxu2  ;;  %v8232_v10 = vpop.f32.mrf.mxu1 }
 0x34e   : > { %8762 = vst [vmem:[#allocation159_spill] sm:$0xff] %v8219_v3  ;;  %v6498_v3 = vld [vmem:[#allocation2 + $0x70] sm:$0xf] }
 0x34f   : > { %v3385_v63 = vrot.slane %v6498_v3, 5 }
 0x352   : > { %3823 = vmatmul.bf16.gmra.mxu2 %v3541_v0  ;;  %v3379_v0 = vsel %vm6970_vm7, %v5941_v16, %v3378_v54  ;;  %v3387_v16 = vrot.slane %v3385_v63, 4 }
 0x353   : > { %v3517_v50 = vunpack.c.l.b16 %v3379_v0  ;;  %v2478_v0 = vadd.f32 %v7957_v13, %v7314_v29 }
 0x355   : > { %v8223_v20 = vpop.f32.mrf.mxu2  ;;  %5199 = vmatmul.bf16.gmra.mxu1 %v8057_v17  ;;  %v4987_v17 = vsel %vm6970_vm7, %v6156_v46, %v4986_v36  ;;  %v3388_v36 = vrot.slane %v6499_v43, 5  ;;  %v3272_v43 = vld [vmem:[#allocation2 + $0x78] sm:$0xe] }
 0x356   : > { %8763 = vst [vmem:[#allocation160_spill] sm:$0xff] %v8223_v20  ;;  %v3518_v20 = vunpack.c.l.b16 %v3382_v61  ;;  %v5042_v45 = vunpack.c.l.b16 %v4987_v17  ;;  %v8242_v61 = vpop.f32.mrf.mxu1 }
 0x357   : > { %v3389_v25 = vsel %vm6970_vm7, %v3387_v16, %v3388_v36 }
 0x358   : > { %v3542_v39 = vpack.c.b16 %v3518_v20, %v3517_v50  ;;  %v5060_v28 = vpack.c.b16 %v5043_v47, %v5042_v45  ;;  %v3520_v5 = vunpack.c.l.b16 %v3389_v25  ;;  %v6500_v50 = vld [vmem:[#allocation2 + $0x7c] sm:$0xf]  ;;  %v5943_v47 = vrot.slane %v3272_v43, 9  ;;  %v6502_v43 = vld [vmem:[#allocation2 + $0x88] sm:$0xf] }
 0x35d   : > { %v8234_v18 = vpop.f32.mrf.mxu2 }
 0x35e   : > { %8764 = vst [vmem:[#allocation161_spill] sm:$0xff] %v8234_v18  ;;  %v3271_v18 = vld [vmem:[#allocation2 + $0x6c] sm:$0xe] }
 0x35f   : > { %v5942_v46 = vrot.slane %v3271_v18, 9  ;;  %v6376_v18 = vld [vmem:[#allocation11 + $0x38] sm:$0xff] }
 0x360   : > { %5419 = vmatpush.bf16.msrb.mxu2 %v6376_v18  ;;  %v3399_v18 = vrot.slane %v6502_v43, 5  ;;  %v8769_v43 = vld [vmem:[#allocation71_spill] sm:$0xff] }
 0x361   : > { %v3386_v20 = vsel %vm6970_vm7, %v5942_v46, %v3385_v63  ;;  %v6501_v63 = vld [vmem:[#allocation2 + $0x80] sm:$0x1]  ;;  %v2480_v46 = vadd.f32 %v7965_v41, %v7341_v19 }
 0x362   : > { %3828 = vmatmul.bf16.gmra.mxu2 %v3542_v39  ;;  %v3519_v17 = vunpack.c.l.b16 %v3386_v20  ;;  %v2663_v39 = vadd.f32 %v7304_v26, %v2478_v0  ;;  %v3395_v36 = vrot.slane %v6501_v63, 5  ;;  %v3401_v63 = vrot.slane %v3399_v18, 4 }
 0x364   : > { %v3543_v27 = vpack.c.b16 %v3520_v5, %v3519_v17  ;;  %v2752_v29 = vadd.f32 %v7331_v8, %v2663_v39  ;;  %v2665_v5 = vadd.f32 %v7333_v52, %v2480_v46  ;;  %v8263_v17 = vpop.f32.mrf.mxu1  ;;  %v2483_v8 = vadd.f32 %v7979_v57, %v7356_v42  ;;  %v8273_v52 = vld [vmem:[%s8588_s4] ss:$0 sm:$0xff]  ;;  %v3273_v42 = vld [vmem:[#allocation2 + $0x84] sm:$0xe] }
 0x365   : > { %v8240_v54 = vpop.f32.mrf.mxu2  ;;  %5204 = vmatmul.bf16.gmra.mxu1 %v5060_v28  ;;  %v3392_v28 = vrot.slane %v6500_v50, 5 }
 0x367   : > { %v3394_v16 = vrot.slane %v3392_v28, 4  ;;  %v3393_v26 = vsel %vm6970_vm7, %v5943_v47, %v3392_v28 }
 0x369   : > { %v3396_v20 = vsel %vm6970_vm7, %v3394_v16, %v3395_v36  ;;  %v5944_v16 = vrot.slane %v3273_v42, 9  ;;  %v6503_v36 = vld [vmem:[#allocation2 + $0x8c] sm:$0x1] }
 0x36a   : > { %v3522_v50 = vunpack.c.l.b16 %v3396_v20  ;;  %v3402_v46 = vrot.slane %v6503_v36, 5 }
 0x36c   : > { %v8279_v57 = vpop.f32.mrf.mxu1 }
 0x36d   : > { %v8248_v3 = vpop.f32.mrf.mxu2 }
 0x372   : > { %3833 = vmatmul.bf16.gmra.mxu2 %v3543_v27  ;;  %v3521_v27 = vunpack.c.l.b16 %v3393_v26 }
 0x374   : > { %v3544_v39 = vpack.c.b16 %v3522_v50, %v3521_v27  ;;  %v8765_v50 = vld [vmem:[#allocation117_spill] sm:$0xff] }
 0x375   : > { %v3794_v45 = vpop.f32.mrf.mxu2 }
 0x376   : > { %v3795_v13 = vadd.f32 %v3794_v45, %v7696_v22  ;;  %v2754_v22 = vadd.f32 %v7348_v51, %v2665_v5  ;;  %v2668_v45 = vadd.f32 %v7350_v53, %v2483_v8  ;;  %v3403_v5 = vsel %vm6970_vm7, %v3401_v63, %v3402_v46  ;;  %v8771_v63 = vld [vmem:[#allocation120_spill] sm:$0xff] }
 0x377   : > { %v3274_v46 = vld [vmem:[#allocation2 + $0x90] sm:$0xe] }
 0x378   : > { %v3874_v25 = vadd.f32 %v3795_v13, %v2752_v29  ;;  %v2485_v29 = vadd.f32 %v7992_v4, %v7374_v44 }
 0x37a   : > { %v4806_v0 = vadd.f32 %v7970_v2, %v3874_v25 }
 0x37c   : > { %v5215_v28 = vadd.f32 %v8197_v15, %v4806_v0  ;;  %v2670_v0 = vadd.f32 %v7365_v35, %v2485_v29  ;;  %v6375_v29 = vld [vmem:[#allocation11 + $0x30] sm:$0xff] }
 0x37d   : > { %v3796_v19 = vpop.f32.mrf.mxu2  ;;  %5420 = vmatpush.bf16.msrb.mxu2 %v6375_v29 }
 0x37e   : > { %v3797_v41 = vadd.f32 %v3796_v19, %v7718_v38  ;;  %v5251_v51 = vadd.f32 %v8273_v52, %v5215_v28 }
 0x380   : > { %v3875_v2 = vadd.f32 %v3797_v41, %v2754_v22  ;;  %v5283_v25 = vmax.f32 %v5251_v51, 0.0  ;;  %v8767_v22 = vld [vmem:[#allocation119_spill] sm:$0xff]  ;;  %v6504_v51 = vld [vmem:[#allocation2 + $0x94] sm:$0xf] }
 0x382   : > { %v4807_v47 = vadd.f32 %v7983_v24, %v3875_v2  ;;  %3838 = vmatmul.bf16.gmra.mxu2 %v3544_v39  ;;  %v2757_v24 = vadd.f32 %v7370_v40, %v2668_v45  ;;  %v3524_v40 = vunpack.c.l.b16 %v3403_v5  ;;  %v8768_v2 = vld [vmem:[#allocation20_spill] sm:$0xff]  ;;  %v8298_v45 = vpop.f32.mrf.mxu1  ;;  %v8773_v5 = vld [vmem:[#allocation121_spill] sm:$0xff] }
 0x383   : > { %v2759_v39 = vadd.f32 %v8768_v2, %v2670_v0 }
 0x384   : > { %v5216_v38 = vadd.f32 %v8208_v31, %v4807_v47  ;;  %v3400_v31 = vsel %vm6970_vm7, %v5944_v16, %v3399_v18 }
 0x385   : > { %v3799_v15 = vpop.f32.mrf.mxu2  ;;  %v3523_v19 = vunpack.c.l.b16 %v3400_v31  ;;  %v8772_v31 = vld [vmem:[#allocation24_spill] sm:$0xff] }
 0x386   : > { %v5252_v53 = vadd.f32 %v8273_v52, %v5216_v38  ;;  %v3800_v13 = vadd.f32 %v3799_v15, %v7738_v56  ;;  %v8766_v56 = vld [vmem:[#allocation21_spill] sm:$0xff]  ;;  %v3406_v38 = vrot.slane %v6504_v51, 5  ;;  %v2490_v0 = vadd.f32 %v8773_v5, %v8772_v31  ;;  %v8778_v51 = vld [vmem:[#allocation27_spill] sm:$0xff] }
 0x387   : > { %v2488_v41 = vadd.f32 %v8767_v22, %v8766_v56  ;;  %v3545_v42 = vpack.c.b16 %v3524_v40, %v3523_v19  ;;  %v3275_v31 = vld [vmem:[#allocation2 + $0x9c] sm:$0xe] }
 0x388   : > { %v5284_v26 = vmax.f32 %v5252_v53, 0.0  ;;  %v3876_v20 = vadd.f32 %v3800_v13, %v2757_v24  ;;  %v5945_v13 = vrot.slane %v3274_v46, 9 }
 0x38a   : > { %v5315_v27 = vadd.f32 %v5284_v26, %v5283_v25  ;;  %v4808_v44 = vadd.f32 %v8765_v50, %v3876_v20  ;;  %v3408_v25 = vrot.slane %v3406_v38, 4  ;;  %v6505_v26 = vld [vmem:[#allocation2 + $0x98] sm:$0x1]  ;;  %v8308_v56 = vpop.f32.mrf.mxu1 }
 0x38b   : > { %v3409_v20 = vrot.slane %v6505_v26, 5 }
 0x38c   : > { %v5217_v4 = vadd.f32 %v8213_v33, %v4808_v44  ;;  %v8770_v33 = vld [vmem:[#allocation19_spill] sm:$0xff] }
 0x38d   : > { %v3801_v8 = vpop.f32.mrf.mxu2  ;;  %v2673_v15 = vadd.f32 %v8770_v33, %v2488_v41  ;;  %v8774_v44 = vld [vmem:[#allocation23_spill] sm:$0xff]  ;;  %v3410_v22 = vsel %vm6970_vm7, %v3408_v25, %v3409_v20  ;;  %v8776_v41 = vld [vmem:[#allocation22_spill] sm:$0xff]  ;;  %v2493_v33 = vadd.f32 %v8033_v11, %v8778_v51  ;;  %v8781_v25 = vld [vmem:[#allocation25_spill] sm:$0xff] }
 0x38e   : > { %v5253_v28 = vadd.f32 %v8273_v52, %v5217_v4  ;;  %v3802_v18 = vadd.f32 %v3801_v8, %v8769_v43  ;;  %v8775_v4 = vld [vmem:[#allocation75_spill] sm:$0xff] }
 0x38f   : > { %v2678_v26 = vadd.f32 %v8781_v25, %v2493_v33  ;;  %v8791_v25 = vld [vmem:[#allocation124_spill] sm:$0xff] }
 0x390   : > { %v5285_v35 = vmax.f32 %v5253_v28, 0.0  ;;  %v3877_v47 = vadd.f32 %v3802_v18, %v2759_v39  ;;  %v2675_v28 = vadd.f32 %v8776_v41, %v2490_v0  ;;  %v8777_v39 = vld [vmem:[#allocation123_spill] sm:$0xff] }
 0x391   : > { %v8784_v41 = vld [vmem:[#allocation83_spill] sm:$0xff] }
 0x392   : > { %v5316_v16 = vadd.f32 %v5315_v27, %v5285_v35  ;;  %v4809_v36 = vadd.f32 %v8771_v63, %v3877_v47  ;;  %3843 = vmatmul.bf16.gmra.mxu2 %v3545_v42  ;;  %v2762_v27 = vadd.f32 %v8774_v44, %v2673_v15  ;;  %v3526_v47 = vunpack.c.l.b16 %v3410_v22  ;;  %v8779_v63 = vld [vmem:[#allocation26_spill] sm:$0xff]  ;;  %v8324_v5 = vpop.f32.mrf.mxu1 }
 0x394   : > { %v5218_v53 = vadd.f32 %v8221_v37, %v4809_v36  ;;  %v3407_v37 = vsel %vm6970_vm7, %v5945_v13, %v3406_v38  ;;  %v2764_v38 = vadd.f32 %v8779_v63, %v2675_v28  ;;  %v8780_v36 = vld [vmem:[#allocation79_spill] sm:$0xff] }
 0x395   : > { %v3804_v24 = vpop.f32.mrf.mxu2  ;;  %v3525_v35 = vunpack.c.l.b16 %v3407_v37  ;;  %v8783_v37 = vld [vmem:[#allocation30_spill] sm:$0xff] }
 0x396   : > { %v5254_v50 = vadd.f32 %v8273_v52, %v5218_v53  ;;  %v3805_v19 = vadd.f32 %v3804_v24, %v8775_v4  ;;  %v2767_v22 = vadd.f32 %v8783_v37, %v2678_v26  ;;  %v8792_v26 = vld [vmem:[#allocation128_spill] sm:$0xff] }
 0x397   : > { %v3546_v24 = vpack.c.b16 %v3526_v47, %v3525_v35  ;;  %v8786_v47 = vld [vmem:[#allocation126_spill] sm:$0xff] }
 0x398   : > { %v5286_v40 = vmax.f32 %v5254_v50, 0.0  ;;  %v3878_v8 = vadd.f32 %v3805_v19, %v2762_v27  ;;  %v5946_v50 = vrot.slane %v3275_v31, 9  ;;  %v6507_v27 = vld [vmem:[#allocation2 + $0xa4] sm:$0x1]  ;;  %v8782_v19 = vld [vmem:[#allocation29_spill] sm:$0xff] }
 0x399   : > { %v3416_v4 = vrot.slane %v6507_v27, 5 }
 0x39a   : > { %v5317_v2 = vadd.f32 %v5316_v16, %v5286_v40  ;;  %v4810_v43 = vadd.f32 %v8777_v39, %v3878_v8  ;;  %v6506_v16 = vld [vmem:[#allocation2 + $0xa0] sm:$0xf]  ;;  %v2495_v40 = vadd.f32 %v8046_v59, %v8782_v19  ;;  %v3276_v19 = vld [vmem:[#allocation2 + $0xa8] sm:$0xe] }
 0x39b   : > { %v3413_v13 = vrot.slane %v6506_v16, 5  ;;  %v8790_v16 = vld [vmem:[#allocation87_spill] sm:$0xff] }
 0x39c   : > { %v5219_v18 = vadd.f32 %v8232_v10, %v4810_v43  ;;  %v8785_v43 = vld [vmem:[#allocation28_spill] sm:$0xff] }
 0x39d   : > { %v3806_v42 = vpop.f32.mrf.mxu2  ;;  %v3415_v44 = vrot.slane %v3413_v13, 4  ;;  %v3414_v39 = vsel %vm6970_vm7, %v5946_v50, %v3413_v13  ;;  %v8793_v50 = vld [vmem:[#allocation31_spill] sm:$0xff] }
 0x39e   : > { %v5255_v15 = vadd.f32 %v8273_v52, %v5219_v18  ;;  %v3807_v46 = vadd.f32 %v3806_v42, %v8780_v36  ;;  %v2680_v18 = vadd.f32 %v8785_v43, %v2495_v40  ;;  %v3527_v51 = vunpack.c.l.b16 %v3414_v39  ;;  %v8788_v36 = vld [vmem:[#allocation129_spill] sm:$0xff]  ;;  %v8795_v43 = vld [vmem:[#allocation36_spill] sm:$0xff] }
 0x39f   : > { %v6374_v40 = vld [vmem:[#allocation11 + $0x28] sm:$0xff] }
 0x3a0   : > { %v5287_v29 = vmax.f32 %v5255_v15, 0.0  ;;  %v3879_v53 = vadd.f32 %v3807_v46, %v2764_v38  ;;  %v8339_v15 = vpop.f32.mrf.mxu1  ;;  %v8787_v38 = vld [vmem:[#allocation32_spill] sm:$0xff]  ;;  %5421 = vmatpush.bf16.msrb.mxu2 %v6374_v40 }
 0x3a1   : > { %v2498_v46 = vadd.f32 %v8788_v36, %v8787_v38 }
 0x3a2   : > { %v5318_v10 = vadd.f32 %v5317_v2, %v5287_v29  ;;  %v4811_v20 = vadd.f32 %v8035_v55, %v3879_v53  ;;  %3848 = vmatmul.bf16.gmra.mxu2 %v3546_v24  ;;  %v8789_v53 = vld [vmem:[#allocation33_spill] sm:$0xff] }
 0x3a3   : > { %v2769_v24 = vadd.f32 %v8789_v53, %v2680_v18 }
 0x3a4   : > { %v5220_v11 = vadd.f32 %v8242_v61, %v4811_v20  ;;  %v3417_v61 = vsel %vm6970_vm7, %v3415_v44, %v3416_v4  ;;  %v2683_v44 = vadd.f32 %v8793_v50, %v2498_v46 }
 0x3a5   : > { %v3809_v0 = vpop.f32.mrf.mxu2  ;;  %v3528_v33 = vunpack.c.l.b16 %v3417_v61 }
 0x3a6   : > { %v5256_v8 = vadd.f32 %v8273_v52, %v5220_v11  ;;  %v3810_v55 = vadd.f32 %v3809_v0, %v8784_v41  ;;  %v6508_v11 = vld [vmem:[#allocation2 + $0xac] sm:$0xf]  ;;  %v2772_v18 = vadd.f32 %v8795_v43, %v2683_v44 }
 0x3a7   : > { %v3420_v0 = vrot.slane %v6508_v11, 5 }
 0x3a8   : > { %v5288_v28 = vmax.f32 %v5256_v8, 0.0  ;;  %v3880_v2 = vadd.f32 %v3810_v55, %v2767_v22  ;;  %v5947_v22 = vrot.slane %v3276_v19, 9  ;;  %v6509_v55 = vld [vmem:[#allocation2 + $0xb0] sm:$0x1] }
 0x3a9   : > { %v3422_v41 = vrot.slane %v3420_v0, 4 }
 0x3aa   : > { %v5319_v35 = vadd.f32 %v5318_v10, %v5288_v28  ;;  %v4812_v42 = vadd.f32 %v8786_v47, %v3880_v2  ;;  %v4744_v10 = vadd.f32 %v8792_v26, %v8791_v25  ;;  %v3423_v28 = vrot.slane %v6509_v55, 5  ;;  %v8794_v2 = vld [vmem:[#allocation35_spill] sm:$0xff] }
 0x3ab   : > { %v2500_v39 = vadd.f32 %v8070_v23, %v8794_v2 }
 0x3ac   : > { %v5221_v59 = vadd.f32 %v8263_v17, %v4812_v42  ;;  %v3547_v17 = vpack.c.b16 %v3528_v33, %v3527_v51  ;;  %v8355_v42 = vpop.f32.mrf.mxu1  ;;  %v3424_v33 = vsel %vm6970_vm7, %v3422_v41, %v3423_v28 }
 0x3ad   : > { %v3811_v63 = vpop.f32.mrf.mxu2  ;;  %v3530_v53 = vunpack.c.l.b16 %v3424_v33 }
 0x3ae   : > { %v5257_v29 = vadd.f32 %v8273_v52, %v5221_v59  ;;  %v3812_v13 = vadd.f32 %v3811_v63, %v8790_v16  ;;  %v8797_v63 = vld [vmem:[#allocation34_spill] sm:$0xff] }
 0x3af   : > { %v2685_v38 = vadd.f32 %v8797_v63, %v2500_v39  ;;  %v8798_v16 = vld [vmem:[#allocation38_spill] sm:$0xff]  ;;  %v8805_v39 = vld [vmem:[#allocation41_spill] sm:$0xff] }
 0x3b0   : > { %v5289_v20 = vmax.f32 %v5257_v29, 0.0  ;;  %v3881_v31 = vadd.f32 %v3812_v13, %v2769_v24  ;;  %v8799_v13 = vld [vmem:[#allocation131_spill] sm:$0xff]  ;;  %v8808_v63 = vld [vmem:[#allocation102_spill] sm:$0xff] }
 0x3b1   : > { %v2503_v25 = vadd.f32 %v8799_v13, %v8798_v16  ;;  %v483_v13 = vld [vmem:[#allocation2 + $0xd4] sm:$0x1] }
 0x3b2   : > { %v5320_v27 = vadd.f32 %v5319_v35, %v5289_v20  ;;  %v4813_v4 = vadd.f32 %v4744_v10, %v3881_v31  ;;  %3853 = vmatmul.bf16.gmra.mxu2 %v3547_v17  ;;  %v8796_v35 = vld [vmem:[#allocation91_spill] sm:$0xff]  ;;  %v8801_v31 = vld [vmem:[#allocation97_spill] sm:$0xff] }
 0x3b3   : > { %v8800_v10 = vld [vmem:[#allocation39_spill] sm:$0xff] }
 0x3b4   : > { %v5222_v8 = vadd.f32 %v8279_v57, %v4813_v4  ;;  %v3421_v57 = vsel %vm6970_vm7, %v5947_v22, %v3420_v0  ;;  %v2774_v20 = vadd.f32 %v8800_v10, %v2685_v38  ;;  %v8369_v44 = vpop.f32.mrf.mxu1  ;;  %v8802_v4 = vld [vmem:[#allocation37_spill] sm:$0xff]  ;;  %v427_v22 = vld [vmem:[#allocation2 + $0xcc] sm:$0x1] }
 0x3b5   : > { %v3814_v37 = vpop.f32.mrf.mxu2  ;;  %v3529_v29 = vunpack.c.l.b16 %v3421_v57  ;;  %v2688_v19 = vadd.f32 %v8802_v4, %v2503_v25  ;;  %v428_v55 = vsel %vm6949_vm2, 0, %v427_v22  ;;  %v8807_v57 = vld [vmem:[#allocation42_spill] sm:$0xff]  ;;  %v3938_v25 = vld [vmem:[#allocation2 + $0xd0] sm:$0xf] }
 0x3b6   : > { %v5258_v61 = vadd.f32 %v8273_v52, %v5222_v8  ;;  %v3815_v47 = vadd.f32 %v3814_v37, %v8796_v35  ;;  %v8803_v8 = vld [vmem:[#allocation133_spill] sm:$0xff]  ;;  %429 = vst [vmem:[#allocation2 + $0xcc] sm:$0x1] %v428_v55 }
 0x3b7   : > { %v3548_v50 = vpack.c.b16 %v3530_v53, %v3529_v29  ;;  %v2777_v33 = vadd.f32 %v8807_v57, %v2688_v19  ;;  %v8811_v19 = vld [vmem:[#allocation44_spill] sm:$0xff]  ;;  %v8814_v57 = vld [vmem:[#allocation43_spill] sm:$0xff] }
 0x3b8   : > { %v5290_v59 = vmax.f32 %v5258_v61, 0.0  ;;  %v3882_v51 = vadd.f32 %v3815_v47, %v2772_v18  ;;  %v8806_v61 = vld [vmem:[#allocation134_spill] sm:$0xff]  ;;  %v6511_v47 = vld [vmem:[#allocation2 + $0xbc] sm:$0x1] }
 0x3b9   : > { %v2505_v43 = vadd.f32 %v8806_v61, %v8805_v39 }
 0x3ba   : > { %v5321_v36 = vadd.f32 %v5320_v27, %v5290_v59  ;;  %v4814_v23 = vadd.f32 %v8072_v9, %v3882_v51  ;;  %v3277_v9 = vld [vmem:[#allocation2 + $0xb4] sm:$0xe]  ;;  %v6510_v27 = vld [vmem:[#allocation2 + $0xb8] sm:$0xf]  ;;  %v3430_v59 = vrot.slane %v6511_v47, 5 }
 0x3bb   : > { %v5948_v2 = vrot.slane %v3277_v9, 9 }
 0x3bc   : > { %v5223_v46 = vadd.f32 %v8298_v45, %v4814_v23  ;;  %v3427_v45 = vrot.slane %v6510_v27, 5 }
 0x3bd   : > { %v3816_v24 = vpop.f32.mrf.mxu2 }
 0x3be   : > { %v5259_v26 = vadd.f32 %v8273_v52, %v5223_v46  ;;  %v3817_v17 = vadd.f32 %v3816_v24, %v8801_v31  ;;  %v3429_v35 = vrot.slane %v3427_v45, 4  ;;  %v8809_v46 = vld [vmem:[#allocation40_spill] sm:$0xff] }
 0x3bf   : > { %v2690_v29 = vadd.f32 %v8809_v46, %v2505_v43  ;;  %v4853_v46 = vld [vmem:[#allocation2 + $0xcc] sm:$0xe] }
 0x3c0   : > { %v5291_v11 = vmax.f32 %v5259_v26, 0.0  ;;  %v3883_v0 = vadd.f32 %v3817_v17, %v2774_v20  ;;  %v3431_v53 = vsel %vm6970_vm7, %v3429_v35, %v3430_v59  ;;  %v8387_v26 = vpop.f32.mrf.mxu1  ;;  %v6344_v20 = vld [vmem:[#allocation2 + $0xcc] sm:$0xff]  ;;  %v484_v17 = vsel %vm6959_vm4, 0, %v483_v13 }
 0x3c1   : > { %v3532_v27 = vunpack.c.l.b16 %v3431_v53  ;;  %485 = vst [vmem:[#allocation2 + $0xd4] sm:$0x1] %v484_v17  ;;  %4711 = vmatmul.bf16.gmra.mxu3 %v6344_v20  ;;  %v6373_v53 = vld [vmem:[#allocation11 + $0x20] sm:$0xff] }
 0x3c2   : > { %v5322_v40 = vadd.f32 %v5321_v36, %v5291_v11  ;;  %v4815_v37 = vadd.f32 %v8803_v8, %v3883_v0  ;;  %3858 = vmatmul.bf16.gmra.mxu2 %v3548_v50  ;;  %v3937_v11 = vld [vmem:[#allocation2 + $0xcc] sm:$0xf]  ;;  %v4325_v0 = vshll.u32 %v3938_v25, 16  ;;  %v4329_v50 = vshrl.u32 %v3938_v25, 16 }
 0x3c3   : > { %v4319_v4 = vshll.u32 %v3937_v11, 16  ;;  %5422 = vmatpush.bf16.msrb.mxu2 %v6373_v53 }
 0x3c4   : > { %v5224_v28 = vadd.f32 %v8308_v56, %v4815_v37  ;;  %v3428_v56 = vsel %vm6970_vm7, %v5948_v2, %v3427_v45  ;;  %v4316_v45 = vshrl.u32 %v3937_v11, 16  ;;  %v4327_v22 = vrot.slane %v4325_v0, 5 }
 0x3c5   : > { %v3819_v18 = vpop.f32.mrf.mxu2  ;;  %v3531_v10 = vunpack.c.l.b16 %v3428_v56  ;;  %v4331_v41 = vrot.slane %v4329_v50, 4  ;;  %v4321_v61 = vrot.slane %v4319_v4, 5 }
 0x3c6   : > { %v5260_v51 = vadd.f32 %v8273_v52, %v5224_v28  ;;  %v3820_v38 = vadd.f32 %v3819_v18, %v8808_v63  ;;  %v8813_v28 = vld [vmem:[#allocation106_spill] sm:$0xff]  ;;  %v4318_v39 = vrot.slane %v4316_v45, 4  ;;  %v8815_v63 = vld [vmem:[#allocation47_spill] sm:$0xff] }
 0x3c7   : > { %v4332_v18 = vor.u32 %v4331_v41, %v4327_v22  ;;  %v3549_v59 = vpack.c.b16 %v3532_v27, %v3531_v10  ;;  %v6157_v10 = vrot.slane %v4853_v46, 9 }
 0x3c8   : > { %v5292_v36 = vmax.f32 %v5260_v51, 0.0  ;;  %v3884_v23 = vadd.f32 %v3820_v38, %v2777_v33  ;;  %v3278_v51 = vld [vmem:[#allocation2 + $0xc0] sm:$0xe]  ;;  %v2510_v38 = vadd.f32 %v8109_v49, %v8815_v63  ;;  %v3954_v20 = vld [vmem:[#allocation2 + $0xd4] sm:$0x1] }
 0x3c9   : > { %v4333_v31 = vrot.slane %v4332_v18, 4  ;;  %v4335_v0 = vshll.u32 %v3954_v20, 16  ;;  %v4996_v4 = vrot.slane %v3954_v20, 5  ;;  %v8818_v18 = vld [vmem:[#allocation46_spill] sm:$0xff] }
 0x3ca   : > { %v5323_v24 = vadd.f32 %v5322_v40, %v5292_v36  ;;  %v4816_v16 = vadd.f32 %v8093_v12, %v3884_v23  ;;  %v2508_v12 = vadd.f32 %v8098_v7, %v8811_v19  ;;  %v8812_v40 = vld [vmem:[#allocation45_spill] sm:$0xff]  ;;  %v4322_v7 = vor.u32 %v4321_v61, %v4318_v39 }
 0x3cb   : > { %v2779_v8 = vadd.f32 %v8812_v40, %v2690_v29  ;;  %v4993_v29 = vrot.slane %v3938_v25, 5  ;;  %v6513_v25 = vld [vmem:[#allocation2 + $0xc8] sm:$0x1]  ;;  %v4337_v40 = vrot.slane %v4335_v0, 5 }
 0x3cc   : > { %v5225_v9 = vadd.f32 %v8324_v5, %v4816_v16  ;;  %v6512_v5 = vld [vmem:[#allocation2 + $0xc4] sm:$0xf]  ;;  %v2693_v33 = vadd.f32 %v8814_v57, %v2508_v12  ;;  %v4323_v56 = vrot.slane %v4322_v7, 4  ;;  %v5949_v16 = vrot.slane %v3278_v51, 9 }
 0x3cd   : > { %v3821_v37 = vpop.f32.mrf.mxu2  ;;  %v3434_v43 = vrot.slane %v6512_v5, 5  ;;  %v4995_v49 = vrot.slane %v4993_v29, 4  ;;  %v3437_v27 = vrot.slane %v6513_v25, 5  ;;  %v4994_v45 = vsel %vm6970_vm7, %v6157_v10, %v4993_v29 }
 0x3ce   : > { %v5261_v55 = vadd.f32 %v8273_v52, %v5225_v9  ;;  %v3822_v2 = vadd.f32 %v3821_v37, %v8813_v28  ;;  %v4328_v11 = vsel %vm6985_vm10, %v4323_v56, %v4327_v22  ;;  %v4338_v28 = vsel %vm6985_vm10, %v4333_v31, %v4337_v40  ;;  %v8820_v56 = vld [vmem:[#allocation51_spill] sm:$0xff] }
 0x3cf   : > { %v3436_v13 = vrot.slane %v3434_v43, 4  ;;  %v4465_v37 = vunpack.c.l.b16 %v4328_v11  ;;  %v4997_v22 = vsel %vm6970_vm7, %v4995_v49, %v4996_v4  ;;  %v3435_v39 = vsel %vm6970_vm7, %v5949_v16, %v3434_v43  ;;  %v8824_v11 = vld [vmem:[#allocation138_spill] sm:$0xff] }
 0x3d0   : > { %v5293_v35 = vmax.f32 %v5261_v55, 0.0  ;;  %v3885_v47 = vadd.f32 %v3822_v2, %v2779_v8  ;;  %v5044_v8 = vunpack.c.l.b16 %v4994_v45  ;;  %v5045_v2 = vunpack.c.l.b16 %v4997_v22 }
 0x3d1   : > { %v3438_v61 = vsel %vm6970_vm7, %v3436_v13, %v3437_v27  ;;  %v4466_v5 = vunpack.c.l.b16 %v4338_v28  ;;  %v8822_v13 = vld [vmem:[#allocation49_spill] sm:$0xff] }
 0x3d2   : > { %v5324_v36 = vadd.f32 %v5323_v24, %v5293_v35  ;;  %v4817_v23 = vadd.f32 %v8100_v21, %v3885_v47  ;;  %3863 = vmatmul.bf16.gmra.mxu2 %v3549_v59  ;;  %v8404_v24 = vpop.f32.mrf.mxu1  ;;  %v8816_v21 = vld [vmem:[#allocation48_spill] sm:$0xff]  ;;  %v2695_v35 = vadd.f32 %v8818_v18, %v2510_v38  ;;  %v5061_v51 = vpack.c.b16 %v5045_v2, %v5044_v8  ;;  %v8821_v38 = vld [vmem:[#allocation114_spill] sm:$0xff]  ;;  %v8832_v18 = vld [vmem:[#allocation55_spill] sm:$0xff] }
 0x3d3   : > { %v2782_v50 = vadd.f32 %v8816_v21, %v2693_v33  ;;  %v4482_v7 = vpack.c.b16 %v4466_v5, %v4465_v37  ;;  %v3533_v33 = vunpack.c.l.b16 %v3435_v39  ;;  %v3534_v32 = vunpack.c.l.b16 %v3438_v61  ;;  %v8825_v21 = vld [vmem:[#allocation54_spill] sm:$0xff]  ;;  %v8828_v8 = vld [vmem:[#allocation56_spill] sm:$0xff] }
 0x3d4   : > { %v5226_v17 = vadd.f32 %v8339_v15, %v4817_v23  ;;  %v8817_v15 = vld [vmem:[#allocation110_spill] sm:$0xff]  ;;  %5209 = vmatmul.bf16.gmra.mxu1 %v5061_v51  ;;  %v2784_v46 = vadd.f32 %v8820_v56, %v2695_v35  ;;  %v8829_v37 = vld [vmem:[#allocation140_spill] sm:$0xff] }
 0x3d5   : > { %v3824_v9 = vpop.f32.mrf.mxu2  ;;  %4800 = vmatmul.bf16.gmra.mxu0 %v4482_v7  ;;  %v8819_v23 = vld [vmem:[#allocation50_spill] sm:$0xff]  ;;  %v3550_v16 = vpack.c.b16 %v3534_v32, %v3533_v33  ;;  %v2518_v22 = vadd.f32 %v8829_v37, %v8828_v8  ;;  %v8831_v2 = vld [vmem:[#allocation116_spill] sm:$0xff]  ;;  %v8834_v33 = vld [vmem:[#allocation59_spill] sm:$0xff] }
 0x3d6   : > { %v5262_v19 = vadd.f32 %v8273_v52, %v5226_v17  ;;  %v3825_v12 = vadd.f32 %v3824_v9, %v8817_v15  ;;  %v2513_v43 = vadd.f32 %v8115_v34, %v8819_v23  ;;  %v8823_v34 = vld [vmem:[#allocation53_spill] sm:$0xff]  ;;  %v8826_v9 = vld [vmem:[#allocation115_spill] sm:$0xff]  ;;  %v8837_v56 = vld [vmem:[#allocation118_spill] sm:$0xff] }
 0x3d7   : > { %v2515_v0 = vadd.f32 %v8824_v11, %v8823_v34  ;;  %v2703_v35 = vadd.f32 %v8832_v18, %v2518_v22  ;;  %v8835_v32 = vld [vmem:[#allocation143_spill] sm:$0xff]  ;;  %v8840_v34 = vld [vmem:[#allocation62_spill] sm:$0xff]  ;;  %v8848_v18 = vld [vmem:[#allocation69_spill] sm:$0xff] }
 0x3d8   : > { %v5294_v41 = vmax.f32 %v5262_v19, 0.0  ;;  %v3886_v55 = vadd.f32 %v3825_v12, %v2782_v50  ;;  %v8827_v19 = vld [vmem:[#allocation52_spill] sm:$0xff] }
 0x3d9   : > { %v2700_v15 = vadd.f32 %v8827_v19, %v2515_v0  ;;  %v8841_v0 = vld [vmem:[#allocation122_spill] sm:$0xff] }
 0x3da   : > { %v5325_v47 = vadd.f32 %v5324_v36, %v5294_v41  ;;  %v4818_v59 = vadd.f32 %v8111_v14, %v3886_v55  ;;  %v5175_v29 = vpop.f32.mrf.mxu1  ;;  %v8830_v55 = vld [vmem:[#allocation57_spill] sm:$0xff]  ;;  %v8843_v19 = vld [vmem:[#allocation66_spill] sm:$0xff] }
 0x3db   : > { %v2789_v28 = vadd.f32 %v8830_v55, %v2700_v15  ;;  %v2525_v15 = vadd.f32 %v8165_v30, %v8843_v19  ;;  %v8849_v30 = vld [vmem:[#allocation147_spill] sm:$0xff] }
 0x3dc   : > { %v5227_v57 = vadd.f32 %v8355_v42, %v4818_v59  ;;  %v2698_v42 = vadd.f32 %v8822_v13, %v2513_v43  ;;  %v8833_v59 = vld [vmem:[#allocation141_spill] sm:$0xff]  ;;  %v8836_v43 = vld [vmem:[#allocation60_spill] sm:$0xff] }
 0x3dd   : > { %v3826_v63 = vpop.f32.mrf.mxu2 }
 0x3de   : > { %v5263_v62 = vadd.f32 %v8273_v52, %v5227_v57  ;;  %v3827_v36 = vadd.f32 %v3826_v63, %v8821_v38  ;;  %v2787_v50 = vadd.f32 %v8825_v21, %v2698_v42  ;;  %v2520_v63 = vadd.f32 %v8835_v32, %v8834_v33 }
 0x3e0   : > { %v5295_v14 = vmax.f32 %v5263_v62, 0.0  ;;  %v3887_v53 = vadd.f32 %v3827_v36, %v2784_v46  ;;  %v2792_v62 = vadd.f32 %v8836_v43, %v2703_v35  ;;  %v2528_v35 = vadd.f32 %v8849_v30, %v8848_v18  ;;  %v8865_v18 = vld [vmem:[#allocation81_spill] sm:$0xff]  ;;  %v8866_v30 = vld [vmem:[#allocation155_spill] sm:$0xff] }
 0x3e2   : > { %v5326_v20 = vadd.f32 %v5325_v47, %v5295_v14  ;;  %v4819_v31 = vadd.f32 %v8118_v48, %v3887_v53  ;;  %3868 = vmatmul.bf16.gmra.mxu2 %v3550_v16  ;;  %v5177_v4 = vpop.f32.mrf.mxu1  ;;  %v8838_v14 = vld [vmem:[#allocation58_spill] sm:$0xff] }
 0x3e3   : > { %v2705_v53 = vadd.f32 %v8838_v14, %v2520_v63  ;;  %v8852_v63 = vld [vmem:[#allocation67_spill] sm:$0xff] }
 0x3e4   : > { %v5228_v10 = vadd.f32 %v8369_v44, %v4819_v31  ;;  %v8839_v31 = vld [vmem:[#allocation63_spill] sm:$0xff] }
 0x3e5   : > { %v3829_v17 = vpop.f32.mrf.mxu2  ;;  %v2794_v11 = vadd.f32 %v8840_v34, %v2705_v53  ;;  %v8854_v53 = vld [vmem:[#allocation73_spill] sm:$0xff] }
 0x3e6   : > { %v5264_v49 = vadd.f32 %v8273_v52, %v5228_v10  ;;  %v3830_v25 = vadd.f32 %v3829_v17, %v8826_v9  ;;  %v2523_v10 = vadd.f32 %v8155_v58, %v8839_v31  ;;  %v8842_v9 = vld [vmem:[#allocation61_spill] sm:$0xff] }
 0x3e8   : > { %v5296_v27 = vmax.f32 %v5264_v49, 0.0  ;;  %v3888_v45 = vadd.f32 %v3830_v25, %v2787_v50  ;;  %v2708_v25 = vadd.f32 %v8842_v9, %v2523_v10  ;;  %v8857_v10 = vld [vmem:[#allocation130_spill] sm:$0xff] }
 0x3ea   : > { %v5327_v12 = vadd.f32 %v5326_v20, %v5296_v27  ;;  %v4820_v48 = vadd.f32 %v8128_v60, %v3888_v45  ;;  %v6372_v60 = vld [vmem:[#allocation11 + $0x18] sm:$0xff]  ;;  %v5180_v7 = vpop.f32.mrf.mxu1 }
 0x3eb   : > { %5423 = vmatpush.bf16.msrb.mxu2 %v6372_v60  ;;  %v8851_v60 = vld [vmem:[#allocation127_spill] sm:$0xff] }
 0x3ec   : > { %v5229_v44 = vadd.f32 %v8387_v26, %v4820_v48 }
 0x3ed   : > { %v3831_v40 = vpop.f32.mrf.mxu2 }
 0x3ee   : > { %v5265_v41 = vadd.f32 %v8273_v52, %v5229_v44  ;;  %v3832_v39 = vadd.f32 %v3831_v40, %v8831_v2  ;;  %v8845_v44 = vld [vmem:[#allocation125_spill] sm:$0xff] }
 0x3f0   : > { %v5297_v61 = vmax.f32 %v5265_v41, 0.0  ;;  %v3889_v5 = vadd.f32 %v3832_v39, %v2789_v28  ;;  %v8846_v41 = vld [vmem:[#allocation64_spill] sm:$0xff]  ;;  %v4689_v28 = vpop.f32.mrf.mxu3  ;;  %v8847_v39 = vld [vmem:[#allocation146_spill] sm:$0xff] }
 0x3f1   : > { %v2710_v55 = vadd.f32 %v8846_v41, %v2525_v15 }
 0x3f2   : > { %v5328_v47 = vadd.f32 %v5327_v12, %v5297_v61  ;;  %v4821_v51 = vadd.f32 %v8833_v59, %v3889_v5  ;;  %v8844_v12 = vld [vmem:[#allocation65_spill] sm:$0xff]  ;;  %v8850_v59 = vld [vmem:[#allocation68_spill] sm:$0xff] }
 0x3f3   : > { %v2797_v48 = vadd.f32 %v8844_v12, %v2708_v25 }
 0x3f4   : > { %v5230_v26 = vadd.f32 %v8404_v24, %v4821_v51  ;;  %v5182_v24 = vpop.f32.mrf.mxu1  ;;  %v2799_v51 = vadd.f32 %v8850_v59, %v2710_v55  ;;  %v8864_v55 = vld [vmem:[#allocation74_spill] sm:$0xff]  ;;  %v8867_v59 = vld [vmem:[#allocation80_spill] sm:$0xff] }
 0x3f5   : > { %v3834_v57 = vpop.f32.mrf.mxu2 }
 0x3f6   : > { %v5266_v23 = vadd.f32 %v8273_v52, %v5230_v26  ;;  %v3835_v46 = vadd.f32 %v3834_v57, %v8837_v56 }
 0x3f8   : > { %v5298_v38 = vmax.f32 %v5266_v23, 0.0  ;;  %v3890_v36 = vadd.f32 %v3835_v46, %v2792_v62  ;;  %v2713_v23 = vadd.f32 %v8852_v63, %v2528_v35  ;;  %v8853_v62 = vld [vmem:[#allocation149_spill] sm:$0xff]  ;;  %v6371_v46 = vld [vmem:[#allocation11 + $0x10] sm:$0xff]  ;;  %v2535_v35 = vadd.f32 %v8866_v30, %v8865_v18 }
 0x3f9   : > { %5424 = vmatpush.bf16.msrb.mxu2 %v6371_v46  ;;  %v8881_v18 = vld [vmem:[#allocation158_spill] sm:$0xff] }
 0x3fa   : > { %v5329_v16 = vadd.f32 %v5328_v47, %v5298_v38  ;;  %v4822_v13 = vadd.f32 %v8151_v6, %v3890_v36 }
 0x3fc   : > { %v5231_v42 = vadd.f32 %v5175_v29, %v4822_v13  ;;  %v5185_v8 = vpop.f32.mrf.mxu1 }
 0x3fd   : > { %v3836_v20 = vpop.f32.mrf.mxu2 }
 0x3fe   : > { %v5267_v17 = vadd.f32 %v8273_v52, %v5231_v42  ;;  %v3837_v49 = vadd.f32 %v3836_v20, %v8841_v0  ;;  %v8856_v20 = vld [vmem:[#allocation72_spill] sm:$0xff]  ;;  %v8858_v0 = vld [vmem:[#allocation70_spill] sm:$0xff] }
 0x3ff   : > { %v2802_v31 = vadd.f32 %v8856_v20, %v2713_v23  ;;  %v8869_v23 = vld [vmem:[#allocation78_spill] sm:$0xff]  ;;  %v8873_v20 = vld [vmem:[#allocation136_spill] sm:$0xff] }
 0x400   : > { %v5299_v21 = vmax.f32 %v5267_v17, 0.0  ;;  %v3891_v50 = vadd.f32 %v3837_v49, %v2794_v11 }
 0x402   : > { %v5330_v27 = vadd.f32 %v5329_v16, %v5299_v21  ;;  %v4823_v45 = vadd.f32 %v8157_v1, %v3891_v50  ;;  %v8855_v16 = vld [vmem:[#allocation150_spill] sm:$0xff]  ;;  %v8859_v50 = vld [vmem:[#allocation151_spill] sm:$0xff] }
 0x403   : > { %v2530_v13 = vadd.f32 %v8855_v16, %v8854_v53 }
 0x404   : > { %v5232_v6 = vadd.f32 %v5177_v4, %v4823_v45  ;;  %v4778_v4 = vpop.f32.mrf.mxu0  ;;  %v5187_v32 = vpop.f32.mrf.mxu1  ;;  %v8860_v45 = vld [vmem:[#allocation77_spill] sm:$0xff] }
 0x405   : > { %v3839_v29 = vpop.f32.mrf.mxu2  ;;  %v2715_v49 = vadd.f32 %v8858_v0, %v2530_v13  ;;  %v8872_v13 = vld [vmem:[#allocation84_spill] sm:$0xff] }
 0x406   : > { %v5268_v58 = vadd.f32 %v8273_v52, %v5232_v6  ;;  %v3840_v40 = vadd.f32 %v3839_v29, %v8845_v44  ;;  %v8861_v6 = vld [vmem:[#allocation153_spill] sm:$0xff] }
 0x407   : > { %v2533_v29 = vadd.f32 %v8861_v6, %v8860_v45  ;;  %v8876_v45 = vld [vmem:[#allocation157_spill] sm:$0xff] }
 0x408   : > { %v5300_v37 = vmax.f32 %v5268_v58, 0.0  ;;  %v3892_v22 = vadd.f32 %v3840_v40, %v2797_v48  ;;  %v8862_v58 = vld [vmem:[#allocation76_spill] sm:$0xff] }
 0x409   : > { %v2804_v12 = vadd.f32 %v8862_v58, %v2715_v49  ;;  %v8863_v48 = vld [vmem:[#allocation132_spill] sm:$0xff] }
 0x40a   : > { %v5331_v2 = vadd.f32 %v5330_v27, %v5300_v37  ;;  %v4824_v1 = vadd.f32 %v8847_v39, %v3892_v22  ;;  %v4779_v37 = vadd.f32 %v4778_v4, %v4689_v28 }
 0x40c   : > { %v5233_v61 = vadd.f32 %v5180_v7, %v4824_v1  ;;  %v4692_v7 = vpop.f32.mrf.mxu3  ;;  %v4781_v36 = vpop.f32.mrf.mxu0 }
 0x40d   : > { %v3841_v5 = vpop.f32.mrf.mxu2 }
 0x40e   : > { %v5269_v47 = vadd.f32 %v8273_v52, %v5233_v61  ;;  %v3842_v26 = vadd.f32 %v3841_v5, %v8851_v60  ;;  %v8868_v60 = vld [vmem:[#allocation135_spill] sm:$0xff] }
 0x410   : > { %v5301_v57 = vmax.f32 %v5269_v47, 0.0  ;;  %v3893_v33 = vadd.f32 %v3842_v26, %v2799_v51 }
 0x412   : > { %v5332_v43 = vadd.f32 %v5331_v2, %v5301_v57  ;;  %v4825_v56 = vadd.f32 %v8853_v62, %v3893_v33  ;;  %v2718_v2 = vadd.f32 %v8864_v55, %v2533_v29  ;;  %v4782_v57 = vadd.f32 %v4781_v36, %v4692_v7 }
 0x414   : > { %v5234_v38 = vadd.f32 %v5182_v24, %v4825_v56  ;;  %v5190_v24 = vpop.f32.mrf.mxu1  ;;  %v4694_v19 = vpop.f32.mrf.mxu3  ;;  %v2807_v51 = vadd.f32 %v8867_v59, %v2718_v2 }
 0x415   : > { %v3844_v14 = vpop.f32.mrf.mxu2  ;;  %v4783_v40 = vpop.f32.mrf.mxu0 }
 0x416   : > { %v5270_v42 = vadd.f32 %v8273_v52, %v5234_v38  ;;  %v3845_v17 = vadd.f32 %v3844_v14, %v8857_v10  ;;  %v8870_v38 = vld [vmem:[#allocation85_spill] sm:$0xff]  ;;  %v8871_v14 = vld [vmem:[#allocation156_spill] sm:$0xff]  ;;  %v4784_v36 = vadd.f32 %v4783_v40, %v4694_v19 }
 0x417   : > { %v2538_v53 = vadd.f32 %v8871_v14, %v8870_v38  ;;  %v8878_v19 = vld [vmem:[#allocation137_spill] sm:$0xff]  ;;  %v8886_v38 = vld [vmem:[#allocation159_spill] sm:$0xff] }
 0x418   : > { %v5302_v34 = vmax.f32 %v5270_v42, 0.0  ;;  %v3894_v11 = vadd.f32 %v3845_v17, %v2802_v31 }
 0x41a   : > { %v5333_v21 = vadd.f32 %v5332_v43, %v5302_v34  ;;  %v4826_v9 = vadd.f32 %v8859_v50, %v3894_v11  ;;  %v2720_v43 = vadd.f32 %v8869_v23, %v2535_v35  ;;  %v8874_v34 = vld [vmem:[#allocation82_spill] sm:$0xff] }
 0x41b   : > { %v2723_v11 = vadd.f32 %v8874_v34, %v2538_v53  ;;  %v6370_v50 = vld [vmem:[#allocation11 + $0x8] sm:$0xff] }
 0x41c   : > { %v5235_v25 = vadd.f32 %v5185_v8, %v4826_v9  ;;  %v5192_v61 = vpop.f32.mrf.mxu1  ;;  %v4697_v28 = vpop.f32.mrf.mxu3  ;;  %v2809_v42 = vadd.f32 %v8872_v13, %v2720_v43  ;;  %5425 = vmatpush.bf16.msrb.mxu2 %v6370_v50 }
 0x41d   : > { %v3846_v27 = vpop.f32.mrf.mxu2  ;;  %v4786_v63 = vpop.f32.mrf.mxu0 }
 0x41e   : > { %v5271_v15 = vadd.f32 %v8273_v52, %v5235_v25  ;;  %v3847_v44 = vadd.f32 %v3846_v27, %v8863_v48  ;;  %v8875_v27 = vld [vmem:[#allocation89_spill] sm:$0xff]  ;;  %v4787_v48 = vadd.f32 %v4786_v63, %v4697_v28 }
 0x41f   : > { %v2540_v6 = vadd.f32 %v8876_v45, %v8875_v27  ;;  %v8892_v45 = vld [vmem:[#allocation99_spill] sm:$0xff] }
 0x420   : > { %v5303_v22 = vmax.f32 %v5271_v15, 0.0  ;;  %v3895_v41 = vadd.f32 %v3847_v44, %v2804_v12  ;;  %v8877_v15 = vld [vmem:[#allocation88_spill] sm:$0xff] }
 0x421   : > { %v2812_v58 = vadd.f32 %v8877_v15, %v2723_v11 }
 0x422   : > { %v5334_v39 = vadd.f32 %v5333_v21, %v5303_v22  ;;  %v4827_v1 = vadd.f32 %v4779_v37, %v3895_v41  ;;  %v8879_v22 = vld [vmem:[#allocation86_spill] sm:$0xff] }
 0x423   : > { %v2725_v41 = vadd.f32 %v8879_v22, %v2540_v6 }
 0x424   : > { %v5236_v8 = vadd.f32 %v5187_v32, %v4827_v1  ;;  %v5195_v7 = vpop.f32.mrf.mxu1  ;;  %v4699_v0 = vpop.f32.mrf.mxu3 }
 0x425   : > { %v3849_v5 = vpop.f32.mrf.mxu2  ;;  %v4788_v9 = vpop.f32.mrf.mxu0 }
 0x426   : > { %v5272_v47 = vadd.f32 %v8273_v52, %v5236_v8  ;;  %v3850_v26 = vadd.f32 %v3849_v5, %v8868_v60  ;;  %v8880_v5 = vld [vmem:[#allocation93_spill] sm:$0xff] }
 0x427   : > { %v2543_v30 = vadd.f32 %v8881_v18, %v8880_v5  ;;  %v8897_v18 = vld [vmem:[#allocation103_spill] sm:$0xff] }
 0x428   : > { %v5304_v4 = vmax.f32 %v5272_v47, 0.0  ;;  %v3896_v33 = vadd.f32 %v3850_v26, %v2807_v51  ;;  %v8882_v47 = vld [vmem:[#allocation92_spill] sm:$0xff]  ;;  %v8883_v51 = vld [vmem:[#allocation139_spill] sm:$0xff]  ;;  %v4789_v26 = vadd.f32 %v4788_v9, %v4699_v0 }
 0x429   : > { %v2814_v59 = vadd.f32 %v8882_v47, %v2725_v41  ;;  %v8890_v9 = vld [vmem:[#allocation100_spill] sm:$0xff] }
 0x42a   : > { %v5335_v62 = vadd.f32 %v5334_v39, %v5304_v4  ;;  %v4828_v32 = vadd.f32 %v4782_v57, %v3896_v33  ;;  %v8884_v4 = vld [vmem:[#allocation90_spill] sm:$0xff] }
 0x42b   : > { %v2728_v33 = vadd.f32 %v8884_v4, %v2543_v30 }
 0x42c   : > { %v5237_v56 = vadd.f32 %v5190_v24, %v4828_v32  ;;  %v5197_v37 = vpop.f32.mrf.mxu1  ;;  %v4702_v39 = vpop.f32.mrf.mxu3 }
 0x42d   : > { %v3851_v46 = vpop.f32.mrf.mxu2  ;;  %v4791_v8 = vpop.f32.mrf.mxu0 }
 0x42e   : > { %v5273_v16 = vadd.f32 %v8273_v52, %v5237_v56  ;;  %v3852_v31 = vadd.f32 %v3851_v46, %v8873_v20  ;;  %v8885_v46 = vld [vmem:[#allocation96_spill] sm:$0xff] }
 0x42f   : > { %v2545_v14 = vadd.f32 %v8886_v38, %v8885_v46  ;;  %v8901_v38 = vld [vmem:[#allocation107_spill] sm:$0xff] }
 0x430   : > { %v5305_v10 = vmax.f32 %v5273_v16, 0.0  ;;  %v3897_v17 = vadd.f32 %v3852_v31, %v2809_v42  ;;  %v8887_v16 = vld [vmem:[#allocation95_spill] sm:$0xff]  ;;  %v8888_v42 = vld [vmem:[#allocation142_spill] sm:$0xff] }
 0x431   : > { %v2817_v13 = vadd.f32 %v8887_v16, %v2728_v33 }
 0x432   : > { %v5336_v49 = vadd.f32 %v5335_v62, %v5305_v10  ;;  %v4829_v21 = vadd.f32 %v4784_v36, %v3897_v17  ;;  %v8889_v17 = vld [vmem:[#allocation94_spill] sm:$0xff] }
 0x433   : > { %v2730_v34 = vadd.f32 %v8889_v17, %v2545_v14 }
 0x434   : > { %v5238_v24 = vadd.f32 %v5192_v61, %v4829_v21  ;;  %v5200_v43 = vpop.f32.mrf.mxu1  ;;  %v4704_v56 = vpop.f32.mrf.mxu3 }
 0x435   : > { %v3854_v25 = vpop.f32.mrf.mxu2  ;;  %v4793_v31 = vpop.f32.mrf.mxu0  ;;  %v2819_v6 = vadd.f32 %v8892_v45, %v2730_v34 }
 0x436   : > { %v5274_v29 = vadd.f32 %v8273_v52, %v5238_v24  ;;  %v3855_v12 = vadd.f32 %v3854_v25, %v8878_v19  ;;  %v8891_v24 = vld [vmem:[#allocation160_spill] sm:$0xff] }
 0x437   : > { %v2548_v25 = vadd.f32 %v8891_v24, %v8890_v9  ;;  %v8905_v24 = vld [vmem:[#allocation111_spill] sm:$0xff] }
 0x438   : > { %v5306_v44 = vmax.f32 %v5274_v29, 0.0  ;;  %v3898_v40 = vadd.f32 %v3855_v12, %v2812_v58  ;;  %v8893_v29 = vld [vmem:[#allocation144_spill] sm:$0xff]  ;;  %v4794_v58 = vadd.f32 %v4793_v31, %v4704_v56 }
 0x43a   : > { %v5337_v55 = vadd.f32 %v5336_v49, %v5306_v44  ;;  %v4830_v2 = vadd.f32 %v4787_v48, %v3898_v40  ;;  %v8894_v40 = vld [vmem:[#allocation98_spill] sm:$0xff] }
 0x43c   : > { %v5239_v1 = vadd.f32 %v5195_v7, %v4830_v2  ;;  %v4792_v7 = vadd.f32 %v4791_v8, %v4702_v39  ;;  %v5202_v21 = vpop.f32.mrf.mxu1  ;;  %v4707_v19 = vpop.f32.mrf.mxu3  ;;  %v8896_v8 = vld [vmem:[#allocation161_spill] sm:$0xff] }
 0x43d   : > { %v3856_v61 = vpop.f32.mrf.mxu2  ;;  %v4796_v44 = vpop.f32.mrf.mxu0 }
 0x43e   : > { %v5275_v35 = vadd.f32 %v8273_v52, %v5239_v1  ;;  %v3857_v60 = vadd.f32 %v3856_v61, %v8883_v51  ;;  %v8895_v1 = vld [vmem:[#allocation104_spill] sm:$0xff]  ;;  %v4797_v51 = vadd.f32 %v4796_v44, %v4707_v19 }
 0x43f   : > { %v2550_v61 = vadd.f32 %v8896_v8, %v8895_v1 }
 0x440   : > { %v5307_v57 = vmax.f32 %v5275_v35, 0.0  ;;  %v3899_v28 = vadd.f32 %v3857_v60, %v2814_v59  ;;  %v8898_v35 = vld [vmem:[#allocation145_spill] sm:$0xff] }
 0x442   : > { %v5338_v63 = vadd.f32 %v5337_v55, %v5307_v57  ;;  %v4831_v23 = vadd.f32 %v4789_v26, %v3899_v28  ;;  %v6369_v55 = vld [vmem:[#allocation11] sm:$0xff] }
 0x443   : > { %5426 = vmatpush.bf16.msrb.mxu2 %v6369_v55  ;;  %v8899_v28 = vld [vmem:[#allocation101_spill] sm:$0xff] }
 0x444   : > { %v5240_v62 = vadd.f32 %v5197_v37, %v4831_v23  ;;  %v2733_v37 = vadd.f32 %v8894_v40, %v2548_v25  ;;  %v5205_v59 = vpop.f32.mrf.mxu1  ;;  %v4709_v57 = vpop.f32.mrf.mxu3  ;;  %v2735_v4 = vadd.f32 %v8899_v28, %v2550_v61 }
 0x445   : > { %v3859_v32 = vpop.f32.mrf.mxu2  ;;  %v4798_v23 = vpop.f32.mrf.mxu0 }
 0x446   : > { %v5276_v53 = vadd.f32 %v8273_v52, %v5240_v62  ;;  %v3860_v20 = vadd.f32 %v3859_v32, %v8888_v42  ;;  %v2822_v30 = vadd.f32 %v8897_v18, %v2733_v37  ;;  %v8900_v32 = vld [vmem:[#allocation108_spill] sm:$0xff]  ;;  %v2824_v14 = vadd.f32 %v8901_v38, %v2735_v4 }
 0x447   : > { %v2553_v56 = vadd.f32 %v8240_v54, %v8900_v32 }
 0x448   : > { %v5308_v36 = vmax.f32 %v5276_v53, 0.0  ;;  %v3900_v10 = vadd.f32 %v3860_v20, %v2817_v13  ;;  %v8902_v53 = vld [vmem:[#allocation148_spill] sm:$0xff]  ;;  %v4799_v13 = vadd.f32 %v4798_v23, %v4709_v57 }
 0x44a   : > { %v5339_v11 = vadd.f32 %v5338_v63, %v5308_v36  ;;  %v4832_v0 = vadd.f32 %v4792_v7, %v3900_v10  ;;  %v8903_v7 = vld [vmem:[#allocation105_spill] sm:$0xff] }
 0x44b   : > { %v2738_v36 = vadd.f32 %v8903_v7, %v2553_v56 }
 0x44c   : > { %v5241_v49 = vadd.f32 %v5200_v43, %v4832_v0  ;;  %v5207_v31 = vpop.f32.mrf.mxu1  ;;  %v4712_v34 = vpop.f32.mrf.mxu3 }
 0x44d   : > { %v3861_v50 = vpop.f32.mrf.mxu2  ;;  %v2827_v25 = vadd.f32 %v8905_v24, %v2738_v36 }
 0x44e   : > { %v5277_v27 = vadd.f32 %v8273_v52, %v5241_v49  ;;  %v3862_v15 = vadd.f32 %v3861_v50, %v8893_v29  ;;  %v8904_v49 = vld [vmem:[#allocation112_spill] sm:$0xff] }
 0x44f   : > { %v2555_v54 = vadd.f32 %v8248_v3, %v8904_v49 }
 0x450   : > { %v5309_v12 = vmax.f32 %v5277_v27, 0.0  ;;  %v3901_v48 = vadd.f32 %v3862_v15, %v2819_v6  ;;  %v8906_v27 = vld [vmem:[#allocation152_spill] sm:$0xff] }
 0x452   : > { %v5340_v22 = vadd.f32 %v5339_v11, %v5309_v12  ;;  %v4833_v41 = vadd.f32 %v4794_v58, %v3901_v48  ;;  %v4801_v11 = vpop.f32.mrf.mxu0  ;;  %v8907_v58 = vld [vmem:[#allocation109_spill] sm:$0xff] }
 0x453   : > { %v4802_v9 = vadd.f32 %v4801_v11, %v4712_v34  ;;  %v2740_v19 = vadd.f32 %v8907_v58, %v2555_v54 }
 0x454   : > { %v5242_v2 = vadd.f32 %v5202_v21, %v4833_v41  ;;  %v5210_v15 = vpop.f32.mrf.mxu1  ;;  %v4714_v40 = vpop.f32.mrf.mxu3  ;;  %v8908_v41 = vld [vmem:[#allocation113_spill] sm:$0xff] }
 0x455   : > { %v3864_v39 = vpop.f32.mrf.mxu2  ;;  %v2829_v55 = vadd.f32 %v8908_v41, %v2740_v19 }
 0x456   : > { %v5278_v5 = vadd.f32 %v8273_v52, %v5242_v2  ;;  %v3865_v47 = vadd.f32 %v3864_v39, %v8898_v35  ;;  %v8909_v2 = vld [vmem:[#allocation154_spill] sm:$0xff] }
 0x458   : > { %v5310_v60 = vmax.f32 %v5278_v5, 0.0  ;;  %v3902_v26 = vadd.f32 %v3865_v47, %v2822_v30  ;;  %v6514_v47 = vld [vmem:[%s8588_s4] ss:$0 sm:$0xff] }
 0x45a   : > { %v5341_v33 = vadd.f32 %v5340_v22, %v5310_v60  ;;  %v4834_v63 = vadd.f32 %v4797_v51, %v3902_v26  ;;  %v4803_v37 = vpop.f32.mrf.mxu0 }
 0x45b   : > { %v4804_v8 = vadd.f32 %v4803_v37, %v4714_v40 }
 0x45c   : > { %v5243_v43 = vadd.f32 %v5205_v59, %v4834_v63  ;;  %v5212_v30 = vpop.f32.mrf.mxu1 }
 0x45d   : > { %v3866_v62 = vpop.f32.mrf.mxu2 }
 0x45e   : > { %v5279_v46 = vadd.f32 %v8273_v52, %v5243_v43  ;;  %v3867_v16 = vadd.f32 %v3866_v62, %v8902_v53  ;;  %v5370_v43 = vld [vmem:[%s8590_s6] sm:$0x1] }
 0x460   : > { %v5311_v42 = vmax.f32 %v5279_v46, 0.0  ;;  %v3903_v20 = vadd.f32 %v3867_v16, %v2824_v14 }
 0x462   : > { %v5342_v10 = vadd.f32 %v5341_v33, %v5311_v42  ;;  %v4835_v17 = vadd.f32 %v4799_v13, %v3903_v20 }
 0x464   : > { %v5244_v0 = vadd.f32 %v5207_v31, %v4835_v17 }
 0x465   : > { %v3869_v21 = vpop.f32.mrf.mxu2 }
 0x466   : > { %v5280_v50 = vadd.f32 %v8273_v52, %v5244_v0  ;;  %v3870_v45 = vadd.f32 %v3869_v21, %v8906_v27 }
 0x468   : > { %v5312_v6 = vmax.f32 %v5280_v50, 0.0  ;;  %v3904_v29 = vadd.f32 %v3870_v45, %v2827_v25 }
 0x46a   : > { %v5343_v12 = vadd.f32 %v5342_v10, %v5312_v6  ;;  %v4836_v48 = vadd.f32 %v4802_v9, %v3904_v29 }
 0x46c   : > { %v5245_v44 = vadd.f32 %v5210_v15, %v4836_v48 }
 0x46d   : > { %v3871_v22 = vpop.f32.mrf.mxu2 }
 0x46e   : > { %v5281_v3 = vadd.f32 %v8273_v52, %v5245_v44  ;;  %v3872_v39 = vadd.f32 %v3871_v22, %v8909_v2 }
 0x470   : > { %v5313_v1 = vmax.f32 %v5281_v3, 0.0  ;;  %v3905_v61 = vadd.f32 %v3872_v39, %v2829_v55 }
 0x472   : > { %v5344_v5 = vadd.f32 %v5343_v12, %v5313_v1  ;;  %v4837_v18 = vadd.f32 %v4804_v8, %v3905_v61 }
 0x474   : > { %v5246_v35 = vadd.f32 %v5212_v30, %v4837_v18 }
 0x476   : > { %v5282_v59 = vadd.f32 %v6514_v47, %v5246_v35 }
 0x478   : > { %v5314_v51 = vmax.f32 %v5282_v59, 0.0 }
 0x47a   : > { %v5345_v52 = vadd.f32 %v5344_v5, %v5314_v51 }
 0x47c   : > { %v5346_v60 = vrot.slane %v5345_v52, 4 }
 0x47e   : > { %v5347_v26 = vadd.f32 %v5346_v60, %v5345_v52 }
 0x480   : > { %v5348_v57 = vrot.slane %v5347_v26, 2 }
 0x482   : > { %v5349_v28 = vadd.f32 %v5348_v57, %v5347_v26 }
 0x484   : > { %v5350_v4 = vrot.slane %v5349_v28, 1 }
 0x486   : > { %v5351_v33 = vadd.f32 %v5350_v4, %v5349_v28 }
 0x488   : > { %v5352_v63 = vmul.f32 0.00390625, %v5351_v33 }
 0x48a   : > { %v5353_v23 = vpack.c.bf16 %v5352_v63, %v5352_v63 }
 0x48c   : > { %5427 = vmatmul.bf16.vlgmr.msrb.gmra.mxu2 %v5353_v23 }
 0x50f   : > { %v5428_v62 = vpop.f32.mrf.mxu2 }
 0x510   : > { %v5429_v32 = vadd.f32 %v5428_v62, %v5370_v43 }
 0x512   : > { %5432 = vst [vmem:[%s363_s15] sm:$0x1] %v5429_v32 }
 0x513   : > { %6692 = shalt.err (!%p6689_p10)
}
 0x514   : > { %6411 = dma.vmem_to_hbm [thread:$0]  (%p6884_p3), %s5445_s17, 16, %s5447_s20, %s5434_s1  }
 0x517   : > { %v5430_v56 = vpop.f32.mrf.mxu2 }
 0x518 PF: > { %s5458_s11 = sand.u32 1, %s6727_s24   ;;  %p8910_p12 = scmp.ge.s32.totalorder %s6739_s27, 2 }
 0x519   : > { %s5459_s22 = scalar_lea.sflag [#allocation5], %s5458_s11 }
 0x51a   : > { %p6431_p13 = pnand %p8910_p12, %p6823_p6 }
 0x51c   : > { %p6432_p0 = pneg %p6431_p13 }
 0x51e   : > { %6722 = dma.done.wait (%p6432_p0), %s5459_s22, 16  }
 0x51f   : > { %6724 = vsyncadd (%p6432_p0), %s5459_s22, 4294967280  ;;  %p22_p5 = scmp.ge.s32.totalorder %s6874_s21, 4   ;;  %s8911_s24 = smov %s6731_s25 }
 0x520   : > { %s8912_s25 = smov %s6735_s26  ;;  %s8913_s26 = smov %s6890_s9 }
 0x521   : > { %s8914_s27 = smov %s6874_s21  ;;  %24 = sbr.rel (!%p22_p5) target bundleno = 9 (0x9), region = 115 }
 0x526   :  { %5464 = vsyncpa [#allocation4], 1 }
 0x527   :  { %5466 = vsyncpa [#allocation4 + $0x1], 1 }
 0x528   :  { %5467 = vsyncpa [#allocation7], 1 }
 0x529   :  { %5468 = vsyncpa [#allocation10], 1 }
 0x52a   :  { %5469 = vsyncpa [#allocation5], 1 }
 0x52b   :  { %5471 = vsyncpa [#allocation5 + $0x1], 1 }

</bundles_post_ra>
